<compile_context>
chip_gen: v5e
topology: v5e:2x2
jax: 0.10.0
libtpu: 0.0.40
codegen_flags: <defaults>
</compile_context>

<pallas_src>
import numpy as np
import jax
import jax.numpy as jnp
from jax.experimental import pallas as pl
from jax.experimental.pallas import tpu as pltpu

LEAKY_SLOPE = 0.2
BN_EPS = 0.8
HIDDEN = 300
HIDDEN_PAD = 384          # 300 zero-padded to a lane-dense multiple of 128
NUM_CLASSES = 2
CONV_DIMS = [16, 32, 64, 128, 256]
BN_FLAGS = [False, True, True, True, True]


# ------------------------------- Pallas kernel ------------------------------

def _fused_forward_kernel(x_ref, *refs):
    """Whole forward pass for one image, entirely in VMEM/vregs."""
    *layer_refs, w1_ref, b1_ref, w2_ref, b2_ref, o_ref = refs
    num_layers = len(layer_refs) // 4

    x = x_ref[0].astype(jnp.bfloat16)                     # (H, W*Cin), lanes = (w, c)

    for l in range(num_layers):
        s_ref, m_ref, bias_ref, shift_ref = layer_refs[4 * l:4 * l + 4]
        acc = None
        for kh in range(3):                               # three kernel-row taps
            # rows 2*ho + kh - 1 of x (all-zero selector rows encode top padding)
            t = jnp.dot(s_ref[kh], x, preferred_element_type=jnp.float32)
            t = t.astype(jnp.bfloat16)                    # (Ho, W*Cin)
            c = jnp.dot(t, m_ref[kh], preferred_element_type=jnp.float32)
            acc = c if acc is None else acc + c           # (Ho, Wo*Cout), f32
        acc = acc + bias_ref[...]                         # conv bias (BN scale folded in)
        acc = jnp.where(acc > 0, acc, LEAKY_SLOPE * acc)  # LeakyReLU(0.2)
        # Dropout2d(p=0.0) == identity.
        acc = acc + shift_ref[...]                        # BatchNorm shift (eval, folded)
        x = acc.astype(jnp.bfloat16)

    # Head: Linear(f_in, 300) -> ReLU -> Linear(300, 2) -> Softmax(dim=1).
    # w1 rows were pre-permuted so the NCHW flatten order is absorbed at init.
    hidden = None
    for h in range(x.shape[0]):
        c = jnp.dot(x[h:h + 1, :], w1_ref[h], preferred_element_type=jnp.float32)
        hidden = c if hidden is None else hidden + c
    hidden = jnp.maximum(hidden + b1_ref[...], 0.0)       # (1, 384), ReLU
    logits = jnp.dot(hidden.astype(jnp.bfloat16), w2_ref[...],
                     preferred_element_type=jnp.float32) + b2_ref[...]
    m = jnp.max(logits, axis=-1, keepdims=True)           # stable softmax over 2 classes
    e = jnp.exp(logits - m)
    o_ref[0] = (e / jnp.sum(e, axis=-1, keepdims=True)).astype(jnp.float32)


# ------------------------------ JAX glue code --------------------------------

def my_model_forward(img_nchw, layer_params, head_params):
    """Fused forward: one pallas_call, grid over batch (megacore-parallel)."""
    B, C, H, W = img_nchw.shape
    # NCHW -> (B, H, W*C) with lanes in (w, c) order; the only XLA op in the path.
    x = jnp.transpose(img_nchw, (0, 2, 3, 1)).reshape(B, H, W * C).astype(jnp.float32)

    flat = []
    for layer in layer_params:
        flat.extend(layer)
    flat.extend(head_params)

    def resident(a):          # whole array stays resident in VMEM across the grid
        return pl.BlockSpec(a.shape, lambda b, _n=a.ndim: (0,) * _n)

    out = pl.pallas_call(
        _fused_forward_kernel,
        out_shape=jax.ShapeDtypeStruct((B, 1, NUM_CLASSES), jnp.float32),
        grid=(B,),
        in_specs=[pl.BlockSpec((1, H, W * C), lambda b: (b, 0, 0))]
                 + [resident(a) for a in flat],
        out_specs=pl.BlockSpec((1, 1, NUM_CLASSES), lambda b: (b, 0, 0)),
        compiler_params=pltpu.CompilerParams(
            dimension_semantics=("parallel",),      # batch axis -> both TCs on v7x
            vmem_limit_bytes=32 * 1024 * 1024,      # explicit budget (~2 MB used)
        ),
    )(x, *flat)
    return out.reshape(B, NUM_CLASSES)


def init_params(key, in_channels, img_size):
    """Build kernel-layout parameters plus raw parameters for the XLA reference.

    Per conv layer:
      S:     (3, Ho, H)          0/1 row-selection matrices (one per kernel row)
      M:     (3, H*Cin, Wo*Cout) banded kernel-column + channel-mixing matrices
                                 (BN scale folded into weights)
      bias:  (1, Wo*Cout)        conv bias * BN scale, tiled over wo
      shift: (1, Wo*Cout)        BN shift (beta - mean*scale), tiled over wo
    """
    assert img_size % 32 == 0, "img_size must be divisible by 32 (5 stride-2 convs)"
    dims = [in_channels] + CONV_DIMS
    keys = jax.random.split(key, 2 * len(CONV_DIMS) + 4)
    ki = 0

    layer_params, raw_conv = [], []
    hw = img_size
    for l in range(len(CONV_DIMS)):
        cin, cout = dims[l], dims[l + 1]
        fan_in = 9 * cin
        bound = 1.0 / np.sqrt(fan_in)
        w = jax.random.uniform(keys[ki], (3, 3, cin, cout), jnp.float32, -bound, bound); ki += 1
        b = jax.random.uniform(keys[ki], (cout,), jnp.float32, -bound, bound); ki += 1

        # BatchNorm2d(cout, 0.8): eval mode, fresh stats (mean=0, var=1, gamma=1, beta=0).
        # TODO(synk): train-mode BatchNorm (batch statistics) is not emulated.
        if BN_FLAGS[l]:
            scale = np.full((cout,), 1.0 / np.sqrt(1.0 + BN_EPS), np.float32)
        else:
            scale = np.ones((cout,), np.float32)
        shift = np.zeros((cout,), np.float32)

        hw_o = hw // 2
        w_np, b_np = np.asarray(w), np.asarray(b)

        S = np.zeros((3, hw_o, hw), np.float32)
        M = np.zeros((3, hw * cin, hw_o * cout), np.float32)
        for kh in range(3):
            for i in range(hw_o):
                h_src = 2 * i + kh - 1
                if 0 <= h_src < hw:
                    S[kh, i, h_src] = 1.0
            for wo in range(hw_o):
                for kw in range(3):
                    w_src = 2 * wo + kw - 1
                    if 0 <= w_src < hw:
                        # scale > 0 and LeakyReLU is positively homogeneous, so the
                        # BN scale folds into the conv weights and bias.
                        M[kh, w_src * cin:(w_src + 1) * cin, wo * cout:(wo + 1) * cout] = \
                            w_np[kh, kw] * scale[None, :]
        bias_row = np.tile(b_np * scale, hw_o)[None, :]
        shift_row = np.tile(shift, hw_o)[None, :]

        layer_params.append((jnp.asarray(S, jnp.bfloat16),
                             jnp.asarray(M, jnp.bfloat16),
                             jnp.asarray(bias_row, jnp.float32),
                             jnp.asarray(shift_row, jnp.float32)))
        raw_conv.append((w, b, jnp.asarray(scale), jnp.asarray(shift)))
        hw = hw_o

    # Head.  torch: Linear(64*(S//16)^2, 300) == Linear(256*(S//32)^2, 300).
    h5, c5 = hw, dims[-1]
    f_in = c5 * h5 * h5
    assert f_in == 64 * (img_size // 2 ** 4) ** 2
    b1_bound = 1.0 / np.sqrt(f_in)
    w1 = jax.random.uniform(keys[ki], (f_in, HIDDEN), jnp.float32, -b1_bound, b1_bound); ki += 1
    b1 = jax.random.uniform(keys[ki], (HIDDEN,), jnp.float32, -b1_bound, b1_bound); ki += 1
    b2_bound = 1.0 / np.sqrt(HIDDEN)
    w2 = jax.random.uniform(keys[ki], (HIDDEN, NUM_CLASSES), jnp.float32, -b2_bound, b2_bound); ki += 1
    b2 = jax.random.uniform(keys[ki], (NUM_CLASSES,), jnp.float32, -b2_bound, b2_bound); ki += 1

    # Fold the NCHW flatten order (c, h, w) into w1's rows, re-ordered to the
    # kernel's lane layout (per row h: w-major, c-minor); zero-pad 300 -> 384.
    w1_np = np.asarray(w1).reshape(c5, h5, h5, HIDDEN)          # (c, h, w, hid)
    w1_np = np.transpose(w1_np, (1, 2, 0, 3)).reshape(h5, h5 * c5, HIDDEN)
    w1_pad = np.zeros((h5, h5 * c5, HIDDEN_PAD), np.float32)
    w1_pad[..., :HIDDEN] = w1_np
    b1_pad = np.zeros((1, HIDDEN_PAD), np.float32)
    b1_pad[0, :HIDDEN] = np.asarray(b1)
    w2_pad = np.zeros((HIDDEN_PAD, NUM_CLASSES), np.float32)
    w2_pad[:HIDDEN] = np.asarray(w2)

    head_params = (jnp.asarray(w1_pad, jnp.bfloat16),
                   jnp.asarray(b1_pad, jnp.float32),
                   jnp.asarray(w2_pad, jnp.bfloat16),
                   jnp.asarray(np.asarray(b2)[None, :], jnp.float32))

    ref_params = {"conv": raw_conv, "w1": w1, "b1": b1, "w2": w2, "b2": b2}
    return {"layers": layer_params, "head": head_params, "ref": ref_params}


def reference_forward(img_nchw, ref_params):
    """Pure-JAX (XLA) reference of the same forward, for in-script validation."""
    x = img_nchw.astype(jnp.float32)
    for w, b, scale, shift in ref_params["conv"]:
        x = jax.lax.conv_general_dilated(
            x, w, window_strides=(2, 2), padding=((1, 1), (1, 1)),
            dimension_numbers=("NCHW", "HWIO", "NCHW"))
        x = x + b[None, :, None, None]
        x = jnp.where(x > 0, x, LEAKY_SLOPE * x)
        x = x * scale[None, :, None, None] + shift[None, :, None, None]
    flat = x.reshape(x.shape[0], -1)
    h = jnp.maximum(flat @ ref_params["w1"] + ref_params["b1"], 0.0)
    logits = h @ ref_params["w2"] + ref_params["b2"]
    return jax.nn.softmax(logits, axis=1)


if __name__ == "__main__":
    batch, in_channels, img_size = 2, 3, 32
    key = jax.random.PRNGKey(0)
    k_img, k_par = jax.random.split(key)
    img = jax.random.normal(k_img, (batch, in_channels, img_size, img_size), jnp.float32)
    params = init_params(k_par, in_channels, img_size)

    fwd = jax.jit(my_model_forward)
    validity = jax.block_until_ready(fwd(img, params["layers"], params["head"]))

    assert validity.shape == (batch, NUM_CLASSES), validity.shape
    assert jnp.allclose(jnp.sum(validity, axis=1), 1.0, atol=1e-4)   # softmax rows sum to 1

    # Validate the fused bf16 kernel against a pure-JAX f32 reference.
    ref = jax.block_until_ready(reference_forward(img, params["ref"]))
    assert jnp.allclose(validity, ref, atol=5e-2), (validity, ref)

    print("KERNEL_OK")
</pallas_src>

<mosaic_0001>
module attributes {stable_mosaic.version = 11 : i64} {
  func.func @_fused_forward_kernel(%arg0: i32, %arg1: memref<1x32x96xf32, #tpu.memory_space<vmem>>, %arg2: memref<3x16x32xbf16, #tpu.memory_space<vmem>>, %arg3: memref<3x96x256xbf16, #tpu.memory_space<vmem>>, %arg4: memref<1x256xf32, #tpu.memory_space<vmem>>, %arg5: memref<1x256xf32, #tpu.memory_space<vmem>>, %arg6: memref<3x8x16xbf16, #tpu.memory_space<vmem>>, %arg7: memref<3x256x256xbf16, #tpu.memory_space<vmem>>, %arg8: memref<1x256xf32, #tpu.memory_space<vmem>>, %arg9: memref<1x256xf32, #tpu.memory_space<vmem>>, %arg10: memref<3x4x8xbf16, #tpu.memory_space<vmem>>, %arg11: memref<3x256x256xbf16, #tpu.memory_space<vmem>>, %arg12: memref<1x256xf32, #tpu.memory_space<vmem>>, %arg13: memref<1x256xf32, #tpu.memory_space<vmem>>, %arg14: memref<3x2x4xbf16, #tpu.memory_space<vmem>>, %arg15: memref<3x256x256xbf16, #tpu.memory_space<vmem>>, %arg16: memref<1x256xf32, #tpu.memory_space<vmem>>, %arg17: memref<1x256xf32, #tpu.memory_space<vmem>>, %arg18: memref<3x1x2xbf16, #tpu.memory_space<vmem>>, %arg19: memref<3x256x256xbf16, #tpu.memory_space<vmem>>, %arg20: memref<1x256xf32, #tpu.memory_space<vmem>>, %arg21: memref<1x256xf32, #tpu.memory_space<vmem>>, %arg22: memref<1x256x384xbf16, #tpu.memory_space<vmem>>, %arg23: memref<1x384xf32, #tpu.memory_space<vmem>>, %arg24: memref<384x2xbf16, #tpu.memory_space<vmem>>, %arg25: memref<1x2xf32, #tpu.memory_space<vmem>>, %arg26: memref<1x1x2xf32, #tpu.memory_space<vmem>>) attributes {dimension_semantics = [#tpu.dimension_semantics<parallel>], iteration_bounds = array<i64: 2>, scalar_prefetch = 0 : i64, scratch_operands = 0 : i64, tpu.core_type = #tpu.core_type<tc>, window_params = [{transform_indices = @transform_0, window_bounds = array<i64: 1, 32, 96>}, {pipeline_mode = #tpu.pipeline_mode<synchronous>, transform_indices = @transform_1, window_bounds = array<i64: 3, 16, 32>}, {pipeline_mode = #tpu.pipeline_mode<synchronous>, transform_indices = @transform_2, window_bounds = array<i64: 3, 96, 256>}, {pipeline_mode = #tpu.pipeline_mode<synchronous>, transform_indices = @transform_3, window_bounds = array<i64: 1, 256>}, {pipeline_mode = #tpu.pipeline_mode<synchronous>, transform_indices = @transform_4, window_bounds = array<i64: 1, 256>}, {pipeline_mode = #tpu.pipeline_mode<synchronous>, transform_indices = @transform_5, window_bounds = array<i64: 3, 8, 16>}, {pipeline_mode = #tpu.pipeline_mode<synchronous>, transform_indices = @transform_6, window_bounds = array<i64: 3, 256, 256>}, {pipeline_mode = #tpu.pipeline_mode<synchronous>, transform_indices = @transform_7, window_bounds = array<i64: 1, 256>}, {pipeline_mode = #tpu.pipeline_mode<synchronous>, transform_indices = @transform_8, window_bounds = array<i64: 1, 256>}, {pipeline_mode = #tpu.pipeline_mode<synchronous>, transform_indices = @transform_9, window_bounds = array<i64: 3, 4, 8>}, {pipeline_mode = #tpu.pipeline_mode<synchronous>, transform_indices = @transform_10, window_bounds = array<i64: 3, 256, 256>}, {pipeline_mode = #tpu.pipeline_mode<synchronous>, transform_indices = @transform_11, window_bounds = array<i64: 1, 256>}, {pipeline_mode = #tpu.pipeline_mode<synchronous>, transform_indices = @transform_12, window_bounds = array<i64: 1, 256>}, {pipeline_mode = #tpu.pipeline_mode<synchronous>, transform_indices = @transform_13, window_bounds = array<i64: 3, 2, 4>}, {pipeline_mode = #tpu.pipeline_mode<synchronous>, transform_indices = @transform_14, window_bounds = array<i64: 3, 256, 256>}, {pipeline_mode = #tpu.pipeline_mode<synchronous>, transform_indices = @transform_15, window_bounds = array<i64: 1, 256>}, {pipeline_mode = #tpu.pipeline_mode<synchronous>, transform_indices = @transform_16, window_bounds = array<i64: 1, 256>}, {pipeline_mode = #tpu.pipeline_mode<synchronous>, transform_indices = @transform_17, window_bounds = array<i64: 3, 1, 2>}, {pipeline_mode = #tpu.pipeline_mode<synchronous>, transform_indices = @transform_18, window_bounds = array<i64: 3, 256, 256>}, {pipeline_mode = #tpu.pipeline_mode<synchronous>, transform_indices = @transform_19, window_bounds = array<i64: 1, 256>}, {pipeline_mode = #tpu.pipeline_mode<synchronous>, transform_indices = @transform_20, window_bounds = array<i64: 1, 256>}, {pipeline_mode = #tpu.pipeline_mode<synchronous>, transform_indices = @transform_21, window_bounds = array<i64: 1, 256, 384>}, {pipeline_mode = #tpu.pipeline_mode<synchronous>, transform_indices = @transform_22, window_bounds = array<i64: 1, 384>}, {pipeline_mode = #tpu.pipeline_mode<synchronous>, transform_indices = @transform_23, window_bounds = array<i64: 384, 2>}, {pipeline_mode = #tpu.pipeline_mode<synchronous>, transform_indices = @transform_24, window_bounds = array<i64: 1, 2>}, {transform_indices = @transform_25, window_bounds = array<i64: 1, 1, 2>}]} {
    %c0 = arith.constant 0 : index
    %c0_0 = arith.constant 0 : index
    %c0_1 = arith.constant 0 : index
    %0 = vector.load %arg1[%c0, %c0_0, %c0_1] : memref<1x32x96xf32, #tpu.memory_space<vmem>>, vector<1x32x96xf32>
    %1 = vector.shape_cast %0 : vector<1x32x96xf32> to vector<32x96xf32>
    %2 = arith.truncf %1 : vector<32x96xf32> to vector<32x96xbf16>
    %c0_2 = arith.constant 0 : index
    %c0_3 = arith.constant 0 : index
    %c0_4 = arith.constant 0 : index
    %3 = vector.load %arg2[%c0_2, %c0_3, %c0_4] : memref<3x16x32xbf16, #tpu.memory_space<vmem>>, vector<1x16x32xbf16>
    %4 = vector.shape_cast %3 : vector<1x16x32xbf16> to vector<16x32xbf16>
    %cst = arith.constant dense<0.000000e+00> : vector<16x96xf32>
    %5 = tpu.matmul %4, %2, %cst {dimension_numbers = #tpu.dot_dimension_numbers<[1], [0], [0], [1], [0, 0, 1, 1], [], []>} : vector<16x32xbf16>, vector<32x96xbf16>, vector<16x96xf32> -> vector<16x96xf32>
    %6 = arith.truncf %5 : vector<16x96xf32> to vector<16x96xbf16>
    %c0_5 = arith.constant 0 : index
    %c0_6 = arith.constant 0 : index
    %c0_7 = arith.constant 0 : index
    %7 = vector.load %arg3[%c0_5, %c0_6, %c0_7] : memref<3x96x256xbf16, #tpu.memory_space<vmem>>, vector<1x96x256xbf16>
    %8 = vector.shape_cast %7 : vector<1x96x256xbf16> to vector<96x256xbf16>
    %cst_8 = arith.constant dense<0.000000e+00> : vector<16x256xf32>
    %9 = tpu.matmul %6, %8, %cst_8 {dimension_numbers = #tpu.dot_dimension_numbers<[1], [0], [0], [1], [0, 0, 1, 1], [], []>} : vector<16x96xbf16>, vector<96x256xbf16>, vector<16x256xf32> -> vector<16x256xf32>
    %c1 = arith.constant 1 : index
    %c0_9 = arith.constant 0 : index
    %c0_10 = arith.constant 0 : index
    %10 = vector.load %arg2[%c1, %c0_9, %c0_10] : memref<3x16x32xbf16, #tpu.memory_space<vmem>>, vector<1x16x32xbf16>
    %11 = vector.shape_cast %10 : vector<1x16x32xbf16> to vector<16x32xbf16>
    %cst_11 = arith.constant dense<0.000000e+00> : vector<16x96xf32>
    %12 = tpu.matmul %11, %2, %cst_11 {dimension_numbers = #tpu.dot_dimension_numbers<[1], [0], [0], [1], [0, 0, 1, 1], [], []>} : vector<16x32xbf16>, vector<32x96xbf16>, vector<16x96xf32> -> vector<16x96xf32>
    %13 = arith.truncf %12 : vector<16x96xf32> to vector<16x96xbf16>
    %c1_12 = arith.constant 1 : index
    %c0_13 = arith.constant 0 : index
    %c0_14 = arith.constant 0 : index
    %14 = vector.load %arg3[%c1_12, %c0_13, %c0_14] : memref<3x96x256xbf16, #tpu.memory_space<vmem>>, vector<1x96x256xbf16>
    %15 = vector.shape_cast %14 : vector<1x96x256xbf16> to vector<96x256xbf16>
    %cst_15 = arith.constant dense<0.000000e+00> : vector<16x256xf32>
    %16 = tpu.matmul %13, %15, %cst_15 {dimension_numbers = #tpu.dot_dimension_numbers<[1], [0], [0], [1], [0, 0, 1, 1], [], []>} : vector<16x96xbf16>, vector<96x256xbf16>, vector<16x256xf32> -> vector<16x256xf32>
    %17 = arith.addf %9, %16 : vector<16x256xf32>
    %c2 = arith.constant 2 : index
    %c0_16 = arith.constant 0 : index
    %c0_17 = arith.constant 0 : index
    %18 = vector.load %arg2[%c2, %c0_16, %c0_17] : memref<3x16x32xbf16, #tpu.memory_space<vmem>>, vector<1x16x32xbf16>
    %19 = vector.shape_cast %18 : vector<1x16x32xbf16> to vector<16x32xbf16>
    %cst_18 = arith.constant dense<0.000000e+00> : vector<16x96xf32>
    %20 = tpu.matmul %19, %2, %cst_18 {dimension_numbers = #tpu.dot_dimension_numbers<[1], [0], [0], [1], [0, 0, 1, 1], [], []>} : vector<16x32xbf16>, vector<32x96xbf16>, vector<16x96xf32> -> vector<16x96xf32>
    %21 = arith.truncf %20 : vector<16x96xf32> to vector<16x96xbf16>
    %c2_19 = arith.constant 2 : index
    %c0_20 = arith.constant 0 : index
    %c0_21 = arith.constant 0 : index
    %22 = vector.load %arg3[%c2_19, %c0_20, %c0_21] : memref<3x96x256xbf16, #tpu.memory_space<vmem>>, vector<1x96x256xbf16>
    %23 = vector.shape_cast %22 : vector<1x96x256xbf16> to vector<96x256xbf16>
    %cst_22 = arith.constant dense<0.000000e+00> : vector<16x256xf32>
    %24 = tpu.matmul %21, %23, %cst_22 {dimension_numbers = #tpu.dot_dimension_numbers<[1], [0], [0], [1], [0, 0, 1, 1], [], []>} : vector<16x96xbf16>, vector<96x256xbf16>, vector<16x256xf32> -> vector<16x256xf32>
    %25 = arith.addf %17, %24 : vector<16x256xf32>
    %c0_23 = arith.constant 0 : index
    %c0_24 = arith.constant 0 : index
    %26 = vector.load %arg4[%c0_23, %c0_24] : memref<1x256xf32, #tpu.memory_space<vmem>>, vector<1x256xf32>
    %27 = vector.broadcast %26 : vector<1x256xf32> to vector<16x256xf32>
    %28 = arith.addf %25, %27 : vector<16x256xf32>
    %cst_25 = arith.constant 0.000000e+00 : f32
    %29 = vector.broadcast %cst_25 : f32 to vector<16x256xf32>
    %30 = arith.cmpf ogt, %28, %29 : vector<16x256xf32>
    %cst_26 = arith.constant 2.000000e-01 : f32
    %31 = vector.broadcast %cst_26 : f32 to vector<16x256xf32>
    %32 = arith.mulf %31, %28 : vector<16x256xf32>
    %33 = arith.select %30, %28, %32 : vector<16x256xi1>, vector<16x256xf32>
    %c0_27 = arith.constant 0 : index
    %c0_28 = arith.constant 0 : index
    %34 = vector.load %arg5[%c0_27, %c0_28] : memref<1x256xf32, #tpu.memory_space<vmem>>, vector<1x256xf32>
    %35 = vector.broadcast %34 : vector<1x256xf32> to vector<16x256xf32>
    %36 = arith.addf %33, %35 : vector<16x256xf32>
    %37 = arith.truncf %36 : vector<16x256xf32> to vector<16x256xbf16>
    %c0_29 = arith.constant 0 : index
    %c0_30 = arith.constant 0 : index
    %c0_31 = arith.constant 0 : index
    %38 = vector.load %arg6[%c0_29, %c0_30, %c0_31] : memref<3x8x16xbf16, #tpu.memory_space<vmem>>, vector<1x8x16xbf16>
    %39 = vector.shape_cast %38 : vector<1x8x16xbf16> to vector<8x16xbf16>
    %cst_32 = arith.constant dense<0.000000e+00> : vector<8x256xf32>
    %40 = tpu.matmul %39, %37, %cst_32 {dimension_numbers = #tpu.dot_dimension_numbers<[1], [0], [0], [1], [0, 0, 1, 1], [], []>} : vector<8x16xbf16>, vector<16x256xbf16>, vector<8x256xf32> -> vector<8x256xf32>
    %41 = arith.truncf %40 : vector<8x256xf32> to vector<8x256xbf16>
    %c0_33 = arith.constant 0 : index
    %c0_34 = arith.constant 0 : index
    %c0_35 = arith.constant 0 : index
    %42 = vector.load %arg7[%c0_33, %c0_34, %c0_35] : memref<3x256x256xbf16, #tpu.memory_space<vmem>>, vector<1x256x256xbf16>
    %43 = vector.shape_cast %42 : vector<1x256x256xbf16> to vector<256x256xbf16>
    %cst_36 = arith.constant dense<0.000000e+00> : vector<8x256xf32>
    %44 = tpu.matmul %41, %43, %cst_36 {dimension_numbers = #tpu.dot_dimension_numbers<[1], [0], [0], [1], [0, 0, 1, 1], [], []>} : vector<8x256xbf16>, vector<256x256xbf16>, vector<8x256xf32> -> vector<8x256xf32>
    %c1_37 = arith.constant 1 : index
    %c0_38 = arith.constant 0 : index
    %c0_39 = arith.constant 0 : index
    %45 = vector.load %arg6[%c1_37, %c0_38, %c0_39] : memref<3x8x16xbf16, #tpu.memory_space<vmem>>, vector<1x8x16xbf16>
    %46 = vector.shape_cast %45 : vector<1x8x16xbf16> to vector<8x16xbf16>
    %cst_40 = arith.constant dense<0.000000e+00> : vector<8x256xf32>
    %47 = tpu.matmul %46, %37, %cst_40 {dimension_numbers = #tpu.dot_dimension_numbers<[1], [0], [0], [1], [0, 0, 1, 1], [], []>} : vector<8x16xbf16>, vector<16x256xbf16>, vector<8x256xf32> -> vector<8x256xf32>
    %48 = arith.truncf %47 : vector<8x256xf32> to vector<8x256xbf16>
    %c1_41 = arith.constant 1 : index
    %c0_42 = arith.constant 0 : index
    %c0_43 = arith.constant 0 : index
    %49 = vector.load %arg7[%c1_41, %c0_42, %c0_43] : memref<3x256x256xbf16, #tpu.memory_space<vmem>>, vector<1x256x256xbf16>
    %50 = vector.shape_cast %49 : vector<1x256x256xbf16> to vector<256x256xbf16>
    %cst_44 = arith.constant dense<0.000000e+00> : vector<8x256xf32>
    %51 = tpu.matmul %48, %50, %cst_44 {dimension_numbers = #tpu.dot_dimension_numbers<[1], [0], [0], [1], [0, 0, 1, 1], [], []>} : vector<8x256xbf16>, vector<256x256xbf16>, vector<8x256xf32> -> vector<8x256xf32>
    %52 = arith.addf %44, %51 : vector<8x256xf32>
    %c2_45 = arith.constant 2 : index
    %c0_46 = arith.constant 0 : index
    %c0_47 = arith.constant 0 : index
    %53 = vector.load %arg6[%c2_45, %c0_46, %c0_47] : memref<3x8x16xbf16, #tpu.memory_space<vmem>>, vector<1x8x16xbf16>
    %54 = vector.shape_cast %53 : vector<1x8x16xbf16> to vector<8x16xbf16>
    %cst_48 = arith.constant dense<0.000000e+00> : vector<8x256xf32>
    %55 = tpu.matmul %54, %37, %cst_48 {dimension_numbers = #tpu.dot_dimension_numbers<[1], [0], [0], [1], [0, 0, 1, 1], [], []>} : vector<8x16xbf16>, vector<16x256xbf16>, vector<8x256xf32> -> vector<8x256xf32>
    %56 = arith.truncf %55 : vector<8x256xf32> to vector<8x256xbf16>
    %c2_49 = arith.constant 2 : index
    %c0_50 = arith.constant 0 : index
    %c0_51 = arith.constant 0 : index
    %57 = vector.load %arg7[%c2_49, %c0_50, %c0_51] : memref<3x256x256xbf16, #tpu.memory_space<vmem>>, vector<1x256x256xbf16>
    %58 = vector.shape_cast %57 : vector<1x256x256xbf16> to vector<256x256xbf16>
    %cst_52 = arith.constant dense<0.000000e+00> : vector<8x256xf32>
    %59 = tpu.matmul %56, %58, %cst_52 {dimension_numbers = #tpu.dot_dimension_numbers<[1], [0], [0], [1], [0, 0, 1, 1], [], []>} : vector<8x256xbf16>, vector<256x256xbf16>, vector<8x256xf32> -> vector<8x256xf32>
    %60 = arith.addf %52, %59 : vector<8x256xf32>
    %c0_53 = arith.constant 0 : index
    %c0_54 = arith.constant 0 : index
    %61 = vector.load %arg8[%c0_53, %c0_54] : memref<1x256xf32, #tpu.memory_space<vmem>>, vector<1x256xf32>
    %62 = vector.broadcast %61 : vector<1x256xf32> to vector<8x256xf32>
    %63 = arith.addf %60, %62 : vector<8x256xf32>
    %cst_55 = arith.constant 0.000000e+00 : f32
    %64 = vector.broadcast %cst_55 : f32 to vector<8x256xf32>
    %65 = arith.cmpf ogt, %63, %64 : vector<8x256xf32>
    %cst_56 = arith.constant 2.000000e-01 : f32
    %66 = vector.broadcast %cst_56 : f32 to vector<8x256xf32>
    %67 = arith.mulf %66, %63 : vector<8x256xf32>
    %68 = arith.select %65, %63, %67 : vector<8x256xi1>, vector<8x256xf32>
    %c0_57 = arith.constant 0 : index
    %c0_58 = arith.constant 0 : index
    %69 = vector.load %arg9[%c0_57, %c0_58] : memref<1x256xf32, #tpu.memory_space<vmem>>, vector<1x256xf32>
    %70 = vector.broadcast %69 : vector<1x256xf32> to vector<8x256xf32>
    %71 = arith.addf %68, %70 : vector<8x256xf32>
    %72 = arith.truncf %71 : vector<8x256xf32> to vector<8x256xbf16>
    %c0_59 = arith.constant 0 : index
    %c0_60 = arith.constant 0 : index
    %c0_61 = arith.constant 0 : index
    %73 = vector.load %arg10[%c0_59, %c0_60, %c0_61] : memref<3x4x8xbf16, #tpu.memory_space<vmem>>, vector<1x4x8xbf16>
    %74 = vector.shape_cast %73 : vector<1x4x8xbf16> to vector<4x8xbf16>
    %cst_62 = arith.constant dense<0.000000e+00> : vector<4x256xf32>
    %75 = tpu.matmul %74, %72, %cst_62 {dimension_numbers = #tpu.dot_dimension_numbers<[1], [0], [0], [1], [0, 0, 1, 1], [], []>} : vector<4x8xbf16>, vector<8x256xbf16>, vector<4x256xf32> -> vector<4x256xf32>
    %76 = arith.truncf %75 : vector<4x256xf32> to vector<4x256xbf16>
    %c0_63 = arith.constant 0 : index
    %c0_64 = arith.constant 0 : index
    %c0_65 = arith.constant 0 : index
    %77 = vector.load %arg11[%c0_63, %c0_64, %c0_65] : memref<3x256x256xbf16, #tpu.memory_space<vmem>>, vector<1x256x256xbf16>
    %78 = vector.shape_cast %77 : vector<1x256x256xbf16> to vector<256x256xbf16>
    %cst_66 = arith.constant dense<0.000000e+00> : vector<4x256xf32>
    %79 = tpu.matmul %76, %78, %cst_66 {dimension_numbers = #tpu.dot_dimension_numbers<[1], [0], [0], [1], [0, 0, 1, 1], [], []>} : vector<4x256xbf16>, vector<256x256xbf16>, vector<4x256xf32> -> vector<4x256xf32>
    %c1_67 = arith.constant 1 : index
    %c0_68 = arith.constant 0 : index
    %c0_69 = arith.constant 0 : index
    %80 = vector.load %arg10[%c1_67, %c0_68, %c0_69] : memref<3x4x8xbf16, #tpu.memory_space<vmem>>, vector<1x4x8xbf16>
    %81 = vector.shape_cast %80 : vector<1x4x8xbf16> to vector<4x8xbf16>
    %cst_70 = arith.constant dense<0.000000e+00> : vector<4x256xf32>
    %82 = tpu.matmul %81, %72, %cst_70 {dimension_numbers = #tpu.dot_dimension_numbers<[1], [0], [0], [1], [0, 0, 1, 1], [], []>} : vector<4x8xbf16>, vector<8x256xbf16>, vector<4x256xf32> -> vector<4x256xf32>
    %83 = arith.truncf %82 : vector<4x256xf32> to vector<4x256xbf16>
    %c1_71 = arith.constant 1 : index
    %c0_72 = arith.constant 0 : index
    %c0_73 = arith.constant 0 : index
    %84 = vector.load %arg11[%c1_71, %c0_72, %c0_73] : memref<3x256x256xbf16, #tpu.memory_space<vmem>>, vector<1x256x256xbf16>
    %85 = vector.shape_cast %84 : vector<1x256x256xbf16> to vector<256x256xbf16>
    %cst_74 = arith.constant dense<0.000000e+00> : vector<4x256xf32>
    %86 = tpu.matmul %83, %85, %cst_74 {dimension_numbers = #tpu.dot_dimension_numbers<[1], [0], [0], [1], [0, 0, 1, 1], [], []>} : vector<4x256xbf16>, vector<256x256xbf16>, vector<4x256xf32> -> vector<4x256xf32>
    %87 = arith.addf %79, %86 : vector<4x256xf32>
    %c2_75 = arith.constant 2 : index
    %c0_76 = arith.constant 0 : index
    %c0_77 = arith.constant 0 : index
    %88 = vector.load %arg10[%c2_75, %c0_76, %c0_77] : memref<3x4x8xbf16, #tpu.memory_space<vmem>>, vector<1x4x8xbf16>
    %89 = vector.shape_cast %88 : vector<1x4x8xbf16> to vector<4x8xbf16>
    %cst_78 = arith.constant dense<0.000000e+00> : vector<4x256xf32>
    %90 = tpu.matmul %89, %72, %cst_78 {dimension_numbers = #tpu.dot_dimension_numbers<[1], [0], [0], [1], [0, 0, 1, 1], [], []>} : vector<4x8xbf16>, vector<8x256xbf16>, vector<4x256xf32> -> vector<4x256xf32>
    %91 = arith.truncf %90 : vector<4x256xf32> to vector<4x256xbf16>
    %c2_79 = arith.constant 2 : index
    %c0_80 = arith.constant 0 : index
    %c0_81 = arith.constant 0 : index
    %92 = vector.load %arg11[%c2_79, %c0_80, %c0_81] : memref<3x256x256xbf16, #tpu.memory_space<vmem>>, vector<1x256x256xbf16>
    %93 = vector.shape_cast %92 : vector<1x256x256xbf16> to vector<256x256xbf16>
    %cst_82 = arith.constant dense<0.000000e+00> : vector<4x256xf32>
    %94 = tpu.matmul %91, %93, %cst_82 {dimension_numbers = #tpu.dot_dimension_numbers<[1], [0], [0], [1], [0, 0, 1, 1], [], []>} : vector<4x256xbf16>, vector<256x256xbf16>, vector<4x256xf32> -> vector<4x256xf32>
    %95 = arith.addf %87, %94 : vector<4x256xf32>
    %c0_83 = arith.constant 0 : index
    %c0_84 = arith.constant 0 : index
    %96 = vector.load %arg12[%c0_83, %c0_84] : memref<1x256xf32, #tpu.memory_space<vmem>>, vector<1x256xf32>
    %97 = vector.broadcast %96 : vector<1x256xf32> to vector<4x256xf32>
    %98 = arith.addf %95, %97 : vector<4x256xf32>
    %cst_85 = arith.constant 0.000000e+00 : f32
    %99 = vector.broadcast %cst_85 : f32 to vector<4x256xf32>
    %100 = arith.cmpf ogt, %98, %99 : vector<4x256xf32>
    %cst_86 = arith.constant 2.000000e-01 : f32
    %101 = vector.broadcast %cst_86 : f32 to vector<4x256xf32>
    %102 = arith.mulf %101, %98 : vector<4x256xf32>
    %103 = arith.select %100, %98, %102 : vector<4x256xi1>, vector<4x256xf32>
    %c0_87 = arith.constant 0 : index
    %c0_88 = arith.constant 0 : index
    %104 = vector.load %arg13[%c0_87, %c0_88] : memref<1x256xf32, #tpu.memory_space<vmem>>, vector<1x256xf32>
    %105 = vector.broadcast %104 : vector<1x256xf32> to vector<4x256xf32>
    %106 = arith.addf %103, %105 : vector<4x256xf32>
    %107 = arith.truncf %106 : vector<4x256xf32> to vector<4x256xbf16>
    %c0_89 = arith.constant 0 : index
    %c0_90 = arith.constant 0 : index
    %c0_91 = arith.constant 0 : index
    %108 = vector.load %arg14[%c0_89, %c0_90, %c0_91] : memref<3x2x4xbf16, #tpu.memory_space<vmem>>, vector<1x2x4xbf16>
    %109 = vector.shape_cast %108 : vector<1x2x4xbf16> to vector<2x4xbf16>
    %cst_92 = arith.constant dense<0.000000e+00> : vector<2x256xf32>
    %110 = tpu.matmul %109, %107, %cst_92 {dimension_numbers = #tpu.dot_dimension_numbers<[1], [0], [0], [1], [0, 0, 1, 1], [], []>} : vector<2x4xbf16>, vector<4x256xbf16>, vector<2x256xf32> -> vector<2x256xf32>
    %111 = arith.truncf %110 : vector<2x256xf32> to vector<2x256xbf16>
    %c0_93 = arith.constant 0 : index
    %c0_94 = arith.constant 0 : index
    %c0_95 = arith.constant 0 : index
    %112 = vector.load %arg15[%c0_93, %c0_94, %c0_95] : memref<3x256x256xbf16, #tpu.memory_space<vmem>>, vector<1x256x256xbf16>
    %113 = vector.shape_cast %112 : vector<1x256x256xbf16> to vector<256x256xbf16>
    %cst_96 = arith.constant dense<0.000000e+00> : vector<2x256xf32>
    %114 = tpu.matmul %111, %113, %cst_96 {dimension_numbers = #tpu.dot_dimension_numbers<[1], [0], [0], [1], [0, 0, 1, 1], [], []>} : vector<2x256xbf16>, vector<256x256xbf16>, vector<2x256xf32> -> vector<2x256xf32>
    %c1_97 = arith.constant 1 : index
    %c0_98 = arith.constant 0 : index
    %c0_99 = arith.constant 0 : index
    %115 = vector.load %arg14[%c1_97, %c0_98, %c0_99] : memref<3x2x4xbf16, #tpu.memory_space<vmem>>, vector<1x2x4xbf16>
    %116 = vector.shape_cast %115 : vector<1x2x4xbf16> to vector<2x4xbf16>
    %cst_100 = arith.constant dense<0.000000e+00> : vector<2x256xf32>
    %117 = tpu.matmul %116, %107, %cst_100 {dimension_numbers = #tpu.dot_dimension_numbers<[1], [0], [0], [1], [0, 0, 1, 1], [], []>} : vector<2x4xbf16>, vector<4x256xbf16>, vector<2x256xf32> -> vector<2x256xf32>
    %118 = arith.truncf %117 : vector<2x256xf32> to vector<2x256xbf16>
    %c1_101 = arith.constant 1 : index
    %c0_102 = arith.constant 0 : index
    %c0_103 = arith.constant 0 : index
    %119 = vector.load %arg15[%c1_101, %c0_102, %c0_103] : memref<3x256x256xbf16, #tpu.memory_space<vmem>>, vector<1x256x256xbf16>
    %120 = vector.shape_cast %119 : vector<1x256x256xbf16> to vector<256x256xbf16>
    %cst_104 = arith.constant dense<0.000000e+00> : vector<2x256xf32>
    %121 = tpu.matmul %118, %120, %cst_104 {dimension_numbers = #tpu.dot_dimension_numbers<[1], [0], [0], [1], [0, 0, 1, 1], [], []>} : vector<2x256xbf16>, vector<256x256xbf16>, vector<2x256xf32> -> vector<2x256xf32>
    %122 = arith.addf %114, %121 : vector<2x256xf32>
    %c2_105 = arith.constant 2 : index
    %c0_106 = arith.constant 0 : index
    %c0_107 = arith.constant 0 : index
    %123 = vector.load %arg14[%c2_105, %c0_106, %c0_107] : memref<3x2x4xbf16, #tpu.memory_space<vmem>>, vector<1x2x4xbf16>
    %124 = vector.shape_cast %123 : vector<1x2x4xbf16> to vector<2x4xbf16>
    %cst_108 = arith.constant dense<0.000000e+00> : vector<2x256xf32>
    %125 = tpu.matmul %124, %107, %cst_108 {dimension_numbers = #tpu.dot_dimension_numbers<[1], [0], [0], [1], [0, 0, 1, 1], [], []>} : vector<2x4xbf16>, vector<4x256xbf16>, vector<2x256xf32> -> vector<2x256xf32>
    %126 = arith.truncf %125 : vector<2x256xf32> to vector<2x256xbf16>
    %c2_109 = arith.constant 2 : index
    %c0_110 = arith.constant 0 : index
    %c0_111 = arith.constant 0 : index
    %127 = vector.load %arg15[%c2_109, %c0_110, %c0_111] : memref<3x256x256xbf16, #tpu.memory_space<vmem>>, vector<1x256x256xbf16>
    %128 = vector.shape_cast %127 : vector<1x256x256xbf16> to vector<256x256xbf16>
    %cst_112 = arith.constant dense<0.000000e+00> : vector<2x256xf32>
    %129 = tpu.matmul %126, %128, %cst_112 {dimension_numbers = #tpu.dot_dimension_numbers<[1], [0], [0], [1], [0, 0, 1, 1], [], []>} : vector<2x256xbf16>, vector<256x256xbf16>, vector<2x256xf32> -> vector<2x256xf32>
    %130 = arith.addf %122, %129 : vector<2x256xf32>
    %c0_113 = arith.constant 0 : index
    %c0_114 = arith.constant 0 : index
    %131 = vector.load %arg16[%c0_113, %c0_114] : memref<1x256xf32, #tpu.memory_space<vmem>>, vector<1x256xf32>
    %132 = vector.broadcast %131 : vector<1x256xf32> to vector<2x256xf32>
    %133 = arith.addf %130, %132 : vector<2x256xf32>
    %cst_115 = arith.constant 0.000000e+00 : f32
    %134 = vector.broadcast %cst_115 : f32 to vector<2x256xf32>
    %135 = arith.cmpf ogt, %133, %134 : vector<2x256xf32>
    %cst_116 = arith.constant 2.000000e-01 : f32
    %136 = vector.broadcast %cst_116 : f32 to vector<2x256xf32>
    %137 = arith.mulf %136, %133 : vector<2x256xf32>
    %138 = arith.select %135, %133, %137 : vector<2x256xi1>, vector<2x256xf32>
    %c0_117 = arith.constant 0 : index
    %c0_118 = arith.constant 0 : index
    %139 = vector.load %arg17[%c0_117, %c0_118] : memref<1x256xf32, #tpu.memory_space<vmem>>, vector<1x256xf32>
    %140 = vector.broadcast %139 : vector<1x256xf32> to vector<2x256xf32>
    %141 = arith.addf %138, %140 : vector<2x256xf32>
    %142 = arith.truncf %141 : vector<2x256xf32> to vector<2x256xbf16>
    %c0_119 = arith.constant 0 : index
    %c0_120 = arith.constant 0 : index
    %c0_121 = arith.constant 0 : index
    %143 = vector.load %arg18[%c0_119, %c0_120, %c0_121] : memref<3x1x2xbf16, #tpu.memory_space<vmem>>, vector<1x1x2xbf16>
    %144 = vector.shape_cast %143 : vector<1x1x2xbf16> to vector<1x2xbf16>
    %cst_122 = arith.constant dense<0.000000e+00> : vector<1x256xf32>
    %145 = tpu.matmul %144, %142, %cst_122 {dimension_numbers = #tpu.dot_dimension_numbers<[1], [0], [0], [1], [0, 0, 1, 1], [], []>} : vector<1x2xbf16>, vector<2x256xbf16>, vector<1x256xf32> -> vector<1x256xf32>
    %146 = arith.truncf %145 : vector<1x256xf32> to vector<1x256xbf16>
    %c0_123 = arith.constant 0 : index
    %c0_124 = arith.constant 0 : index
    %c0_125 = arith.constant 0 : index
    %147 = vector.load %arg19[%c0_123, %c0_124, %c0_125] : memref<3x256x256xbf16, #tpu.memory_space<vmem>>, vector<1x256x256xbf16>
    %148 = vector.shape_cast %147 : vector<1x256x256xbf16> to vector<256x256xbf16>
    %cst_126 = arith.constant dense<0.000000e+00> : vector<1x256xf32>
    %149 = tpu.matmul %146, %148, %cst_126 {dimension_numbers = #tpu.dot_dimension_numbers<[1], [0], [0], [1], [0, 0, 1, 1], [], []>} : vector<1x256xbf16>, vector<256x256xbf16>, vector<1x256xf32> -> vector<1x256xf32>
    %c1_127 = arith.constant 1 : index
    %c0_128 = arith.constant 0 : index
    %c0_129 = arith.constant 0 : index
    %150 = vector.load %arg18[%c1_127, %c0_128, %c0_129] : memref<3x1x2xbf16, #tpu.memory_space<vmem>>, vector<1x1x2xbf16>
    %151 = vector.shape_cast %150 : vector<1x1x2xbf16> to vector<1x2xbf16>
    %cst_130 = arith.constant dense<0.000000e+00> : vector<1x256xf32>
    %152 = tpu.matmul %151, %142, %cst_130 {dimension_numbers = #tpu.dot_dimension_numbers<[1], [0], [0], [1], [0, 0, 1, 1], [], []>} : vector<1x2xbf16>, vector<2x256xbf16>, vector<1x256xf32> -> vector<1x256xf32>
    %153 = arith.truncf %152 : vector<1x256xf32> to vector<1x256xbf16>
    %c1_131 = arith.constant 1 : index
    %c0_132 = arith.constant 0 : index
    %c0_133 = arith.constant 0 : index
    %154 = vector.load %arg19[%c1_131, %c0_132, %c0_133] : memref<3x256x256xbf16, #tpu.memory_space<vmem>>, vector<1x256x256xbf16>
    %155 = vector.shape_cast %154 : vector<1x256x256xbf16> to vector<256x256xbf16>
    %cst_134 = arith.constant dense<0.000000e+00> : vector<1x256xf32>
    %156 = tpu.matmul %153, %155, %cst_134 {dimension_numbers = #tpu.dot_dimension_numbers<[1], [0], [0], [1], [0, 0, 1, 1], [], []>} : vector<1x256xbf16>, vector<256x256xbf16>, vector<1x256xf32> -> vector<1x256xf32>
    %157 = arith.addf %149, %156 : vector<1x256xf32>
    %c2_135 = arith.constant 2 : index
    %c0_136 = arith.constant 0 : index
    %c0_137 = arith.constant 0 : index
    %158 = vector.load %arg18[%c2_135, %c0_136, %c0_137] : memref<3x1x2xbf16, #tpu.memory_space<vmem>>, vector<1x1x2xbf16>
    %159 = vector.shape_cast %158 : vector<1x1x2xbf16> to vector<1x2xbf16>
    %cst_138 = arith.constant dense<0.000000e+00> : vector<1x256xf32>
    %160 = tpu.matmul %159, %142, %cst_138 {dimension_numbers = #tpu.dot_dimension_numbers<[1], [0], [0], [1], [0, 0, 1, 1], [], []>} : vector<1x2xbf16>, vector<2x256xbf16>, vector<1x256xf32> -> vector<1x256xf32>
    %161 = arith.truncf %160 : vector<1x256xf32> to vector<1x256xbf16>
    %c2_139 = arith.constant 2 : index
    %c0_140 = arith.constant 0 : index
    %c0_141 = arith.constant 0 : index
    %162 = vector.load %arg19[%c2_139, %c0_140, %c0_141] : memref<3x256x256xbf16, #tpu.memory_space<vmem>>, vector<1x256x256xbf16>
    %163 = vector.shape_cast %162 : vector<1x256x256xbf16> to vector<256x256xbf16>
    %cst_142 = arith.constant dense<0.000000e+00> : vector<1x256xf32>
    %164 = tpu.matmul %161, %163, %cst_142 {dimension_numbers = #tpu.dot_dimension_numbers<[1], [0], [0], [1], [0, 0, 1, 1], [], []>} : vector<1x256xbf16>, vector<256x256xbf16>, vector<1x256xf32> -> vector<1x256xf32>
    %165 = arith.addf %157, %164 : vector<1x256xf32>
    %c0_143 = arith.constant 0 : index
    %c0_144 = arith.constant 0 : index
    %166 = vector.load %arg20[%c0_143, %c0_144] : memref<1x256xf32, #tpu.memory_space<vmem>>, vector<1x256xf32>
    %167 = arith.addf %165, %166 : vector<1x256xf32>
    %cst_145 = arith.constant 0.000000e+00 : f32
    %168 = vector.broadcast %cst_145 : f32 to vector<1x256xf32>
    %169 = arith.cmpf ogt, %167, %168 : vector<1x256xf32>
    %cst_146 = arith.constant 2.000000e-01 : f32
    %170 = vector.broadcast %cst_146 : f32 to vector<1x256xf32>
    %171 = arith.mulf %170, %167 : vector<1x256xf32>
    %172 = arith.select %169, %167, %171 : vector<1x256xi1>, vector<1x256xf32>
    %c0_147 = arith.constant 0 : index
    %c0_148 = arith.constant 0 : index
    %173 = vector.load %arg21[%c0_147, %c0_148] : memref<1x256xf32, #tpu.memory_space<vmem>>, vector<1x256xf32>
    %174 = arith.addf %172, %173 : vector<1x256xf32>
    %175 = arith.truncf %174 : vector<1x256xf32> to vector<1x256xbf16>
    %c0_149 = arith.constant 0 : index
    %c0_150 = arith.constant 0 : index
    %c0_151 = arith.constant 0 : index
    %176 = vector.load %arg22[%c0_149, %c0_150, %c0_151] : memref<1x256x384xbf16, #tpu.memory_space<vmem>>, vector<1x256x384xbf16>
    %177 = vector.shape_cast %176 : vector<1x256x384xbf16> to vector<256x384xbf16>
    %cst_152 = arith.constant dense<0.000000e+00> : vector<1x384xf32>
    %178 = tpu.matmul %175, %177, %cst_152 {dimension_numbers = #tpu.dot_dimension_numbers<[1], [0], [0], [1], [0, 0, 1, 1], [], []>} : vector<1x256xbf16>, vector<256x384xbf16>, vector<1x384xf32> -> vector<1x384xf32>
    %c0_153 = arith.constant 0 : index
    %c0_154 = arith.constant 0 : index
    %179 = vector.load %arg23[%c0_153, %c0_154] : memref<1x384xf32, #tpu.memory_space<vmem>>, vector<1x384xf32>
    %180 = arith.addf %178, %179 : vector<1x384xf32>
    %cst_155 = arith.constant 0.000000e+00 : f32
    %181 = vector.broadcast %cst_155 : f32 to vector<1x384xf32>
    %182 = arith.maximumf %180, %181 : vector<1x384xf32>
    %183 = arith.truncf %182 : vector<1x384xf32> to vector<1x384xbf16>
    %c0_156 = arith.constant 0 : index
    %c0_157 = arith.constant 0 : index
    %184 = vector.load %arg24[%c0_156, %c0_157] : memref<384x2xbf16, #tpu.memory_space<vmem>>, vector<384x2xbf16>
    %cst_158 = arith.constant dense<0.000000e+00> : vector<1x2xf32>
    %185 = tpu.matmul %183, %184, %cst_158 {dimension_numbers = #tpu.dot_dimension_numbers<[1], [0], [0], [1], [0, 0, 1, 1], [], []>} : vector<1x384xbf16>, vector<384x2xbf16>, vector<1x2xf32> -> vector<1x2xf32>
    %c0_159 = arith.constant 0 : index
    %c0_160 = arith.constant 0 : index
    %186 = vector.load %arg25[%c0_159, %c0_160] : memref<1x2xf32, #tpu.memory_space<vmem>>, vector<1x2xf32>
    %187 = arith.addf %185, %186 : vector<1x2xf32>
    %cst_161 = arith.constant dense<0xFF800000> : vector<1xf32>
    %188 = vector.multi_reduction <maximumf>, %187, %cst_161 [1] : vector<1x2xf32> to vector<1xf32>
    %189 = vector.shape_cast %188 : vector<1xf32> to vector<1x1xf32>
    %190 = vector.broadcast %189 : vector<1x1xf32> to vector<1x2xf32>
    %191 = arith.subf %187, %190 : vector<1x2xf32>
    %192 = math.exp %191 : vector<1x2xf32>
    %cst_162 = arith.constant dense<0.000000e+00> : vector<1xf32>
    %193 = vector.multi_reduction <add>, %192, %cst_162 [1] : vector<1x2xf32> to vector<1xf32>
    %194 = vector.shape_cast %193 : vector<1xf32> to vector<1x1xf32>
    %195 = vector.broadcast %194 : vector<1x1xf32> to vector<1x2xf32>
    %196 = arith.divf %192, %195 : vector<1x2xf32>
    %c0_163 = arith.constant 0 : index
    %c0_164 = arith.constant 0 : index
    %c0_165 = arith.constant 0 : index
    %197 = vector.load %arg26[%c0_163, %c0_164, %c0_165] : memref<1x1x2xf32, #tpu.memory_space<vmem>>, vector<1x1x2xf32>
    %198 = vector.shape_cast %197 : vector<1x1x2xf32> to vector<1x2xf32>
    %199 = vector.shape_cast %196 : vector<1x2xf32> to vector<1x1x2xf32>
    tpu.vector_store %arg26[%c0_163, %c0_164, %c0_165], %199 {strides = array<i32>} : memref<1x1x2xf32, #tpu.memory_space<vmem>>, vector<1x1x2xf32>,
    return
  }
  func.func @transform_0(%arg0: i32) -> (i32, i32, i32) {
    %c0_i32 = arith.constant 0 : i32
    %c0_i32_0 = arith.constant 0 : i32
    %c0_i32_1 = arith.constant 0 : i32
    return %arg0, %c0_i32, %c0_i32_0 : i32, i32, i32
  }
  func.func @transform_1(%arg0: i32) -> (i32, i32, i32) {
    %c0_i32 = arith.constant 0 : i32
    %c0_i32_0 = arith.constant 0 : i32
    %c0_i32_1 = arith.constant 0 : i32
    %c0_i32_2 = arith.constant 0 : i32
    return %c0_i32, %c0_i32_0, %c0_i32_1 : i32, i32, i32
  }
  func.func @transform_2(%arg0: i32) -> (i32, i32, i32) {
    %c0_i32 = arith.constant 0 : i32
    %c0_i32_0 = arith.constant 0 : i32
    %c0_i32_1 = arith.constant 0 : i32
    %c0_i32_2 = arith.constant 0 : i32
    return %c0_i32, %c0_i32_0, %c0_i32_1 : i32, i32, i32
  }
  func.func @transform_3(%arg0: i32) -> (i32, i32) {
    %c0_i32 = arith.constant 0 : i32
    %c0_i32_0 = arith.constant 0 : i32
    %c0_i32_1 = arith.constant 0 : i32
    return %c0_i32, %c0_i32_0 : i32, i32
  }
  func.func @transform_4(%arg0: i32) -> (i32, i32) {
    %c0_i32 = arith.constant 0 : i32
    %c0_i32_0 = arith.constant 0 : i32
    %c0_i32_1 = arith.constant 0 : i32
    return %c0_i32, %c0_i32_0 : i32, i32
  }
  func.func @transform_5(%arg0: i32) -> (i32, i32, i32) {
    %c0_i32 = arith.constant 0 : i32
    %c0_i32_0 = arith.constant 0 : i32
    %c0_i32_1 = arith.constant 0 : i32
    %c0_i32_2 = arith.constant 0 : i32
    return %c0_i32, %c0_i32_0, %c0_i32_1 : i32, i32, i32
  }
  func.func @transform_6(%arg0: i32) -> (i32, i32, i32) {
    %c0_i32 = arith.constant 0 : i32
    %c0_i32_0 = arith.constant 0 : i32
    %c0_i32_1 = arith.constant 0 : i32
    %c0_i32_2 = arith.constant 0 : i32
    return %c0_i32, %c0_i32_0, %c0_i32_1 : i32, i32, i32
  }
  func.func @transform_7(%arg0: i32) -> (i32, i32) {
    %c0_i32 = arith.constant 0 : i32
    %c0_i32_0 = arith.constant 0 : i32
    %c0_i32_1 = arith.constant 0 : i32
    return %c0_i32, %c0_i32_0 : i32, i32
  }
  func.func @transform_8(%arg0: i32) -> (i32, i32) {
    %c0_i32 = arith.constant 0 : i32
    %c0_i32_0 = arith.constant 0 : i32
    %c0_i32_1 = arith.constant 0 : i32
    return %c0_i32, %c0_i32_0 : i32, i32
  }
  func.func @transform_9(%arg0: i32) -> (i32, i32, i32) {
    %c0_i32 = arith.constant 0 : i32
    %c0_i32_0 = arith.constant 0 : i32
    %c0_i32_1 = arith.constant 0 : i32
    %c0_i32_2 = arith.constant 0 : i32
    return %c0_i32, %c0_i32_0, %c0_i32_1 : i32, i32, i32
  }
  func.func @transform_10(%arg0: i32) -> (i32, i32, i32) {
    %c0_i32 = arith.constant 0 : i32
    %c0_i32_0 = arith.constant 0 : i32
    %c0_i32_1 = arith.constant 0 : i32
    %c0_i32_2 = arith.constant 0 : i32
    return %c0_i32, %c0_i32_0, %c0_i32_1 : i32, i32, i32
  }
  func.func @transform_11(%arg0: i32) -> (i32, i32) {
    %c0_i32 = arith.constant 0 : i32
    %c0_i32_0 = arith.constant 0 : i32
    %c0_i32_1 = arith.constant 0 : i32
    return %c0_i32, %c0_i32_0 : i32, i32
  }
  func.func @transform_12(%arg0: i32) -> (i32, i32) {
    %c0_i32 = arith.constant 0 : i32
    %c0_i32_0 = arith.constant 0 : i32
    %c0_i32_1 = arith.constant 0 : i32
    return %c0_i32, %c0_i32_0 : i32, i32
  }
  func.func @transform_13(%arg0: i32) -> (i32, i32, i32) {
    %c0_i32 = arith.constant 0 : i32
    %c0_i32_0 = arith.constant 0 : i32
    %c0_i32_1 = arith.constant 0 : i32
    %c0_i32_2 = arith.constant 0 : i32
    return %c0_i32, %c0_i32_0, %c0_i32_1 : i32, i32, i32
  }
  func.func @transform_14(%arg0: i32) -> (i32, i32, i32) {
    %c0_i32 = arith.constant 0 : i32
    %c0_i32_0 = arith.constant 0 : i32
    %c0_i32_1 = arith.constant 0 : i32
    %c0_i32_2 = arith.constant 0 : i32
    return %c0_i32, %c0_i32_0, %c0_i32_1 : i32, i32, i32
  }
  func.func @transform_15(%arg0: i32) -> (i32, i32) {
    %c0_i32 = arith.constant 0 : i32
    %c0_i32_0 = arith.constant 0 : i32
    %c0_i32_1 = arith.constant 0 : i32
    return %c0_i32, %c0_i32_0 : i32, i32
  }
  func.func @transform_16(%arg0: i32) -> (i32, i32) {
    %c0_i32 = arith.constant 0 : i32
    %c0_i32_0 = arith.constant 0 : i32
    %c0_i32_1 = arith.constant 0 : i32
    return %c0_i32, %c0_i32_0 : i32, i32
  }
  func.func @transform_17(%arg0: i32) -> (i32, i32, i32) {
    %c0_i32 = arith.constant 0 : i32
    %c0_i32_0 = arith.constant 0 : i32
    %c0_i32_1 = arith.constant 0 : i32
    %c0_i32_2 = arith.constant 0 : i32
    return %c0_i32, %c0_i32_0, %c0_i32_1 : i32, i32, i32
  }
  func.func @transform_18(%arg0: i32) -> (i32, i32, i32) {
    %c0_i32 = arith.constant 0 : i32
    %c0_i32_0 = arith.constant 0 : i32
    %c0_i32_1 = arith.constant 0 : i32
    %c0_i32_2 = arith.constant 0 : i32
    return %c0_i32, %c0_i32_0, %c0_i32_1 : i32, i32, i32
  }
  func.func @transform_19(%arg0: i32) -> (i32, i32) {
    %c0_i32 = arith.constant 0 : i32
    %c0_i32_0 = arith.constant 0 : i32
    %c0_i32_1 = arith.constant 0 : i32
    return %c0_i32, %c0_i32_0 : i32, i32
  }
  func.func @transform_20(%arg0: i32) -> (i32, i32) {
    %c0_i32 = arith.constant 0 : i32
    %c0_i32_0 = arith.constant 0 : i32
    %c0_i32_1 = arith.constant 0 : i32
    return %c0_i32, %c0_i32_0 : i32, i32
  }
  func.func @transform_21(%arg0: i32) -> (i32, i32, i32) {
    %c0_i32 = arith.constant 0 : i32
    %c0_i32_0 = arith.constant 0 : i32
    %c0_i32_1 = arith.constant 0 : i32
    %c0_i32_2 = arith.constant 0 : i32
    return %c0_i32, %c0_i32_0, %c0_i32_1 : i32, i32, i32
  }
  func.func @transform_22(%arg0: i32) -> (i32, i32) {
    %c0_i32 = arith.constant 0 : i32
    %c0_i32_0 = arith.constant 0 : i32
    %c0_i32_1 = arith.constant 0 : i32
    return %c0_i32, %c0_i32_0 : i32, i32
  }
  func.func @transform_23(%arg0: i32) -> (i32, i32) {
    %c0_i32 = arith.constant 0 : i32
    %c0_i32_0 = arith.constant 0 : i32
    %c0_i32_1 = arith.constant 0 : i32
    return %c0_i32, %c0_i32_0 : i32, i32
  }
  func.func @transform_24(%arg0: i32) -> (i32, i32) {
    %c0_i32 = arith.constant 0 : i32
    %c0_i32_0 = arith.constant 0 : i32
    %c0_i32_1 = arith.constant 0 : i32
    return %c0_i32, %c0_i32_0 : i32, i32
  }
  func.func @transform_25(%arg0: i32) -> (i32, i32, i32) {
    %c0_i32 = arith.constant 0 : i32
    %c0_i32_0 = arith.constant 0 : i32
    %c0_i32_1 = arith.constant 0 : i32
    return %arg0, %c0_i32, %c0_i32_0 : i32, i32, i32
  }
}

</mosaic_0001>

<bundles_post_ra>
// kernel: my_model_forward.1
= control target key start
LH: loop header
LB: loop body
LE: loop exit
PB: predicated region body
PF: predicated region fallthrough
CT: control target
= control target key end

     0   :  { %s9364_s0 = inlined_call_operand.vmem [shape: f32[2,32,96], index: 0, kind: input, shape index: {}]   ;;  %s9365_s1 = inlined_call_operand.vmem [shape: bf16[3,16,32], index: 1, kind: input, shape index: {}]   ;;  %s9366_s2 = inlined_call_operand.vmem [shape: bf16[3,96,256], index: 2, kind: input, shape index: {}]   ;;  %s9367_s3 = inlined_call_operand.vmem [shape: f32[1,256], index: 3, kind: input, shape index: {}]   ;;  %s9368_s4 = inlined_call_operand.vmem [shape: f32[1,256], index: 4, kind: input, shape index: {}]   ;;  %s9369_s5 = inlined_call_operand.vmem [shape: bf16[3,8,16], index: 5, kind: input, shape index: {}]   ;;  %s9370_s6 = inlined_call_operand.hbm [shape: bf16[3,256,256], index: 6, kind: input, shape index: {}]   ;;  %s9371_s7 = inlined_call_operand.vmem [shape: f32[1,256], index: 7, kind: input, shape index: {}]   ;;  %s9372_s8 = inlined_call_operand.vmem [shape: f32[1,256], index: 8, kind: input, shape index: {}]   ;;  %s9373_s9 = inlined_call_operand.vmem [shape: bf16[3,4,8], index: 9, kind: input, shape index: {}]   ;;  %s9374_s10 = inlined_call_operand.hbm [shape: bf16[3,256,256], index: 10, kind: input, shape index: {}]   ;;  %s9375_s11 = inlined_call_operand.vmem [shape: f32[1,256], index: 11, kind: input, shape index: {}]   ;;  %s9376_s12 = inlined_call_operand.vmem [shape: f32[1,256], index: 12, kind: input, shape index: {}]   ;;  %s9377_s13 = inlined_call_operand.vmem [shape: bf16[3,2,4], index: 13, kind: input, shape index: {}]   ;;  %s9378_s14 = inlined_call_operand.hbm [shape: bf16[3,256,256], index: 14, kind: input, shape index: {}]   ;;  %s9379_s15 = inlined_call_operand.vmem [shape: f32[1,256], index: 15, kind: input, shape index: {}]   ;;  %s9380_s16 = inlined_call_operand.vmem [shape: f32[1,256], index: 16, kind: input, shape index: {}]   ;;  %s9381_s17 = inlined_call_operand.vmem [shape: bf16[3,1,2], index: 17, kind: input, shape index: {}]   ;;  %s9382_s18 = inlined_call_operand.hbm [shape: bf16[3,256,256], index: 18, kind: input, shape index: {}]   ;;  %s9383_s19 = inlined_call_operand.vmem [shape: f32[1,256], index: 19, kind: input, shape index: {}]   ;;  %s9384_s20 = inlined_call_operand.vmem [shape: f32[1,256], index: 20, kind: input, shape index: {}]   ;;  %s9385_s21 = inlined_call_operand.vmem [shape: bf16[1,256,384], index: 21, kind: input, shape index: {}]   ;;  %s9386_s22 = inlined_call_operand.vmem [shape: f32[1,384], index: 22, kind: input, shape index: {}]   ;;  %s9387_s23 = inlined_call_operand.vmem [shape: bf16[384,2], index: 23, kind: input, shape index: {}]   ;;  %s9388_s24 = inlined_call_operand.vmem [shape: f32[1,2], index: 24, kind: input, shape index: {}]   ;;  %s9389_s25 = inlined_call_operand.hbm [shape: f32[2,1,2], index: 25, kind: output, shape index: {}]  }
   0x1   :  { %9406 = sst [smem:[#allocation23_spill]] %s9364_s0 }
   0x2   :  { %9407 = sst [smem:[#allocation24_spill]] %s9365_s1 }
   0x3   :  { %9408 = sst [smem:[#allocation25_spill]] %s9366_s2 }
   0x4   :  { %9409 = sst [smem:[#allocation26_spill]] %s9367_s3 }
   0x5   :  { %9410 = sst [smem:[#allocation27_spill]] %s9368_s4 }
   0x6   :  { %9411 = sst [smem:[#allocation28_spill]] %s9369_s5 }
   0x7   :  { %9412 = sst [smem:[#allocation29_spill]] %s9370_s6 }
   0x8   :  { %9413 = sst [smem:[#allocation30_spill]] %s9371_s7 }
   0x9   :  { %9414 = sst [smem:[#allocation31_spill]] %s9372_s8 }
   0xa   :  { %9415 = sst [smem:[#allocation32_spill]] %s9373_s9 }
   0xb   :  { %9416 = sst [smem:[#allocation33_spill]] %s9374_s10 }
   0xc   :  { %9417 = sst [smem:[#allocation34_spill]] %s9388_s24 }
   0xd   :  { %9418 = sst [smem:[#allocation35_spill]] %s9389_s25 }
   0xe   :  { %30 = vsyncpa [#allocation3], 0 }
   0xf   :  { %31 = vsyncpa [#allocation6], 0 }
  0x10   :  { %32 = vsyncpa [#allocation9], 0 }
  0x11   :  { %33 = vsyncpa [#allocation4], 0 }
  0x12   :  { %35 = vsyncpa [#allocation4 + $0x1], 0  ;;  %s8479_s29 = smov 0   ;;  %s8481_s2 = smov 0  }
  0x13   :  { %s8483_s6 = smov 0   ;;  %s8485_s30 = smov 0  }
  0x14 LB: > { %9419 = sst [smem:[#allocation15_spill]] %s8329_s29  ;;  %s8500_s7 = sadd.s32 4294967295, %s8341_s30   ;;  %s8341_s30 = sphi %s8485_s30, %s9451_s30   ;;  %s8337_s6 = sphi %s8483_s6, %s9454_s6   ;;  %s8333_s2 = sphi %s8481_s2, %s9453_s2   ;;  %s8329_s29 = sphi %s8479_s29, %s9452_s29  }
  0x15   : > { %9420 = sst [smem:[#allocation16_spill]] %s8333_s2  ;;  %s5500_s3 = sadd.s32 4294967294, %s8341_s30  }
  0x16   : > { %9421 = sst [smem:[#allocation17_spill]] %s8337_s6  ;;  %s8504_s26 = sadd.s32 1, %s8341_s30  }
  0x17   : > { %9422 = sst [smem:[#allocation18_spill]] %s8341_s30  ;;  %s578_s1 = sadd.s32 1, %s8337_s6 }
  0x18   : > { %9423 = sst [smem:[#allocation19_spill]] %s8504_s26  ;;  %s575_s8 = ssub.s32 %s8341_s30, %s8504_s26 }
  0x19   : > { %p588_p0 = scmp.ne.s32.totalorder %s8337_s6, %s8333_s2  ;;  %p576_p1 = scmp.eq.s32.totalorder %s575_s8, 0 }
  0x1a   : > { %p589_p2 = scmp.eq.s32.totalorder %s8500_s7, 1  ;;  %p594_p3 = scmp.ne.s32.totalorder %s8333_s2, %s8329_s29 }
  0x1b   : > { %p595_p4 = scmp.eq.s32.totalorder %s5500_s3, 1  ;;  %p5501_p7 = scmp.ge.s32.totalorder %s8341_s30, 1 }
  0x1c   : > { %s8515_s27 = scalar_select %p576_p1, %s8337_s6, %s578_s1  }
  0x1d   : > { %p8517_p5 = por %p589_p2, %p588_p0  ;;  %p8521_p6 = por %p595_p4, %p594_p3 }
  0x1e   : > { %9424 = sst [smem:[#allocation20_spill]] %s8515_s27  ;;  %p602_p8 = scmp.lt.s32.totalorder %s8341_s30, 3 }
  0x1f   : > { %s9425_s4 = scalar_select %p8517_p5, 1, 0 }
  0x20   : > { %s9427_s28 = scalar_select %p8521_p6, 1, 0 }
  0x21   : > { %9426 = sst [smem:[#allocation21_spill]] %s9425_s4  ;;  %p8096_p9 = scmp.eq.s32.totalorder %s8500_s7, 0 }
  0x22   : > { %9428 = sst [smem:[#allocation22_spill]] %s9427_s28  ;;  %p8528_p10 = pnand %p5501_p7, %p602_p8 }
  0x23   : > { %s9430_s10 = sld [smem:[#allocation33_spill]]  ;;  %s8343_s28 = smov [#allocation5]  }
  0x24   : > { %p8079_p11 = pneg %p8528_p10  ;;  %s9431_s27 = sld [smem:[#allocation29_spill]] }
  0x25   : > { %s653_s29 = sshll.u32 %s8343_s28, 4  ;;  %s8344_s5 = smov 128   ;;  %s654_s29 = int_to_ptr.vmem [resolvable:$true] %s653_s29 }
  0x26   : > { %p8542_p12 = pnand %p8096_p9, %p8079_p11  ;;  %s8345_s0 = smov 8  }
  0x27   : > { %s674_s30 = sshll.u32 %s9378_s14, 4  ;;  %s697_s25 = sshll.u32 %s9382_s18, 4  ;;  %s675_s30 = int_to_ptr.hbm [resolvable:$true] %s674_s30  ;;  %s698_s25 = int_to_ptr.hbm [resolvable:$true] %s697_s25 }
  0x28   : > { %s8347_s2 = smov [#allocation7]  }
  0x29   : > { %s651_s3 = sshll.u32 %s9430_s10, 4  ;;  %s8346_s10 = smov [#allocation2]   ;;  %s652_s3 = int_to_ptr.hbm [resolvable:$true] %s651_s3 }
  0x2a   : > { %s628_s6 = sshll.u32 %s9431_s27, 4  ;;  %s630_s1 = sshll.u32 %s8346_s10, 4  ;;  %s629_s6 = int_to_ptr.hbm [resolvable:$true] %s628_s6  ;;  %s631_s1 = int_to_ptr.vmem [resolvable:$true] %s630_s1 }
  0x2b   : > { %8085 = dma.hbm_to_vmem [thread:$0]  (!%p8542_p12), %s652_s3, 12288, %s654_s29, [#allocation6], %s8344_s5, %s8344_s5, %s8345_s0  }
  0x2c   : > { %8082 = dma.hbm_to_vmem [thread:$0]  (!%p8542_p12), %s629_s6, 12288, %s631_s1, [#allocation3], %s8344_s5, %s8344_s5, %s8345_s0  }
  0x2d   : > { %s676_s24 = sshll.u32 %s8347_s2, 4  ;;  %s8348_s29 = smov [#allocation8]   ;;  %s677_s24 = int_to_ptr.vmem [resolvable:$true] %s676_s24 }
  0x2e   : > { %8088 = dma.hbm_to_vmem [thread:$0]  (!%p8542_p12), %s675_s30, 12288, %s677_s24, [#allocation6], %s8344_s5, %s8344_s5, %s8345_s0  }
  0x2f   : > { %s699_s10 = sshll.u32 %s8348_s29, 4  ;;  %741 = sbr.rel (%p8528_p10) target bundleno = 2880 (0xb40), region = 120  ;;  %s700_s10 = int_to_ptr.vmem [resolvable:$true] %s699_s10 }
  0x30   : > { %8091 = dma.hbm_to_vmem [thread:$0]  (!%p8542_p12), %s698_s25, 12288, %s700_s10, [#allocation9], %s8344_s5, %s8344_s5, %s8345_s0  }
  0x34   : > { %8312 = dma.done.wait (%p8096_p9), [#allocation3], 12288  }
  0x35   : > { %8314 = vsyncadd (%p8096_p9), [#allocation3], 4294955008 }
  0x36   : > { %8316 = dma.done.wait (%p8096_p9), [#allocation6], 24576  }
  0x37   : > { %8318 = vsyncadd (%p8096_p9), [#allocation6], 4294942720 }
  0x38   : > { %8320 = dma.done.wait (%p8096_p9), [#allocation9], 12288  }
  0x39   : > { %8322 = vsyncadd (%p8096_p9), [#allocation9], 4294955008  ;;  %p824_p13 = scmp.lt.s32.totalorder %s8500_s7, 1  ;;  %s9433_s30 = sld [smem:[#allocation23_spill]]  ;;  %vm843_vm0 = vcmask 261120   ;;  %vm973_vm1 = vcmask 785408  }
  0x3a   : > { %s9434_s3 = sld [smem:[#allocation25_spill]]  ;;  %vm1265_vm6 = vcmask 130048   ;;  %vm2128_vm9 = vcmask 1043456   ;;  %vm2124_vm10 = vcmask 64512   ;;  %vm2994_vm13 = vcmask 1041408  }
  0x3b   : > { %s825_s24 = scalar_select %p824_p13, %s8500_s7, 1  ;;  %vm2990_vm14 = vcmask 31744  }
  0x3c   : > { %s9437_s0 = sld [smem:[#allocation26_spill]] }
  0x3d   : > { %s7565_s25 = sshll.u32 %s825_s24, 5  ;;  %s9438_s8 = sld [smem:[#allocation27_spill]] }
  0x3e   : > { %s9439_s10 = sld [smem:[#allocation28_spill]] }
  0x3f   : > { %s828_s26 = scalar_lea.vmem %s9433_s30, %s7565_s25  ;;  %s9435_s30 = sld [smem:[#allocation24_spill]] }
  0x40   : > { %v832_v0 = vld [vmem:[%s828_s26 + $0x10] sm:$0xff]  ;;  %v833_v1 = vld [vmem:[%s828_s26 + $0x18] sm:$0xff]  ;;  %v830_v2 = vld [vmem:[%s828_s26] sm:$0xff]  ;;  %s9440_s9 = sld [smem:[#allocation30_spill]] }
  0x41   : > { %v8579_v3 = vpack.c.bf16 %v833_v1, %v832_v0  ;;  %v831_v4 = vld [vmem:[%s828_s26 + $0x8] sm:$0xff]  ;;  %v5580_v5 = vld [vmem:[%s9434_s3 + $0xb0] sm:$0xf]  ;;  %v7591_v6 = vld [vmem:[%s9434_s3 + $0xb4] sm:$0xf0]  ;;  %s9441_s1 = sld [smem:[#allocation31_spill]] }
  0x42   : > { %v7590_v7 = vld [vmem:[%s9434_s3 + $0xb4] sm:$0xf]  ;;  %v8591_v8 = vpack.c.bf16 %v831_v4, %v830_v2  ;;  %v5581_v9 = vor.u32 %v7591_v6, %v5580_v5  ;;  %v5582_v10 = vld [vmem:[%s9434_s3 + $0xb8] sm:$0xf0]  ;;  %v5572_v11 = vld [vmem:[%s9434_s3 + $0xa0] sm:$0xf] }
  0x43   : > { %891 = vmatpush.bf16.msra.mxu1 %v8579_v3  ;;  %853 = vmatpush.bf16.msra.mxu0 %v8579_v3  ;;  %v7589_v12 = vld [vmem:[%s9434_s3 + $0xa4] sm:$0xf0]  ;;  %v5585_v14 = vor.u32 %v7590_v7, %v5582_v10  ;;  %v7588_v15 = vld [vmem:[%s9434_s3 + $0xa4] sm:$0xf]  ;;  %v5574_v16 = vld [vmem:[%s9434_s3 + $0xa8] sm:$0xf0] }
  0x44   : > { %v5630_v17 = vld [vmem:[%s9434_s3 + $0x50] sm:$0xf]  ;;  %979 = vmatpush.bf16.msra.mxu2 %v5581_v9  ;;  %v5573_v18 = vor.u32 %v7589_v12, %v5572_v11  ;;  %v7578_v19 = vld [vmem:[%s9434_s3 + $0x54] sm:$0xf0]  ;;  %v7577_v20 = vld [vmem:[%s9434_s3 + $0x54] sm:$0xf]  ;;  %v5577_v27 = vor.u32 %v7588_v15, %v5574_v16 }
  0x45   : > { %s9436_s26 = smov %s9435_s30  ;;  %v7579_v13 = vld [vmem:[%s9435_s30 + $0x8] sm:$0xff]  ;;  %v5632_v21 = vld [vmem:[%s9434_s3 + $0x58] sm:$0xf0]  ;;  %993 = vmatpush.bf16.msra.mxu3 %v5585_v14  ;;  %v5631_v23 = vor.u32 %v7578_v19, %v5630_v17  ;;  %v5564_v25 = vld [vmem:[%s9434_s3 + $0x90] sm:$0xf]  ;;  %s9442_s28 = sld [smem:[#allocation32_spill]] }
  0x46   : > { %v7566_v22 = vld [vmem:[%s9436_s26] sm:$0xff]  ;;  %v5635_v24 = vor.u32 %v7577_v20, %v5632_v21  ;;  %v7587_v26 = vld [vmem:[%s9434_s3 + $0x94] sm:$0xf0]  ;;  %v7586_v28 = vld [vmem:[%s9434_s3 + $0x94] sm:$0xf]  ;;  %s9444_s29 = sld [smem:[#allocation16_spill]] }
  0x47   : > { %892 = vmatpush.bf16.msra.mxu1 %v8591_v8  ;;  %854 = vmatpush.bf16.msra.mxu0 %v8591_v8  ;;  %v5622_v29 = vld [vmem:[%s9434_s3 + $0x40] sm:$0xf]  ;;  %v7576_v30 = vld [vmem:[%s9434_s3 + $0x44] sm:$0xf0]  ;;  %v5566_v31 = vld [vmem:[%s9434_s3 + $0x98] sm:$0xf0]  ;;  %v5565_v35 = vor.u32 %v7587_v26, %v5564_v25 }
  0x48   : > { %v5623_v32 = vor.u32 %v7576_v30, %v5622_v29  ;;  %v7575_v33 = vld [vmem:[%s9434_s3 + $0x44] sm:$0xf]  ;;  %v5624_v34 = vld [vmem:[%s9434_s3 + $0x48] sm:$0xf0]  ;;  %980 = vmatpush.bf16.msra.mxu2 %v5573_v18  ;;  %v5569_v37 = vor.u32 %v7586_v28, %v5566_v31  ;;  %v5556_v38 = vld [vmem:[%s9434_s3 + $0x80] sm:$0xf] }
  0x49   : > { %v5627_v36 = vor.u32 %v7575_v33, %v5624_v34  ;;  %994 = vmatpush.bf16.msra.mxu3 %v5577_v27  ;;  %v7585_v39 = vld [vmem:[%s9434_s3 + $0x84] sm:$0xf0]  ;;  %v7584_v40 = vld [vmem:[%s9434_s3 + $0x84] sm:$0xf]  ;;  %v5558_v42 = vld [vmem:[%s9434_s3 + $0x88] sm:$0xf0] }
  0x4a   : > { %5525 = vmatmul.msk.bf16.vlgmr.msra.gmra.mxu1 %vm843_vm0, %v7579_v13  ;;  %5518 = vmatmul.msk.bf16.vlgmr.msra.gmra.mxu0 %vm843_vm0, %v7566_v22  ;;  %v5557_v41 = vor.u32 %v7585_v39, %v5556_v38  ;;  %v5561_v43 = vor.u32 %v7584_v40, %v5558_v42  ;;  %v5614_v44 = vld [vmem:[%s9434_s3 + $0x30] sm:$0xf]  ;;  %v7574_v45 = vld [vmem:[%s9434_s3 + $0x34] sm:$0xf0]  ;;  %v7573_v46 = vld [vmem:[%s9434_s3 + $0x34] sm:$0xf] }
  0x4b   : > { %1070 = vmatpush.bf16.msrb.mxu0 %v5631_v23  ;;  %1084 = vmatpush.bf16.msrb.mxu1 %v5635_v24  ;;  %v5615_v47 = vor.u32 %v7574_v45, %v5614_v44  ;;  %v5616_v48 = vld [vmem:[%s9434_s3 + $0x38] sm:$0xf0]  ;;  %v5548_v49 = vld [vmem:[%s9434_s3 + $0x70] sm:$0xf]  ;;  %v7583_v50 = vld [vmem:[%s9434_s3 + $0x74] sm:$0xf0] }
  0x4c   : > { %981 = vmatpush.bf16.msra.mxu2 %v5565_v35  ;;  %v5619_v51 = vor.u32 %v7573_v46, %v5616_v48  ;;  %v5549_v52 = vor.u32 %v7583_v50, %v5548_v49  ;;  %v7582_v53 = vld [vmem:[%s9434_s3 + $0x74] sm:$0xf]  ;;  %v5550_v54 = vld [vmem:[%s9434_s3 + $0x78] sm:$0xf0]  ;;  %v5606_v55 = vld [vmem:[%s9434_s3 + $0x20] sm:$0xf] }
  0x4d   : > { %995 = vmatpush.bf16.msra.mxu3 %v5569_v37  ;;  %v5553_v56 = vor.u32 %v7582_v53, %v5550_v54  ;;  %v7572_v57 = vld [vmem:[%s9434_s3 + $0x24] sm:$0xf0]  ;;  %v7571_v58 = vld [vmem:[%s9434_s3 + $0x24] sm:$0xf]  ;;  %v5608_v59 = vld [vmem:[%s9434_s3 + $0x28] sm:$0xf0] }
  0x4e   : > { %v5607_v60 = vor.u32 %v7572_v57, %v5606_v55  ;;  %v5611_v61 = vor.u32 %v7571_v58, %v5608_v59  ;;  %v5540_v62 = vld [vmem:[%s9434_s3 + $0x60] sm:$0xf]  ;;  %v7581_v63 = vld [vmem:[%s9434_s3 + $0x64] sm:$0xf0]  ;;  %v7580_v0 = vld [vmem:[%s9434_s3 + $0x64] sm:$0xf] }
  0x4f   : > { %1071 = vmatpush.bf16.msrb.mxu0 %v5623_v32  ;;  %1085 = vmatpush.bf16.msrb.mxu1 %v5627_v36  ;;  %v5541_v1 = vor.u32 %v7581_v63, %v5540_v62  ;;  %v5542_v2 = vld [vmem:[%s9434_s3 + $0x68] sm:$0xf0]  ;;  %v5598_v5 = vld [vmem:[%s9434_s3 + $0x10] sm:$0xf]  ;;  %v7570_v6 = vld [vmem:[%s9434_s3 + $0x14] sm:$0xf0] }
  0x50   : > { %982 = vmatpush.bf16.msra.mxu2 %v5557_v41  ;;  %v5545_v4 = vor.u32 %v7580_v0, %v5542_v2  ;;  %v7569_v7 = vld [vmem:[%s9434_s3 + $0x14] sm:$0xf]  ;;  %v5599_v9 = vor.u32 %v7570_v6, %v5598_v5  ;;  %v5600_v10 = vld [vmem:[%s9434_s3 + $0x18] sm:$0xf0]  ;;  %v5590_v12 = vld [vmem:[%s9434_s3] sm:$0xf] }
  0x51   : > { %996 = vmatpush.bf16.msra.mxu3 %v5561_v43  ;;  %v5603_v11 = vor.u32 %v7569_v7, %v5600_v10  ;;  %v7568_v13 = vld [vmem:[%s9434_s3 + $0x4] sm:$0xf0]  ;;  %v7567_v14 = vld [vmem:[%s9434_s3 + $0x4] sm:$0xf]  ;;  %v5592_v16 = vld [vmem:[%s9434_s3 + $0x8] sm:$0xf0] }
  0x52   : > { %v5591_v15 = vor.u32 %v7568_v13, %v5590_v12  ;;  %v5699_v23 = vld [vmem:[%s9434_s3 + $0x110] sm:$0xf]  ;;  %v7604_v24 = vld [vmem:[%s9434_s3 + $0x114] sm:$0xf0]  ;;  %v7603_v25 = vld [vmem:[%s9434_s3 + $0x114] sm:$0xf] }
  0x53   : > { %1072 = vmatpush.bf16.msrb.mxu0 %v5615_v47  ;;  %1086 = vmatpush.bf16.msrb.mxu1 %v5619_v51  ;;  %v5700_v26 = vor.u32 %v7604_v24, %v5699_v23  ;;  %v5701_v27 = vld [vmem:[%s9434_s3 + $0x118] sm:$0xf0]  ;;  %v5691_v29 = vld [vmem:[%s9434_s3 + $0x100] sm:$0xf]  ;;  %v7602_v30 = vld [vmem:[%s9434_s3 + $0x104] sm:$0xf0] }
  0x54   : > { %983 = vmatpush.bf16.msra.mxu2 %v5549_v52  ;;  %v5704_v28 = vor.u32 %v7603_v25, %v5701_v27  ;;  %v7601_v31 = vld [vmem:[%s9434_s3 + $0x104] sm:$0xf]  ;;  %v5692_v32 = vor.u32 %v7602_v30, %v5691_v29  ;;  %v5693_v33 = vld [vmem:[%s9434_s3 + $0x108] sm:$0xf0]  ;;  %v5683_v35 = vld [vmem:[%s9434_s3 + $0xf0] sm:$0xf] }
  0x55   : > { %997 = vmatpush.bf16.msra.mxu3 %v5553_v56  ;;  %v5696_v34 = vor.u32 %v7601_v31, %v5693_v33  ;;  %v7600_v36 = vld [vmem:[%s9434_s3 + $0xf4] sm:$0xf0]  ;;  %v7599_v37 = vld [vmem:[%s9434_s3 + $0xf4] sm:$0xf]  ;;  %v5685_v39 = vld [vmem:[%s9434_s3 + $0xf8] sm:$0xf0] }
  0x56   : > { %v5684_v38 = vor.u32 %v7600_v36, %v5683_v35  ;;  %v5688_v40 = vor.u32 %v7599_v37, %v5685_v39  ;;  %v5675_v41 = vld [vmem:[%s9434_s3 + $0xe0] sm:$0xf]  ;;  %v7598_v42 = vld [vmem:[%s9434_s3 + $0xe4] sm:$0xf0]  ;;  %v7597_v43 = vld [vmem:[%s9434_s3 + $0xe4] sm:$0xf] }
  0x57   : > { %1073 = vmatpush.bf16.msrb.mxu0 %v5607_v60  ;;  %1087 = vmatpush.bf16.msrb.mxu1 %v5611_v61  ;;  %v5676_v44 = vor.u32 %v7598_v42, %v5675_v41  ;;  %v5677_v45 = vld [vmem:[%s9434_s3 + $0xe8] sm:$0xf0]  ;;  %v5667_v47 = vld [vmem:[%s9434_s3 + $0xd0] sm:$0xf]  ;;  %v7596_v48 = vld [vmem:[%s9434_s3 + $0xd4] sm:$0xf0] }
  0x58   : > { %984 = vmatpush.bf16.msra.mxu2 %v5541_v1  ;;  %v5680_v46 = vor.u32 %v7597_v43, %v5677_v45  ;;  %v7595_v49 = vld [vmem:[%s9434_s3 + $0xd4] sm:$0xf]  ;;  %v5668_v50 = vor.u32 %v7596_v48, %v5667_v47  ;;  %v5669_v51 = vld [vmem:[%s9434_s3 + $0xd8] sm:$0xf0]  ;;  %v5659_v53 = vld [vmem:[%s9434_s3 + $0xc0] sm:$0xf] }
  0x59   : > { %998 = vmatpush.bf16.msra.mxu3 %v5545_v4  ;;  %v5672_v52 = vor.u32 %v7595_v49, %v5669_v51  ;;  %v7594_v54 = vld [vmem:[%s9434_s3 + $0xc4] sm:$0xf0]  ;;  %v7593_v55 = vld [vmem:[%s9434_s3 + $0xc4] sm:$0xf]  ;;  %v5661_v57 = vld [vmem:[%s9434_s3 + $0xc8] sm:$0xf0] }
  0x5a   : > { %v5660_v56 = vor.u32 %v7594_v54, %v5659_v53  ;;  %v5664_v58 = vor.u32 %v7593_v55, %v5661_v57  ;;  %v1230_v6 = vld [vmem:[%s9437_s0] sm:$0x3]  ;;  %v7668_v29 = vld [vmem:[#allocation2 + $0x1f4] sm:$0xf0]  ;;  %v7667_v35 = vld [vmem:[#allocation2 + $0x1f4] sm:$0xf] }
  0x5b   : > { %1074 = vmatpush.bf16.msrb.mxu0 %v5599_v9  ;;  %1088 = vmatpush.bf16.msrb.mxu1 %v5603_v11  ;;  %v1233_v11 = vperm.slane %v1230_v6, 1  ;;  %v5836_v36 = vld [vmem:[#allocation2 + $0x1f8] sm:$0xf0]  ;;  %v7666_v43 = vld [vmem:[#allocation2 + $0x1e4] sm:$0xf0]  ;;  %s822_s24 = sand.u32 1, %s9444_s29  }
  0x5c   : > { %1113 = vmatpush.bf16.msrb.mxu2 %v8579_v3  ;;  %v5595_v3 = vor.u32 %v7567_v14, %v5592_v16  ;;  %v5839_v41 = vor.u32 %v7667_v35, %v5836_v36  ;;  %v5828_v45 = vld [vmem:[#allocation2 + $0x1e8] sm:$0xf0]  ;;  %v8836_v48 = vld [vmem:[%s9439_s10 + $0x4] sm:$0xf]  ;;  %v7663_v57 = vld [vmem:[#allocation2 + $0x1d4] sm:$0xf] }
  0x5d   : > { %1200 = vmatpush.bf16.msrb.mxu3 %v5700_v26  ;;  %v7645_v35 = vld [vmem:[#allocation2 + $0x144] sm:$0xf]  ;;  %v5748_v36 = vld [vmem:[#allocation2 + $0x148] sm:$0xf0]  ;;  %s9445_s6 = sld [smem:[#allocation35_spill]]  ;;  %s823_s5 = scalar_lea.vmem [#allocation10], %s822_s24 }
  0x5e   : > { %s5402_s0 = sshll.u32 %s823_s5, 4  ;;  %s5392_s27 = scalar_lea.sflag [#allocation4], %s822_s24  ;;  %s5403_s0 = int_to_ptr.vmem [resolvable:$true] %s5402_s0 }
  0x5f   : > { %1075 = vmatpush.bf16.msrb.mxu0 %v5591_v15  ;;  %1089 = vmatpush.bf16.msrb.mxu1 %v5595_v3 }
  0x60   : > { %1114 = vmatpush.bf16.msrb.mxu2 %v8591_v8  ;;  %v7592_v8 = vld [vmem:[%s9436_s26 + $0x10] sm:$0xff] }
  0x61   : > { %1201 = vmatpush.bf16.msrb.mxu3 %v5692_v32 }
  0x63   : > { %1214 = vmatpush.bf16.msra.mxu0 %v5704_v28  ;;  %v5834_v28 = vld [vmem:[#allocation2 + $0x1f0] sm:$0xf]  ;;  %s9446_s4 = smov %s9445_s6  ;;  %s5400_s30 = scalar_lea.hbm %s9445_s6, %s8500_s7 }
  0x64   : > { %v5835_v39 = vor.u32 %v7668_v29, %v5834_v28  ;;  %v5794_v28 = vld [vmem:[#allocation2 + $0x1a0] sm:$0xf]  ;;  %v7658_v29 = vld [vmem:[#allocation2 + $0x1a4] sm:$0xf0]  ;;  %s8287_s2 = scalar_lea.hbm %s9446_s4, 2 }
  0x65   : > { %1202 = vmatpush.bf16.msrb.mxu3 %v5684_v38 }
  0x67   : > { %1215 = vmatpush.bf16.msra.mxu0 %v5696_v34 }
  0x69   : > { %1203 = vmatpush.bf16.msrb.mxu3 %v5676_v44  ;;  %v7665_v44 = vld [vmem:[#allocation2 + $0x1e4] sm:$0xf] }
  0x6a   : > { %v5831_v53 = vor.u32 %v7665_v44, %v5828_v45  ;;  %v7655_v44 = vld [vmem:[#allocation2 + $0x194] sm:$0xf]  ;;  %v5751_v45 = vor.u32 %v7645_v35, %v5748_v36  ;;  %v5914_v35 = vld [vmem:[#allocation2 + $0x90] sm:$0xf]  ;;  %v7624_v36 = vld [vmem:[#allocation2 + $0x94] sm:$0xf0] }
  0x6b   : > { %1216 = vmatpush.bf16.msra.mxu0 %v5688_v40  ;;  %v5826_v40 = vld [vmem:[#allocation2 + $0x1e0] sm:$0xf] }
  0x6c   : > { %v5827_v51 = vor.u32 %v7666_v43, %v5826_v40  ;;  %v5786_v40 = vld [vmem:[#allocation2 + $0x190] sm:$0xf] }
  0x6d   : > { %1204 = vmatpush.bf16.msrb.mxu3 %v5668_v50  ;;  %v1264_v50 = vld [vmem:[%s9439_s10] sm:$0xf] }
  0x6f   : > { %1217 = vmatpush.bf16.msra.mxu0 %v5680_v46 }
  0x71   : > { %1205 = vmatpush.bf16.msrb.mxu3 %v5660_v56  ;;  %v7664_v56 = vld [vmem:[#allocation2 + $0x1d4] sm:$0xf0] }
  0x73   : > { %1218 = vmatpush.bf16.msra.mxu0 %v5672_v52  ;;  %v5818_v52 = vld [vmem:[#allocation2 + $0x1d0] sm:$0xf] }
  0x77   : > { %1219 = vmatpush.bf16.msra.mxu0 %v5664_v58  ;;  %v5820_v58 = vld [vmem:[#allocation2 + $0x1d8] sm:$0xf0] }
  0xc7   : > { %v894_v17 = vpop.f32.mrf.mxu1  ;;  %v856_v18 = vpop.f32.mrf.mxu0 }
  0xcf   : > { %v896_v19 = vpop.f32.mrf.mxu1  ;;  %v858_v20 = vpop.f32.mrf.mxu0 }
  0xd0   : > { %v899_v21 = vpack.c.bf16 %v896_v19, %v894_v17  ;;  %v861_v22 = vpack.c.bf16 %v858_v20, %v856_v18  ;;  %v1232_v17 = vperm.slane %v1230_v6, 0  ;;  %v1252_v20 = vld [vmem:[%s9438_s8] sm:$0x3]  ;;  %v5823_v6 = vor.u32 %v7663_v57, %v5820_v58  ;;  %v7636_v57 = vld [vmem:[#allocation2 + $0xf4] sm:$0xf0]  ;;  %s9443_s8 = sld [smem:[#allocation34_spill]] }
  0xd1   : > { %v1255_v23 = vperm.slane %v1252_v20, 1  ;;  %v1254_v37 = vperm.slane %v1252_v20, 0  ;;  %v7659_v20 = vld [vmem:[#allocation2 + $0x1b4] sm:$0xf] }
  0xd2   : > { %5586 = vmatmul.msk.bf16.vlgmr.msra.gmra.mxu2 %vm973_vm1, %v899_v21  ;;  %5587 = vmatmul.msk.bf16.vlgmr.msra.gmra.mxu3 %vm973_vm1, %v899_v21 }
  0xd3   : > { %5636 = vmatmul.msk.bf16.vlgmr.msrb.gmra.mxu0 %vm973_vm1, %v861_v22  ;;  %5637 = vmatmul.msk.bf16.vlgmr.msrb.gmra.mxu1 %vm973_vm1, %v861_v22 }
  0xe2   : > { %5644 = vmatmul.msk.bf16.vlgmr.msrb.gmra.mxu2 %vm843_vm0, %v7592_v8 }
 0x150   : > { %v1077_v0 = vpop.f32.mrf.mxu0  ;;  %v1091_v4 = vpop.f32.mrf.mxu1 }
 0x155   : > { %v986_v59 = vpop.f32.mrf.mxu2  ;;  %v1000_v1 = vpop.f32.mrf.mxu3 }
 0x156   : > { %v1092_v7 = vadd.f32 %v1091_v4, %v1000_v1  ;;  %v1078_v13 = vadd.f32 %v1077_v0, %v986_v59  ;;  %v5770_v59 = vld [vmem:[#allocation2 + $0x170] sm:$0xf]  ;;  %v5772_v0 = vld [vmem:[#allocation2 + $0x178] sm:$0xf0]  ;;  %v5819_v1 = vor.u32 %v7664_v56, %v5818_v52  ;;  %v5762_v4 = vld [vmem:[#allocation2 + $0x160] sm:$0xf] }
 0x157   : > { %v7642_v52 = vld [vmem:[#allocation2 + $0x124] sm:$0xf0]  ;;  %v5962_v56 = vld [vmem:[#allocation2 + $0xf0] sm:$0xf] }
 0x158   : > { %v1079_v2 = vpop.f32.mrf.mxu0  ;;  %v1093_v12 = vpop.f32.mrf.mxu1 }
 0x15d   : > { %v988_v60 = vpop.f32.mrf.mxu2  ;;  %v1002_v5 = vpop.f32.mrf.mxu3 }
 0x15e   : > { %v1094_v16 = vadd.f32 %v1093_v12, %v1002_v5  ;;  %v1080_v24 = vadd.f32 %v1079_v2, %v988_v60  ;;  %v7652_v60 = vld [vmem:[#allocation2 + $0x174] sm:$0xf0]  ;;  %v5810_v2 = vld [vmem:[#allocation2 + $0x1c0] sm:$0xf]  ;;  %v7662_v5 = vld [vmem:[#allocation2 + $0x1c4] sm:$0xf0] }
 0x165   : > { %v1116_v61 = vpop.f32.mrf.mxu2 }
 0x16d   : > { %v1118_v62 = vpop.f32.mrf.mxu2 }
 0x16e   : > { %v1121_v63 = vpack.c.bf16 %v1118_v62, %v1116_v61  ;;  %v7651_v61 = vld [vmem:[#allocation2 + $0x174] sm:$0xf] }
 0x170   : > { %5705 = vmatmul.msk.bf16.vlgmr.msrb.gmra.mxu3 %vm973_vm1, %v1121_v63  ;;  %5706 = vmatmul.msk.bf16.vlgmr.msra.gmra.mxu0 %vm973_vm1, %v1121_v63  ;;  %v5771_v63 = vor.u32 %v7652_v60, %v5770_v59  ;;  %v7653_v60 = vld [vmem:[#allocation2 + $0x184] sm:$0xf]  ;;  %vm3860_vm1 = vcmask 1040384  }
 0x172   : > { %1555 = vmatpush.bf16.msrb.mxu0 %v5771_v63  ;;  %v7635_v63 = vld [vmem:[#allocation2 + $0xf4] sm:$0xf] }
 0x1ed   : > { %v1221_v9 = vpop.f32.mrf.mxu0 }
 0x1ee   : > { %v1227_v10 = vadd.f32 %v1221_v9, %v1092_v7  ;;  %v7661_v7 = vld [vmem:[#allocation2 + $0x1c4] sm:$0xf]  ;;  %v5775_v9 = vor.u32 %v7651_v61, %v5772_v0  ;;  %v5780_v61 = vld [vmem:[#allocation2 + $0x188] sm:$0xf0] }
 0x1f0   : > { %v1237_v14 = vadd.f32 %v1233_v11, %v1227_v10  ;;  %v7650_v10 = vld [vmem:[#allocation2 + $0x164] sm:$0xf0] }
 0x1f1   : > { %v5763_v12 = vor.u32 %v7650_v10, %v5762_v4  ;;  %v5732_v4 = vld [vmem:[#allocation2 + $0x128] sm:$0xf0]  ;;  %v5783_v10 = vor.u32 %v7653_v60, %v5780_v61  ;;  %v5890_v61 = vld [vmem:[#allocation2 + $0x60] sm:$0xf] }
 0x1f2   : > { %v1245_v19 = vmul.f32 0.2, %v1237_v14  ;;  %vm1241_vm2 = vcmp.gt.f32.partialorder %v1237_v14, 0.0 }
 0x1f3   : > { %v1207_v15 = vpop.f32.mrf.mxu3  ;;  %1556 = vmatpush.bf16.msrb.mxu0 %v5763_v12  ;;  %v7634_v12 = vld [vmem:[#allocation2 + $0xe4] sm:$0xf0] }
 0x1f4   : > { %v1226_v3 = vadd.f32 %v1207_v15, %v1078_v13  ;;  %v1249_v25 = vsel %vm1241_vm2, %v1237_v14, %v1245_v19  ;;  %v7649_v13 = vld [vmem:[#allocation2 + $0x164] sm:$0xf]  ;;  %v5764_v14 = vld [vmem:[#allocation2 + $0x168] sm:$0xf0]  ;;  %v5754_v15 = vld [vmem:[#allocation2 + $0x150] sm:$0xf] }
 0x1f5   : > { %v1223_v18 = vpop.f32.mrf.mxu0  ;;  %v1259_v33 = vadd.f32 %v1255_v23, %v1249_v25  ;;  %v5746_v25 = vld [vmem:[#allocation2 + $0x140] sm:$0xf]  ;;  %vm3856_vm2 = vcmask 15360  }
 0x1f6   : > { %v1229_v21 = vadd.f32 %v1223_v18, %v1094_v16  ;;  %v1236_v22 = vadd.f32 %v1232_v17, %v1226_v3  ;;  %v7648_v16 = vld [vmem:[#allocation2 + $0x154] sm:$0xf0]  ;;  %v5811_v3 = vor.u32 %v7662_v5, %v5810_v2  ;;  %v7641_v2 = vld [vmem:[#allocation2 + $0x124] sm:$0xf] }
 0x1f7   : > { %v7660_v18 = vld [vmem:[#allocation2 + $0x1b4] sm:$0xf0] }
 0x1f8   : > { %v1239_v8 = vadd.f32 %v1233_v11, %v1229_v21  ;;  %v1244_v30 = vmul.f32 0.2, %v1236_v22  ;;  %vm1240_vm4 = vcmp.gt.f32.partialorder %v1236_v22, 0.0  ;;  %v5812_v11 = vld [vmem:[#allocation2 + $0x1c8] sm:$0xf0]  ;;  %v5767_v21 = vor.u32 %v7649_v13, %v5764_v14 }
 0x1f9   : > { %v5815_v19 = vor.u32 %v7661_v7, %v5812_v11  ;;  %v7640_v7 = vld [vmem:[#allocation2 + $0x114] sm:$0xf0]  ;;  %v5954_v11 = vld [vmem:[#allocation2 + $0xe0] sm:$0xf]  ;;  %v7633_v14 = vld [vmem:[#allocation2 + $0xe4] sm:$0xf] }
 0x1fa   : > { %vm1243_vm3 = vcmp.gt.f32.partialorder %v1239_v8, 0.0  ;;  %v1247_v26 = vmul.f32 0.2, %v1239_v8  ;;  %v1248_v46 = vsel %vm1240_vm4, %v1236_v22, %v1244_v30  ;;  %v5804_v22 = vld [vmem:[#allocation2 + $0x1b8] sm:$0xf0] }
 0x1fb   : > { %v1209_v27 = vpop.f32.mrf.mxu3  ;;  %v1258_v54 = vadd.f32 %v1254_v37, %v1248_v46  ;;  %v5807_v30 = vor.u32 %v7659_v20, %v5804_v22  ;;  %v5788_v46 = vld [vmem:[#allocation2 + $0x198] sm:$0xf0]  ;;  %v7632_v20 = vld [vmem:[#allocation2 + $0xd4] sm:$0xf0] }
 0x1fc   : > { %v1251_v31 = vsel %vm1243_vm3, %v1239_v8, %v1247_v26  ;;  %v1228_v32 = vadd.f32 %v1209_v27, %v1080_v24  ;;  %v5755_v8 = vor.u32 %v7648_v16, %v5754_v15  ;;  %v5756_v24 = vld [vmem:[#allocation2 + $0x158] sm:$0xf0]  ;;  %v7646_v26 = vld [vmem:[#allocation2 + $0x144] sm:$0xf0]  ;;  %v5791_v58 = vor.u32 %v7655_v44, %v5788_v46  ;;  %v5956_v16 = vld [vmem:[#allocation2 + $0xe8] sm:$0xf0] }
 0x1fd   : > { %v1261_v34 = vadd.f32 %v1255_v23, %v1251_v31  ;;  %v7647_v23 = vld [vmem:[#allocation2 + $0x154] sm:$0xf]  ;;  %v7657_v31 = vld [vmem:[#allocation2 + $0x1a4] sm:$0xf]  ;;  %v5735_v15 = vor.u32 %v7641_v2, %v5732_v4  ;;  %v7638_v46 = vld [vmem:[#allocation2 + $0x104] sm:$0xf0] }
 0x1fe   : > { %v1238_v38 = vadd.f32 %v1232_v17, %v1228_v32  ;;  %v5802_v17 = vld [vmem:[#allocation2 + $0x1b0] sm:$0xf]  ;;  %v5759_v32 = vor.u32 %v7647_v23, %v5756_v24  ;;  %1557 = vmatpush.bf16.msrb.mxu0 %v5755_v8  ;;  %v7631_v8 = vld [vmem:[#allocation2 + $0xd4] sm:$0xf]  ;;  %v5948_v23 = vld [vmem:[#allocation2 + $0xd8] sm:$0xf0] }
 0x1ff   : > { %v8829_v42 = vpack.c.bf16 %v1261_v34, %v1259_v33  ;;  %v5803_v27 = vor.u32 %v7660_v18, %v5802_v17  ;;  %v5796_v33 = vld [vmem:[#allocation2 + $0x1a8] sm:$0xf0]  ;;  %v5747_v34 = vor.u32 %v7646_v26, %v5746_v25  ;;  %v7639_v17 = vld [vmem:[#allocation2 + $0x114] sm:$0xf]  ;;  %v5724_v18 = vld [vmem:[#allocation2 + $0x118] sm:$0xf0] }
 0x200   : > { %vm1242_vm5 = vcmp.gt.f32.partialorder %v1238_v38, 0.0  ;;  %v1246_v47 = vmul.f32 0.2, %v1238_v38  ;;  %v5799_v43 = vor.u32 %v7657_v31, %v5796_v33  ;;  %v5727_v22 = vor.u32 %v7639_v17, %v5724_v18  ;;  %v5938_v25 = vld [vmem:[#allocation2 + $0xc0] sm:$0xf] }
 0x201   : > { %1289 = vmatpush.bf16.msra.mxu2 %v8829_v42  ;;  %1354 = vmatpush.bf16.msra.mxu3 %v8829_v42  ;;  %v7630_v26 = vld [vmem:[#allocation2 + $0xc4] sm:$0xf0]  ;;  %v5892_v2 = vld [vmem:[#allocation2 + $0x68] sm:$0xf0]  ;;  %v7625_v4 = vld [vmem:[#allocation2 + $0xa4] sm:$0xf] }
 0x202   : > { %v1250_v49 = vsel %vm1242_vm5, %v1238_v38, %v1246_v47  ;;  %v7644_v38 = vld [vmem:[#allocation2 + $0x134] sm:$0xf0]  ;;  %1558 = vmatpush.bf16.msrb.mxu0 %v5747_v34  ;;  %v7626_v33 = vld [vmem:[#allocation2 + $0xa4] sm:$0xf0]  ;;  %v5874_v17 = vld [vmem:[#allocation2 + $0x40] sm:$0xf] }
 0x203   : > { %v1260_v55 = vadd.f32 %v1254_v37, %v1250_v49  ;;  %v5738_v37 = vld [vmem:[#allocation2 + $0x130] sm:$0xf]  ;;  %v7643_v49 = vld [vmem:[#allocation2 + $0x134] sm:$0xf]  ;;  %v7614_v18 = vld [vmem:[#allocation2 + $0x44] sm:$0xf0] }
 0x204   : > { %5711 = vmatmul.msk.bf16.vlgmr.msra.gmra.mxu3 %vm1265_vm6, %v8836_v48  ;;  %5708 = vmatmul.msk.bf16.vlgmr.msra.gmra.mxu2 %vm1265_vm6, %v1264_v50  ;;  %v5739_v47 = vor.u32 %v7644_v38, %v5738_v37  ;;  %v5915_v37 = vor.u32 %v7624_v36, %v5914_v35  ;;  %v7629_v38 = vld [vmem:[#allocation2 + $0xc4] sm:$0xf]  ;;  %v5850_v36 = vld [vmem:[#allocation2 + $0x10] sm:$0xf]  ;;  %vm5365_vm5 = vcmask 8192  }
 0x205   : > { %1568 = vmatpush.bf16.msrb.mxu2 %v5835_v39  ;;  %1594 = vmatpush.bf16.msrb.mxu3 %v5839_v41  ;;  %v8844_v62 = vpack.c.bf16 %v1260_v55, %v1258_v54  ;;  %v5795_v39 = vor.u32 %v7658_v29, %v5794_v28  ;;  %v7656_v41 = vld [vmem:[#allocation2 + $0x194] sm:$0xf0]  ;;  %v5778_v54 = vld [vmem:[#allocation2 + $0x180] sm:$0xf]  ;;  %v7654_v55 = vld [vmem:[#allocation2 + $0x184] sm:$0xf0]  ;;  %v5939_v28 = vor.u32 %v7630_v26, %v5938_v25 }
 0x206   : > { %1559 = vmatpush.bf16.msrb.mxu0 %v5739_v47  ;;  %v5779_v5 = vor.u32 %v7654_v55, %v5778_v54  ;;  %v5930_v29 = vld [vmem:[#allocation2 + $0xb0] sm:$0xf]  ;;  %v7637_v47 = vld [vmem:[#allocation2 + $0x104] sm:$0xf]  ;;  %v7619_v54 = vld [vmem:[#allocation2 + $0x74] sm:$0xf] }
 0x207   : > { %1276 = vmatpush.bf16.msra.mxu1 %v8844_v62  ;;  %v7612_v25 = vld [vmem:[#allocation2 + $0x34] sm:$0xf0]  ;;  %v7611_v26 = vld [vmem:[#allocation2 + $0x34] sm:$0xf] }
 0x209   : > { %1569 = vmatpush.bf16.msrb.mxu2 %v5827_v51  ;;  %1595 = vmatpush.bf16.msrb.mxu3 %v5831_v53  ;;  %v5730_v51 = vld [vmem:[#allocation2 + $0x120] sm:$0xf]  ;;  %v5787_v53 = vor.u32 %v7656_v41, %v5786_v40 }
 0x20a   : > { %5707 = vmatmul.msk.bf16.vlgmr.msra.gmra.mxu1 %vm1265_vm6, %v1264_v50  ;;  %v5740_v50 = vld [vmem:[#allocation2 + $0x138] sm:$0xf0]  ;;  %v5731_v0 = vor.u32 %v7642_v52, %v5730_v51  ;;  %v5906_v41 = vld [vmem:[#allocation2 + $0x80] sm:$0xf]  ;;  %v5898_v52 = vld [vmem:[#allocation2 + $0x70] sm:$0xf] }
 0x20b   : > { %1341 = vmatpush.bf16.msrb.mxu1 %v8844_v62  ;;  %v5743_v59 = vor.u32 %v7643_v49, %v5740_v50  ;;  %v5716_v50 = vld [vmem:[#allocation2 + $0x108] sm:$0xf0] }
 0x20c   : > { %1560 = vmatpush.bf16.msrb.mxu0 %v5731_v0  ;;  %v5719_v51 = vor.u32 %v7637_v47, %v5716_v50  ;;  %v7617_v0 = vld [vmem:[#allocation2 + $0x64] sm:$0xf] }
 0x20d   : > { %1570 = vmatpush.bf16.msrb.mxu2 %v5819_v1  ;;  %1596 = vmatpush.bf16.msrb.mxu3 %v5823_v6  ;;  %v5964_v1 = vld [vmem:[#allocation2 + $0xf8] sm:$0xf0]  ;;  %v5722_v6 = vld [vmem:[#allocation2 + $0x110] sm:$0xf] }
 0x20e   : > { %v5967_v13 = vor.u32 %v7635_v63, %v5964_v1  ;;  %v7618_v63 = vld [vmem:[#allocation2 + $0x64] sm:$0xf0] }
 0x20f   : > { %1581 = vmatpush.bf16.msra.mxu1 %v5775_v9  ;;  %v5963_v9 = vor.u32 %v7636_v57, %v5962_v56  ;;  %v5900_v56 = vld [vmem:[#allocation2 + $0x78] sm:$0xf0]  ;;  %v7627_v57 = vld [vmem:[#allocation2 + $0xb4] sm:$0xf]  ;;  %v5891_v1 = vor.u32 %v7618_v63, %v5890_v61  ;;  %v5968_v63 = vld [vmem:[%s9439_s10 + $0x8] sm:$0xf] }
 0x211   : > { %1571 = vmatpush.bf16.msrb.mxu2 %v5811_v3  ;;  %1597 = vmatpush.bf16.msrb.mxu3 %v5815_v19  ;;  %v5723_v3 = vor.u32 %v7640_v7, %v5722_v6  ;;  %v5946_v19 = vld [vmem:[#allocation2 + $0xd0] sm:$0xf]  ;;  %v5895_v6 = vor.u32 %v7617_v0, %v5892_v2  ;;  %v7684_v0 = vld [vmem:[#allocation2 + $0x274] sm:$0xf0] }
 0x212   : > { %v5947_v24 = vor.u32 %v7632_v20, %v5946_v19  ;;  %v5875_v19 = vor.u32 %v7614_v18, %v5874_v17  ;;  %v5876_v20 = vld [vmem:[#allocation2 + $0x48] sm:$0xf0]  ;;  %v6005_v17 = vld [vmem:[#allocation2 + $0x240] sm:$0xf]  ;;  %v7678_v18 = vld [vmem:[#allocation2 + $0x244] sm:$0xf0] }
 0x213   : > { %1582 = vmatpush.bf16.msra.mxu1 %v5767_v21  ;;  %v5959_v21 = vor.u32 %v7633_v14, %v5956_v16  ;;  %1561 = vmatpush.bf16.msrb.mxu0 %v5723_v3  ;;  %v7623_v14 = vld [vmem:[#allocation2 + $0x94] sm:$0xf] }
 0x215   : > { %1572 = vmatpush.bf16.msrb.mxu2 %v5803_v27  ;;  %1598 = vmatpush.bf16.msrb.mxu3 %v5807_v30  ;;  %v5951_v27 = vor.u32 %v7631_v8, %v5948_v23  ;;  %v7628_v30 = vld [vmem:[#allocation2 + $0xb4] sm:$0xf0] }
 0x216   : > { %v5931_v31 = vor.u32 %v7628_v30, %v5930_v29  ;;  %v5858_v30 = vld [vmem:[#allocation2 + $0x20] sm:$0xf] }
 0x217   : > { %1583 = vmatpush.bf16.msra.mxu1 %v5759_v32  ;;  %v5922_v32 = vld [vmem:[#allocation2 + $0xa0] sm:$0xf] }
 0x218   : > { %v5923_v34 = vor.u32 %v7626_v33, %v5922_v32  ;;  %v7609_v32 = vld [vmem:[#allocation2 + $0x24] sm:$0xf] }
 0x219   : > { %1573 = vmatpush.bf16.msrb.mxu2 %v5795_v39  ;;  %1599 = vmatpush.bf16.msrb.mxu3 %v5799_v43  ;;  %v5940_v39 = vld [vmem:[#allocation2 + $0xc8] sm:$0xf0]  ;;  %v7622_v43 = vld [vmem:[#allocation2 + $0x84] sm:$0xf0] }
 0x21a   : > { %5710 = vmatmul.msk.bf16.vlgmr.msrb.gmra.mxu1 %vm1265_vm6, %v8836_v48  ;;  %v5955_v48 = vor.u32 %v7634_v12, %v5954_v11  ;;  %v5943_v40 = vor.u32 %v7629_v38, %v5940_v39  ;;  %v5907_v44 = vor.u32 %v7622_v43, %v5906_v41  ;;  %v7615_v11 = vld [vmem:[#allocation2 + $0x54] sm:$0xf]  ;;  %v5852_v39 = vld [vmem:[#allocation2 + $0x18] sm:$0xf0]  ;;  %v5842_v43 = vld [vmem:[#allocation2] sm:$0xf] }
 0x21b   : > { %1584 = vmatpush.bf16.msra.mxu1 %v5751_v45  ;;  %v5714_v45 = vld [vmem:[#allocation2 + $0x100] sm:$0xf]  ;;  %v7607_v38 = vld [vmem:[#allocation2 + $0x14] sm:$0xf] }
 0x21c   : > { %v5715_v49 = vor.u32 %v7638_v46, %v5714_v45  ;;  %v5855_v41 = vor.u32 %v7607_v38, %v5852_v39  ;;  %v7605_v45 = vld [vmem:[#allocation2 + $0x4] sm:$0xf]  ;;  %v5844_v46 = vld [vmem:[#allocation2 + $0x8] sm:$0xf0] }
 0x21d   : > { %1574 = vmatpush.bf16.msrb.mxu2 %v5787_v53  ;;  %1600 = vmatpush.bf16.msrb.mxu3 %v5791_v58  ;;  %v7620_v53 = vld [vmem:[#allocation2 + $0x74] sm:$0xf0]  ;;  %v5932_v58 = vld [vmem:[#allocation2 + $0xb8] sm:$0xf0]  ;;  %v7673_v38 = vld [vmem:[#allocation2 + $0x224] sm:$0xf] }
 0x21e   : > { %1562 = vmatpush.bf16.msrb.mxu0 %v5715_v49  ;;  %v5899_v55 = vor.u32 %v7620_v53, %v5898_v52  ;;  %v5935_v60 = vor.u32 %v7627_v57, %v5932_v58  ;;  %v5991_v39 = vld [vmem:[#allocation2 + $0x228] sm:$0xf0] }
 0x21f   : > { %1585 = vmatpush.bf16.msra.mxu1 %v5743_v59  ;;  %v5903_v59 = vor.u32 %v7619_v54, %v5900_v56 }
 0x221   : > { %1575 = vmatpush.bf16.msrb.mxu2 %v5779_v5  ;;  %1601 = vmatpush.bf16.msrb.mxu3 %v5783_v10  ;;  %v5924_v5 = vld [vmem:[#allocation2 + $0xa8] sm:$0xf0]  ;;  %v7616_v10 = vld [vmem:[#allocation2 + $0x54] sm:$0xf0] }
 0x222   : > { %1767 = vmatpush.bf16.msra.mxu0 %v5899_v55  ;;  %v5927_v7 = vor.u32 %v7625_v4, %v5924_v5  ;;  %v6031_v4 = vld [vmem:[#allocation2 + $0x278] sm:$0xf0] }
 0x223   : > { %1586 = vmatpush.bf16.msra.mxu1 %v5735_v15  ;;  %v5916_v15 = vld [vmem:[#allocation2 + $0x98] sm:$0xf0] }
 0x224   : > { %v5919_v3 = vor.u32 %v7623_v14, %v5916_v15  ;;  %v7679_v14 = vld [vmem:[#allocation2 + $0x254] sm:$0xf] }
 0x225   : > { %1780 = vmatpush.bf16.msra.mxu2 %v5963_v9  ;;  %1806 = vmatpush.bf16.msra.mxu3 %v5967_v13  ;;  %v5882_v9 = vld [vmem:[#allocation2 + $0x50] sm:$0xf]  ;;  %v5884_v13 = vld [vmem:[#allocation2 + $0x58] sm:$0xf0] }
 0x226   : > { %1768 = vmatpush.bf16.msra.mxu0 %v5891_v1  ;;  %v5883_v12 = vor.u32 %v7616_v10, %v5882_v9  ;;  %v5887_v16 = vor.u32 %v7615_v11, %v5884_v13  ;;  %v7683_v1 = vld [vmem:[#allocation2 + $0x274] sm:$0xf]  ;;  %v6023_v10 = vld [vmem:[#allocation2 + $0x268] sm:$0xf0]  ;;  %v7680_v13 = vld [vmem:[#allocation2 + $0x254] sm:$0xf0] }
 0x227   : > { %1587 = vmatpush.bf16.msra.mxu1 %v5727_v22  ;;  %v5908_v22 = vld [vmem:[#allocation2 + $0x88] sm:$0xf0]  ;;  %v6034_v5 = vor.u32 %v7683_v1, %v6031_v4  ;;  %v7694_v1 = vld [vmem:[#allocation2 + $0x2c4] sm:$0xf0] }
 0x228   : > { %v5975_v4 = vld [vmem:[#allocation2 + $0x208] sm:$0xf0] }
 0x229   : > { %1781 = vmatpush.bf16.msra.mxu2 %v5955_v48  ;;  %1807 = vmatpush.bf16.msra.mxu3 %v5959_v21  ;;  %v7613_v48 = vld [vmem:[#allocation2 + $0x44] sm:$0xf] }
 0x22a   : > { %1769 = vmatpush.bf16.msra.mxu0 %v5883_v12  ;;  %v7621_v21 = vld [vmem:[#allocation2 + $0x84] sm:$0xf]  ;;  %v5879_v8 = vor.u32 %v7613_v48, %v5876_v20  ;;  %v6013_v12 = vld [vmem:[#allocation2 + $0x250] sm:$0xf]  ;;  %v6007_v20 = vld [vmem:[#allocation2 + $0x248] sm:$0xf0] }
 0x22b   : > { %1588 = vmatpush.bf16.msra.mxu1 %v5719_v51  ;;  %v5911_v23 = vor.u32 %v7621_v21, %v5908_v22  ;;  %v5847_v51 = vor.u32 %v7605_v45, %v5844_v46  ;;  %v6014_v15 = vor.u32 %v7680_v13, %v6013_v12  ;;  %v7677_v48 = vld [vmem:[#allocation2 + $0x244] sm:$0xf]  ;;  %v5997_v22 = vld [vmem:[#allocation2 + $0x230] sm:$0xf]  ;;  %v7691_v12 = vld [vmem:[#allocation2 + $0x2b4] sm:$0xf] }
 0x22c   : > { %v6010_v21 = vor.u32 %v7677_v48, %v6007_v20  ;;  %v5981_v46 = vld [vmem:[#allocation2 + $0x210] sm:$0xf]  ;;  %v6055_v20 = vld [vmem:[#allocation2 + $0x2a8] sm:$0xf0] }
 0x22d   : > { %1782 = vmatpush.bf16.msra.mxu2 %v5947_v24  ;;  %1808 = vmatpush.bf16.msra.mxu3 %v5951_v27  ;;  %v5866_v24 = vld [vmem:[#allocation2 + $0x30] sm:$0xf] }
 0x22e   : > { %1770 = vmatpush.bf16.msra.mxu0 %v5875_v19  ;;  %v5867_v27 = vor.u32 %v7612_v25, %v5866_v24  ;;  %v6006_v19 = vor.u32 %v7678_v18, %v6005_v17  ;;  %v7700_v25 = vld [vmem:[#allocation2 + $0x2f4] sm:$0xf0]  ;;  %v7689_v17 = vld [vmem:[#allocation2 + $0x2a4] sm:$0xf] }
 0x22f   : > { %1793 = vmatpush.bf16.msrb.mxu1 %v5903_v59 }
 0x231   : > { %1783 = vmatpush.bf16.msra.mxu2 %v5939_v28  ;;  %1809 = vmatpush.bf16.msra.mxu3 %v5943_v40  ;;  %v5868_v28 = vld [vmem:[#allocation2 + $0x38] sm:$0xf0] }
 0x232   : > { %v5871_v29 = vor.u32 %v7611_v26, %v5868_v28  ;;  %1771 = vmatpush.bf16.msra.mxu0 %v5867_v27  ;;  %v7675_v26 = vld [vmem:[#allocation2 + $0x234] sm:$0xf]  ;;  %v5999_v27 = vld [vmem:[#allocation2 + $0x238] sm:$0xf0] }
 0x233   : > { %1794 = vmatpush.bf16.msrb.mxu1 %v5895_v6  ;;  %v7682_v6 = vld [vmem:[#allocation2 + $0x264] sm:$0xf0] }
 0x235   : > { %1784 = vmatpush.bf16.msra.mxu2 %v5931_v31  ;;  %1810 = vmatpush.bf16.msra.mxu3 %v5935_v60  ;;  %v7610_v31 = vld [vmem:[#allocation2 + $0x24] sm:$0xf0] }
 0x236   : > { %v5859_v33 = vor.u32 %v7610_v31, %v5858_v30  ;;  %v7699_v30 = vld [vmem:[#allocation2 + $0x2f4] sm:$0xf]  ;;  %v6095_v31 = vld [vmem:[#allocation2 + $0x2f8] sm:$0xf0] }
 0x237   : > { %1795 = vmatpush.bf16.msrb.mxu1 %v5887_v16  ;;  %v6015_v16 = vld [vmem:[#allocation2 + $0x258] sm:$0xf0] }
 0x238   : > { %1772 = vmatpush.bf16.msra.mxu0 %v5859_v33  ;;  %v5989_v33 = vld [vmem:[#allocation2 + $0x220] sm:$0xf] }
 0x239   : > { %1785 = vmatpush.bf16.msra.mxu2 %v5923_v34  ;;  %1811 = vmatpush.bf16.msra.mxu3 %v5927_v7  ;;  %v5860_v34 = vld [vmem:[#allocation2 + $0x28] sm:$0xf0]  ;;  %v7681_v7 = vld [vmem:[#allocation2 + $0x264] sm:$0xf] }
 0x23a   : > { %v5863_v35 = vor.u32 %v7609_v32, %v5860_v34  ;;  %v6026_v11 = vor.u32 %v7681_v7, %v6023_v10  ;;  %v6098_v32 = vor.u32 %v7699_v30, %v6095_v31  ;;  %v7674_v34 = vld [vmem:[#allocation2 + $0x224] sm:$0xf0]  ;;  %v6071_v7 = vld [vmem:[#allocation2 + $0x2c8] sm:$0xf0]  ;;  %v6061_v10 = vld [vmem:[#allocation2 + $0x2b0] sm:$0xf] }
 0x23b   : > { %1796 = vmatpush.bf16.msrb.mxu1 %v5879_v8  ;;  %v7676_v8 = vld [vmem:[#allocation2 + $0x234] sm:$0xf0]  ;;  %v6037_v31 = vld [vmem:[#allocation2 + $0x280] sm:$0xf] }
 0x23c   : > { %v5998_v24 = vor.u32 %v7676_v8, %v5997_v22  ;;  %v6045_v22 = vld [vmem:[#allocation2 + $0x290] sm:$0xf]  ;;  %v7688_v8 = vld [vmem:[#allocation2 + $0x294] sm:$0xf0] }
 0x23d   : > { %1786 = vmatpush.bf16.msra.mxu2 %v5915_v37  ;;  %1812 = vmatpush.bf16.msra.mxu3 %v5919_v3  ;;  %v7608_v37 = vld [vmem:[#allocation2 + $0x14] sm:$0xf0]  ;;  %v6018_v3 = vor.u32 %v7679_v14, %v6015_v16  ;;  %v6063_v14 = vld [vmem:[#allocation2 + $0x2b8] sm:$0xf0]  ;;  %v6053_v16 = vld [vmem:[#allocation2 + $0x2a0] sm:$0xf] }
 0x23e   : > { %v5851_v40 = vor.u32 %v7608_v37, %v5850_v36  ;;  %v5990_v36 = vor.u32 %v7674_v34, %v5989_v33  ;;  %v7698_v37 = vld [vmem:[#allocation2 + $0x2e4] sm:$0xf0]  ;;  %v7685_v33 = vld [vmem:[#allocation2 + $0x284] sm:$0xf] }
 0x23f   : > { %1797 = vmatpush.bf16.msrb.mxu1 %v5871_v29  ;;  %v6002_v29 = vor.u32 %v7675_v26, %v5999_v27  ;;  %v6047_v26 = vld [vmem:[#allocation2 + $0x298] sm:$0xf0] }
 0x240   : > { %1773 = vmatpush.bf16.msra.mxu0 %v5851_v40 }
 0x241   : > { %1787 = vmatpush.bf16.msra.mxu2 %v5907_v44  ;;  %1813 = vmatpush.bf16.msra.mxu3 %v5911_v23  ;;  %v7606_v44 = vld [vmem:[#allocation2 + $0x4] sm:$0xf0]  ;;  %v6093_v23 = vld [vmem:[#allocation2 + $0x2f0] sm:$0xf] }
 0x242   : > { %v5843_v47 = vor.u32 %v7606_v44, %v5842_v43  ;;  %v6094_v28 = vor.u32 %v7700_v25, %v6093_v23  ;;  %v7697_v43 = vld [vmem:[#allocation2 + $0x2e4] sm:$0xf]  ;;  %v6087_v44 = vld [vmem:[#allocation2 + $0x2e8] sm:$0xf0]  ;;  %v7687_v23 = vld [vmem:[#allocation2 + $0x294] sm:$0xf] }
 0x243   : > { %1798 = vmatpush.bf16.msrb.mxu1 %v5863_v35  ;;  %v6085_v35 = vld [vmem:[#allocation2 + $0x2e0] sm:$0xf]  ;;  %v6090_v45 = vor.u32 %v7697_v43, %v6087_v44  ;;  %v6050_v30 = vor.u32 %v7687_v23, %v6047_v26  ;;  %v7746_v26 = vld [vmem:[#allocation5 + $0x164] sm:$0xf0] }
 0x244   : > { %1774 = vmatpush.bf16.msra.mxu0 %v5843_v47  ;;  %v6086_v40 = vor.u32 %v7698_v37, %v6085_v35  ;;  %v7672_v47 = vld [vmem:[#allocation2 + $0x214] sm:$0xf0]  ;;  %v6039_v35 = vld [vmem:[#allocation2 + $0x288] sm:$0xf0] }
 0x247   : > { %1799 = vmatpush.bf16.msrb.mxu1 %v5855_v41  ;;  %v5994_v41 = vor.u32 %v7673_v38, %v5991_v39  ;;  %v6042_v38 = vor.u32 %v7685_v33, %v6039_v35  ;;  %v6218_v35 = vld [vmem:[#allocation5 + $0x1e0] sm:$0xf] }
 0x24b   : > { %1800 = vmatpush.bf16.msrb.mxu1 %v5847_v51  ;;  %v7696_v51 = vld [vmem:[#allocation2 + $0x2d4] sm:$0xf0] }
 0x287   : > { %v1278_v49 = vpop.f32.mrf.mxu1  ;;  %v1356_v50 = vpop.f32.mrf.mxu3 }
 0x288   : > { %v1361_v52 = vpack.c.bf16 %v1356_v50, %v1356_v50  ;;  %v1291_v53 = vpop.f32.mrf.mxu2  ;;  %v1295_v61 = vpack.c.bf16 %v1278_v49, %v1278_v49  ;;  %v6077_v49 = vld [vmem:[#allocation2 + $0x2d0] sm:$0xf]  ;;  %v5982_v50 = vor.u32 %v7672_v47, %v5981_v46 }
 0x289   : > { %v1296_v57 = vpack.c.bf16 %v1291_v53, %v1291_v53  ;;  %v5983_v53 = vld [vmem:[#allocation2 + $0x218] sm:$0xf0] }
 0x28a   : > { %1576 = vmatmul.bf16.vlgmr.msrb.gmra.mxu2 %v1361_v52  ;;  %1602 = vmatmul.bf16.vlgmr.msrb.gmra.mxu3 %v1361_v52  ;;  %v7671_v52 = vld [vmem:[#allocation2 + $0x214] sm:$0xf] }
 0x28b   : > { %1831 = vmatpush.bf16.msrb.mxu2 %v8844_v62  ;;  %v6029_v62 = vld [vmem:[#allocation2 + $0x270] sm:$0xf]  ;;  %2058 = vmatpush.bf16.msrb.mxu3 %v6094_v28 }
 0x28c   : > { %v6030_v2 = vor.u32 %v7684_v0, %v6029_v62 }
 0x28f   : > { %v1280_v54 = vpop.f32.mrf.mxu1  ;;  %v1358_v55 = vpop.f32.mrf.mxu3  ;;  %2059 = vmatpush.bf16.msrb.mxu3 %v6086_v40 }
 0x290   : > { %v1293_v56 = vpop.f32.mrf.mxu2  ;;  %v6078_v54 = vor.u32 %v7696_v51, %v6077_v49  ;;  %v5986_v55 = vor.u32 %v7671_v52, %v5983_v53 }
 0x291   : > { %v7695_v56 = vld [vmem:[#allocation2 + $0x2d4] sm:$0xf] }
 0x293   : > { %2060 = vmatpush.bf16.msrb.mxu3 %v6078_v54 }
 0x297   : > { %v1343_v58 = vpop.f32.mrf.mxu1 }
 0x298   : > { %v1360_v59 = vpack.c.bf16 %v1343_v58, %v1343_v58 }
 0x29a   : > { %1563 = vmatmul.bf16.vlgmr.msrb.gmra.mxu0 %v1360_v59  ;;  %1589 = vmatmul.bf16.vlgmr.msra.gmra.mxu1 %v1360_v59  ;;  %v5973_v59 = vld [vmem:[#allocation2 + $0x200] sm:$0xf] }
 0x29b   : > { %1788 = vmatmul.bf16.vlgmr.msra.gmra.mxu2 %v1296_v57  ;;  %1814 = vmatmul.bf16.vlgmr.msra.gmra.mxu3 %v1296_v57  ;;  %v6079_v57 = vld [vmem:[#allocation2 + $0x2d8] sm:$0xf0] }
 0x29c   : > { %1844 = vmatpush.bf16.msra.mxu2 %v8829_v42  ;;  %2045 = vmatpush.bf16.msra.mxu1 %v6030_v2  ;;  %v6021_v42 = vld [vmem:[#allocation2 + $0x260] sm:$0xf]  ;;  %v6082_v58 = vor.u32 %v7695_v56, %v6079_v57  ;;  %v7669_v2 = vld [vmem:[#allocation2 + $0x204] sm:$0xf] }
 0x29d   : > { %2071 = vmatpush.bf16.msrb.mxu0 %v6034_v5  ;;  %v6022_v9 = vor.u32 %v7682_v6, %v6021_v42  ;;  %v5978_v42 = vor.u32 %v7669_v2, %v5975_v4  ;;  %v7693_v6 = vld [vmem:[#allocation2 + $0x2c4] sm:$0xf] }
 0x29f   : > { %v1345_v60 = vpop.f32.mrf.mxu1 }
 0x2a0   : > { %2046 = vmatpush.bf16.msra.mxu1 %v6022_v9  ;;  %v7670_v60 = vld [vmem:[#allocation2 + $0x204] sm:$0xf0]  ;;  %v6074_v9 = vor.u32 %v7693_v6, %v6071_v7 }
 0x2a1   : > { %2072 = vmatpush.bf16.msrb.mxu0 %v6026_v11  ;;  %v5974_v0 = vor.u32 %v7670_v60, %v5973_v59  ;;  %v7692_v11 = vld [vmem:[#allocation2 + $0x2b4] sm:$0xf0] }
 0x2a2   : > { %v6062_v13 = vor.u32 %v7692_v11, %v6061_v10 }
 0x2a4   : > { %2047 = vmatpush.bf16.msra.mxu1 %v6014_v15  ;;  %v6066_v15 = vor.u32 %v7691_v12, %v6063_v14 }
 0x2a5   : > { %2073 = vmatpush.bf16.msrb.mxu0 %v6018_v3  ;;  %v7690_v3 = vld [vmem:[#allocation2 + $0x2a4] sm:$0xf0] }
 0x2a8   : > { %2048 = vmatpush.bf16.msra.mxu1 %v6006_v19  ;;  %v6054_v19 = vor.u32 %v7690_v3, %v6053_v16 }
 0x2a9   : > { %2074 = vmatpush.bf16.msrb.mxu0 %v6010_v21  ;;  %v6058_v21 = vor.u32 %v7689_v17, %v6055_v20 }
 0x2aa   : > { %1775 = vmatmul.bf16.vlgmr.msra.gmra.mxu0 %v1295_v61  ;;  %1801 = vmatmul.bf16.vlgmr.msrb.gmra.mxu1 %v1295_v61  ;;  %v6069_v61 = vld [vmem:[#allocation2 + $0x2c0] sm:$0xf] }
 0x2ab   : > { %5969 = vmatmul.msk.bf16.vlgmr.msrb.gmra.mxu2 %vm1265_vm6, %v5968_v63  ;;  %v6070_v5 = vor.u32 %v7694_v1, %v6069_v61 }
 0x2ac   : > { %2049 = vmatpush.bf16.msra.mxu1 %v5998_v24  ;;  %2084 = vmatpush.bf16.msrb.mxu2 %v6098_v32  ;;  %v7686_v32 = vld [vmem:[#allocation2 + $0x284] sm:$0xf0] }
 0x2ad   : > { %2075 = vmatpush.bf16.msrb.mxu0 %v6002_v29  ;;  %2061 = vmatpush.bf16.msrb.mxu3 %v6070_v5  ;;  %v6046_v29 = vor.u32 %v7688_v8, %v6045_v22  ;;  %v6038_v34 = vor.u32 %v7686_v32, %v6037_v31  ;;  %v6226_v22 = vld [vmem:[#allocation5 + $0x1f0] sm:$0xf]  ;;  %v7764_v8 = vld [vmem:[#allocation5 + $0x1f4] sm:$0xf0]  ;;  %v7763_v31 = vld [vmem:[#allocation5 + $0x1f4] sm:$0xf] }
 0x2ae   : > { %v6228_v32 = vld [vmem:[#allocation5 + $0x1f8] sm:$0xf0] }
 0x2b0   : > { %2050 = vmatpush.bf16.msra.mxu1 %v5990_v36  ;;  %2085 = vmatpush.bf16.msrb.mxu2 %v6090_v45 }
 0x2b1   : > { %2076 = vmatpush.bf16.msrb.mxu0 %v5994_v41  ;;  %2062 = vmatpush.bf16.msrb.mxu3 %v6062_v13 }
 0x2b4   : > { %2051 = vmatpush.bf16.msra.mxu1 %v5982_v50  ;;  %2086 = vmatpush.bf16.msrb.mxu2 %v6082_v58 }
 0x2b5   : > { %2077 = vmatpush.bf16.msrb.mxu0 %v5986_v55  ;;  %2063 = vmatpush.bf16.msrb.mxu3 %v6054_v19 }
 0x2b8   : > { %2052 = vmatpush.bf16.msra.mxu1 %v5974_v0  ;;  %2087 = vmatpush.bf16.msrb.mxu2 %v6074_v9  ;;  %v2113_v9 = vld [vmem:[%s9441_s1] sm:$0x3]  ;;  %s5404_s1 = sshll.u32 %s5400_s30, 4  ;;  %s5405_s1 = int_to_ptr.hbm [resolvable:$true] %s5404_s1 }
 0x2b9   : > { %2078 = vmatpush.bf16.msrb.mxu0 %v5978_v42  ;;  %2064 = vmatpush.bf16.msrb.mxu3 %v6046_v29  ;;  %v2115_v12 = vperm.slane %v2113_v9, 0  ;;  %v2116_v13 = vperm.slane %v2113_v9, 1  ;;  %v6227_v29 = vor.u32 %v7764_v8, %v6226_v22  ;;  %v7757_v9 = vld [vmem:[#allocation5 + $0x1c4] sm:$0xf]  ;;  %v6186_v22 = vld [vmem:[#allocation5 + $0x1a0] sm:$0xf] }
 0x2ba   : > { %v7754_v8 = vld [vmem:[#allocation5 + $0x1a4] sm:$0xf0] }
 0x2bb   : > { %5970 = vmatmul.msk.bf16.vlgmr.msra.gmra.mxu2 %vm1265_vm6, %v5968_v63 }
 0x2bc   : > { %2088 = vmatpush.bf16.msrb.mxu2 %v6066_v15 }
 0x2bd   : > { %2065 = vmatpush.bf16.msrb.mxu3 %v6038_v34 }
 0x2c0   : > { %2089 = vmatpush.bf16.msrb.mxu2 %v6058_v21  ;;  %v7748_v21 = vld [vmem:[#allocation5 + $0x174] sm:$0xf0] }
 0x2c4   : > { %2090 = vmatpush.bf16.msrb.mxu2 %v6050_v30  ;;  %v6164_v30 = vld [vmem:[#allocation5 + $0x178] sm:$0xf0] }
 0x2c8   : > { %2091 = vmatpush.bf16.msrb.mxu2 %v6042_v38  ;;  %v6101_v38 = vld [vmem:[%s9442_s28 + $0x2] sm:$0x3] }
 0x30d   : > { %v1577_v63 = vpop.f32.mrf.mxu2  ;;  %v1603_v62 = vpop.f32.mrf.mxu3 }
 0x315   : > { %v1579_v18 = vpop.f32.mrf.mxu2  ;;  %v1605_v48 = vpop.f32.mrf.mxu3 }
 0x316   : > { %v6162_v48 = vld [vmem:[#allocation5 + $0x170] sm:$0xf] }
 0x317   : > { %v1564_v24 = vpop.f32.mrf.mxu0  ;;  %v1590_v25 = vpop.f32.mrf.mxu1 }
 0x318   : > { %v1578_v27 = vadd.f32 %v1577_v63, %v1564_v24  ;;  %v1604_v28 = vadd.f32 %v1603_v62, %v1590_v25  ;;  %v2099_v62 = vld [vmem:[%s9440_s9] sm:$0x3] }
 0x319   : > { %v2101_v4 = vperm.slane %v2099_v62, 0  ;;  %v2102_v42 = vperm.slane %v2099_v62, 1  ;;  %v6154_v25 = vld [vmem:[#allocation5 + $0x160] sm:$0xf] }
 0x31a   : > { %v6202_v62 = vld [vmem:[#allocation5 + $0x1c0] sm:$0xf] }
 0x31e   : > { %v1789_v36 = vpop.f32.mrf.mxu2  ;;  %v1815_v37 = vpop.f32.mrf.mxu3 }
 0x31f   : > { %v1566_v39 = vpop.f32.mrf.mxu0  ;;  %v1592_v40 = vpop.f32.mrf.mxu1 }
 0x320   : > { %v6146_v39 = vld [vmem:[#allocation5 + $0x150] sm:$0xf] }
 0x326   : > { %v1791_v41 = vpop.f32.mrf.mxu2  ;;  %v1817_v43 = vpop.f32.mrf.mxu3 }
 0x327   : > { %v1776_v44 = vpop.f32.mrf.mxu0  ;;  %v1802_v45 = vpop.f32.mrf.mxu1  ;;  %v7745_v41 = vld [vmem:[#allocation5 + $0x164] sm:$0xf]  ;;  %v6231_v43 = vor.u32 %v7763_v31, %v6228_v32  ;;  %v6188_v31 = vld [vmem:[#allocation5 + $0x1a8] sm:$0xf0]  ;;  %v7736_v32 = vld [vmem:[#allocation5 + $0x114] sm:$0xf0] }
 0x328   : > { %v1777_v46 = vadd.f32 %v1776_v44, %v1578_v27  ;;  %v1803_v47 = vadd.f32 %v1802_v45, %v1604_v28  ;;  %v7747_v27 = vld [vmem:[#allocation5 + $0x174] sm:$0xf]  ;;  %v6163_v28 = vor.u32 %v7748_v21, %v6162_v48  ;;  %v6155_v44 = vor.u32 %v7746_v26, %v6154_v25  ;;  %v6132_v48 = vld [vmem:[#allocation5 + $0x138] sm:$0xf0]  ;;  %v7738_v21 = vld [vmem:[#allocation5 + $0x124] sm:$0xf0] }
 0x329   : > { %v6167_v40 = vor.u32 %v7747_v27, %v6164_v30  ;;  %v7737_v25 = vld [vmem:[#allocation5 + $0x124] sm:$0xf] }
 0x32a   : > { %v1790_v49 = vadd.f32 %v1789_v36, %v1777_v46  ;;  %v1816_v50 = vadd.f32 %v1815_v37, %v1803_v47  ;;  %v7762_v36 = vld [vmem:[#allocation5 + $0x1e4] sm:$0xf0]  ;;  %v2123_v37 = vld [vmem:[%s9442_s28] sm:$0x3]  ;;  %v6156_v46 = vld [vmem:[#allocation5 + $0x168] sm:$0xf0] }
 0x32b   : > { %v6219_v45 = vor.u32 %v7762_v36, %v6218_v35  ;;  %v7761_v47 = vld [vmem:[#allocation5 + $0x1e4] sm:$0xf]  ;;  %v6178_v35 = vld [vmem:[#allocation5 + $0x190] sm:$0xf]  ;;  %v7752_v36 = vld [vmem:[#allocation5 + $0x194] sm:$0xf0] }
 0x32c   : > { %v7753_v30 = vld [vmem:[#allocation5 + $0x1a4] sm:$0xf] }
 0x32e   : > { %v1833_v51 = vpop.f32.mrf.mxu2 }
 0x32f   : > { %v1850_v52 = vpack.c.bf16 %v1833_v51, %v1833_v51  ;;  %v1778_v53 = vpop.f32.mrf.mxu0  ;;  %v1804_v54 = vpop.f32.mrf.mxu1  ;;  %v6210_v51 = vld [vmem:[#allocation5 + $0x1d0] sm:$0xf] }
 0x330   : > { %v6138_v53 = vld [vmem:[#allocation5 + $0x140] sm:$0xf]  ;;  %v6159_v54 = vor.u32 %v7745_v41, %v6156_v46  ;;  %v6191_v41 = vor.u32 %v7753_v30, %v6188_v31  ;;  %v7751_v46 = vld [vmem:[#allocation5 + $0x194] sm:$0xf]  ;;  %v7726_v30 = vld [vmem:[#allocation5 + $0xc4] sm:$0xf0] }
 0x331   : > { %2053 = vmatmul.bf16.vlgmr.msra.gmra.mxu1 %v1850_v52  ;;  %2079 = vmatmul.bf16.vlgmr.msrb.gmra.mxu0 %v1850_v52  ;;  %v7760_v52 = vld [vmem:[#allocation5 + $0x1d4] sm:$0xf0] }
 0x336   : > { %v1835_v55 = vpop.f32.mrf.mxu2 }
 0x337   : > { %v7743_v55 = vld [vmem:[#allocation5 + $0x154] sm:$0xf] }
 0x33e   : > { %v1846_v56 = vpop.f32.mrf.mxu2 }
 0x33f   : > { %v1851_v57 = vpack.c.bf16 %v1846_v56, %v1846_v56 }
 0x341   : > { %2066 = vmatmul.bf16.vlgmr.msrb.gmra.mxu3 %v1851_v57  ;;  %2092 = vmatmul.bf16.vlgmr.msrb.gmra.mxu2 %v1851_v57 }
 0x346   : > { %v1848_v58 = vpop.f32.mrf.mxu2 }
 0x347   : > { %v6211_v58 = vor.u32 %v7760_v52, %v6210_v51  ;;  %v7750_v51 = vld [vmem:[#allocation5 + $0x184] sm:$0xf0]  ;;  %v7716_v52 = vld [vmem:[#allocation5 + $0x74] sm:$0xf0] }
 0x3ae   : > { %v2054_v59 = vpop.f32.mrf.mxu1  ;;  %v2080_v60 = vpop.f32.mrf.mxu0 }
 0x3b6   : > { %v2056_v61 = vpop.f32.mrf.mxu1  ;;  %v2082_v63 = vpop.f32.mrf.mxu0 }
 0x3b7   : > { %v6212_v61 = vld [vmem:[#allocation5 + $0x1d8] sm:$0xf0]  ;;  %v7742_v63 = vld [vmem:[#allocation5 + $0x144] sm:$0xf0] }
 0x3c4   : > { %v2067_v0 = vpop.f32.mrf.mxu3  ;;  %v2093_v1 = vpop.f32.mrf.mxu2 }
 0x3c5   : > { %v2068_v2 = vadd.f32 %v2067_v0, %v2054_v59  ;;  %v2094_v5 = vadd.f32 %v2093_v1, %v2080_v60  ;;  %v6148_v59 = vld [vmem:[#allocation5 + $0x158] sm:$0xf0]  ;;  %v7759_v60 = vld [vmem:[#allocation5 + $0x1d4] sm:$0xf]  ;;  %v7758_v0 = vld [vmem:[#allocation5 + $0x1c4] sm:$0xf0] }
 0x3c6   : > { %v6130_v1 = vld [vmem:[#allocation5 + $0x130] sm:$0xf] }
 0x3c7   : > { %v2097_v6 = vadd.f32 %v2068_v2, %v1790_v49  ;;  %v2098_v7 = vadd.f32 %v2094_v5, %v1816_v50  ;;  %v6220_v49 = vld [vmem:[#allocation5 + $0x1e8] sm:$0xf0]  ;;  %v7744_v50 = vld [vmem:[#allocation5 + $0x154] sm:$0xf0]  ;;  %v6151_v2 = vor.u32 %v7743_v55, %v6148_v59  ;;  %v6215_v5 = vor.u32 %v7759_v60, %v6212_v61  ;;  %v6282_v60 = vld [vmem:[#allocation5 + $0x60] sm:$0xf] }
 0x3c8   : > { %v6223_v56 = vor.u32 %v7761_v47, %v6220_v49  ;;  %v6147_v57 = vor.u32 %v7744_v50, %v6146_v39  ;;  %v6180_v47 = vld [vmem:[#allocation5 + $0x198] sm:$0xf0]  ;;  %v6290_v49 = vld [vmem:[#allocation5 + $0x70] sm:$0xf]  ;;  %v6170_v50 = vld [vmem:[#allocation5 + $0x180] sm:$0xf] }
 0x3c9   : > { %v2105_v10 = vadd.f32 %v2101_v4, %v2097_v6  ;;  %v2106_v11 = vadd.f32 %v2102_v42, %v2098_v7  ;;  %v7741_v4 = vld [vmem:[#allocation5 + $0x144] sm:$0xf]  ;;  %v6139_v42 = vor.u32 %v7742_v63, %v6138_v53  ;;  %v6203_v6 = vor.u32 %v7758_v0, %v6202_v62  ;;  %v6140_v7 = vld [vmem:[#allocation5 + $0x148] sm:$0xf0]  ;;  %v6354_v53 = vld [vmem:[#allocation5 + $0xf0] sm:$0xf] }
 0x3ca   : > { %v6171_v61 = vor.u32 %v7750_v51, %v6170_v50  ;;  %v7715_v63 = vld [vmem:[#allocation5 + $0x74] sm:$0xf]  ;;  %v7749_v62 = vld [vmem:[#allocation5 + $0x184] sm:$0xf]  ;;  %v6172_v0 = vld [vmem:[#allocation5 + $0x188] sm:$0xf0] }
 0x3cb   : > { %vm2107_vm7 = vcmp.gt.f32.partialorder %v2105_v10, 0.0  ;;  %v2109_v14 = vmul.f32 0.2, %v2105_v10  ;;  %vm2108_vm8 = vcmp.gt.f32.partialorder %v2106_v11, 0.0  ;;  %v2110_v15 = vmul.f32 0.2, %v2106_v11 }
 0x3cc   : > { %v2069_v16 = vpop.f32.mrf.mxu3  ;;  %v2095_v3 = vpop.f32.mrf.mxu2  ;;  %v6314_v50 = vld [vmem:[#allocation5 + $0xa0] sm:$0xf]  ;;  %v7722_v51 = vld [vmem:[#allocation5 + $0xa4] sm:$0xf0] }
 0x3cd   : > { %v2111_v17 = vsel %vm2107_vm7, %v2105_v10, %v2109_v14  ;;  %v2112_v18 = vsel %vm2108_vm8, %v2106_v11, %v2110_v15  ;;  %v6204_v10 = vld [vmem:[#allocation5 + $0x1c8] sm:$0xf0]  ;;  %v7740_v11 = vld [vmem:[#allocation5 + $0x134] sm:$0xf0]  ;;  %v6122_v14 = vld [vmem:[#allocation5 + $0x120] sm:$0xf]  ;;  %v6143_v15 = vor.u32 %v7741_v4, %v6140_v7 }
 0x3ce   : > { %v2119_v19 = vadd.f32 %v2115_v12, %v2111_v17  ;;  %v2120_v20 = vadd.f32 %v2116_v13, %v2112_v18  ;;  %v6194_v12 = vld [vmem:[#allocation5 + $0x1b0] sm:$0xf]  ;;  %v7756_v13 = vld [vmem:[#allocation5 + $0x1b4] sm:$0xf0]  ;;  %v7739_v16 = vld [vmem:[#allocation5 + $0x134] sm:$0xf]  ;;  %v6207_v3 = vor.u32 %v7757_v9, %v6204_v10  ;;  %v6131_v17 = vor.u32 %v7740_v11, %v6130_v1 }
 0x3cf   : > { %v6195_v18 = vor.u32 %v7756_v13, %v6194_v12  ;;  %v6123_v27 = vor.u32 %v7738_v21, %v6122_v14  ;;  %v6291_v1 = vor.u32 %v7716_v52, %v6290_v49  ;;  %v6292_v4 = vld [vmem:[#allocation5 + $0x78] sm:$0xf0]  ;;  %v6346_v7 = vld [vmem:[#allocation5 + $0xe0] sm:$0xf]  ;;  %v7730_v9 = vld [vmem:[#allocation5 + $0xe4] sm:$0xf0]  ;;  %v6175_v11 = vor.u32 %v7749_v62, %v6172_v0 }
 0x3d0   : > { %v2121_v23 = vpack.c.bf16 %v2119_v19, %v2119_v19  ;;  %v2122_v24 = vpack.c.bf16 %v2120_v20, %v2120_v20  ;;  %v7755_v19 = vld [vmem:[#allocation5 + $0x1b4] sm:$0xf]  ;;  %v6196_v20 = vld [vmem:[#allocation5 + $0x1b8] sm:$0xf0]  ;;  %v6274_v12 = vld [vmem:[#allocation5 + $0x50] sm:$0xf]  ;;  %v6295_v13 = vor.u32 %v7715_v63, %v6292_v4 }
 0x3d1   : > { %v6199_v26 = vor.u32 %v7755_v19, %v6196_v20  ;;  %v7713_v14 = vld [vmem:[#allocation5 + $0x64] sm:$0xf]  ;;  %v7712_v19 = vld [vmem:[#allocation5 + $0x54] sm:$0xf0]  ;;  %v6338_v20 = vld [vmem:[#allocation5 + $0xd0] sm:$0xf] }
 0x3d2   : > { %v8864_v33 = vsel %vm2128_vm9, %v2121_v23, 0  ;;  %v8866_v34 = vsel %vm2128_vm9, %v2122_v24, 0  ;;  %v6114_v23 = vld [vmem:[#allocation5 + $0x110] sm:$0xf]  ;;  %v6135_v24 = vor.u32 %v7739_v16, %v6132_v48  ;;  %v6348_v48 = vld [vmem:[#allocation5 + $0xe8] sm:$0xf0] }
 0x3d3   : > { %2142 = vmatpush.bf16.msrb.mxu1 %v8864_v33  ;;  %2155 = vmatpush.bf16.msra.mxu3 %v8866_v34  ;;  %v7728_v21 = vld [vmem:[#allocation5 + $0xd4] sm:$0xf0]  ;;  %v7709_v52 = vld [vmem:[#allocation5 + $0x44] sm:$0xf]  ;;  %v6306_v63 = vld [vmem:[#allocation5 + $0x90] sm:$0xf] }
 0x3d4   : > { %2207 = vmatpush.bf16.msra.mxu0 %v8864_v33  ;;  %2220 = vmatpush.bf16.msra.mxu2 %v8866_v34  ;;  %v7720_v62 = vld [vmem:[#allocation5 + $0x94] sm:$0xf0]  ;;  %v7707_v0 = vld [vmem:[#allocation5 + $0x34] sm:$0xf] }
 0x3d6   : > { %6100 = vmatmul.msk.bf16.vlgmr.msra.gmra.mxu3 %vm2124_vm10, %v2123_v37  ;;  %6099 = vmatmul.msk.bf16.vlgmr.msrb.gmra.mxu1 %vm2124_vm10, %v2123_v37  ;;  %v6106_v37 = vld [vmem:[#allocation5 + $0x100] sm:$0xf] }
 0x3d7   : > { %2421 = vmatpush.bf16.msra.mxu1 %v6163_v28  ;;  %2434 = vmatpush.bf16.msrb.mxu3 %v6227_v29  ;;  %v6187_v28 = vor.u32 %v7754_v8, %v6186_v22  ;;  %v6124_v29 = vld [vmem:[#allocation5 + $0x128] sm:$0xf0] }
 0x3d8   : > { %6102 = vmatmul.msk.bf16.vlgmr.msra.gmra.mxu0 %vm2124_vm10, %v6101_v38  ;;  %6103 = vmatmul.msk.bf16.vlgmr.msra.gmra.mxu2 %vm2124_vm10, %v6101_v38  ;;  %v7734_v38 = vld [vmem:[#allocation5 + $0x104] sm:$0xf0]  ;;  %v6127_v39 = vor.u32 %v7737_v25, %v6124_v29  ;;  %v6339_v25 = vor.u32 %v7728_v21, %v6338_v20  ;;  %v6330_v29 = vld [vmem:[#allocation5 + $0xc0] sm:$0xf]  ;;  %v7701_v21 = vld [vmem:[#allocation5 + $0x4] sm:$0xf] }
 0x3d9   : > { %2447 = vmatpush.bf16.msrb.mxu0 %v6167_v40  ;;  %2460 = vmatpush.bf16.msrb.mxu2 %v6231_v43  ;;  %v7735_v40 = vld [vmem:[#allocation5 + $0x114] sm:$0xf]  ;;  %v6115_v43 = vor.u32 %v7736_v32, %v6114_v23  ;;  %v6107_v59 = vor.u32 %v7734_v38, %v6106_v37  ;;  %v6275_v23 = vor.u32 %v7712_v19, %v6274_v12  ;;  %v7708_v37 = vld [vmem:[#allocation5 + $0x34] sm:$0xf0]  ;;  %v6322_v38 = vld [vmem:[#allocation5 + $0xb0] sm:$0xf] }
 0x3da   : > { %v6252_v12 = vld [vmem:[#allocation5 + $0x28] sm:$0xf0] }
 0x3db   : > { %2422 = vmatpush.bf16.msra.mxu1 %v6155_v44  ;;  %2435 = vmatpush.bf16.msrb.mxu3 %v6219_v45  ;;  %v6179_v44 = vor.u32 %v7752_v36, %v6178_v35  ;;  %v6116_v45 = vld [vmem:[#allocation5 + $0x118] sm:$0xf0]  ;;  %v6258_v35 = vld [vmem:[#allocation5 + $0x30] sm:$0xf]  ;;  %v6331_v36 = vor.u32 %v7726_v30, %v6330_v29  ;;  %v6316_v19 = vld [vmem:[#allocation5 + $0xa8] sm:$0xf0] }
 0x3dc   : > { %v6119_v55 = vor.u32 %v7735_v40, %v6116_v45  ;;  %v6259_v40 = vor.u32 %v7708_v37, %v6258_v35 }
 0x3dd   : > { %2448 = vmatpush.bf16.msrb.mxu0 %v6159_v54  ;;  %2461 = vmatpush.bf16.msrb.mxu2 %v6223_v56  ;;  %v7732_v54 = vld [vmem:[#allocation5 + $0xf4] sm:$0xf0]  ;;  %v7733_v56 = vld [vmem:[#allocation5 + $0x104] sm:$0xf] }
 0x3df   : > { %2423 = vmatpush.bf16.msra.mxu1 %v6147_v57  ;;  %2436 = vmatpush.bf16.msrb.mxu3 %v6211_v58  ;;  %v6108_v57 = vld [vmem:[#allocation5 + $0x108] sm:$0xf0]  ;;  %v6183_v58 = vor.u32 %v7751_v46, %v6180_v47  ;;  %v6242_v46 = vld [vmem:[#allocation5 + $0x10] sm:$0xf]  ;;  %v7704_v47 = vld [vmem:[#allocation5 + $0x14] sm:$0xf0] }
 0x3e0   : > { %v6111_v10 = vor.u32 %v7733_v56, %v6108_v57  ;;  %v6243_v49 = vor.u32 %v7704_v47, %v6242_v46  ;;  %v6234_v56 = vld [vmem:[#allocation5] sm:$0xf]  ;;  %v7702_v57 = vld [vmem:[#allocation5 + $0x4] sm:$0xf0]  ;;  %v7779_v46 = vld [vmem:[#allocation5 + $0x274] sm:$0xf] }
 0x3e1   : > { %2449 = vmatpush.bf16.msrb.mxu0 %v6151_v2  ;;  %2462 = vmatpush.bf16.msrb.mxu2 %v6215_v5  ;;  %v6355_v2 = vor.u32 %v7732_v54, %v6354_v53  ;;  %v7731_v5 = vld [vmem:[#allocation5 + $0xf4] sm:$0xf]  ;;  %v6315_v53 = vor.u32 %v7722_v51, %v6314_v50  ;;  %v6268_v54 = vld [vmem:[#allocation5 + $0x48] sm:$0xf0]  ;;  %v6423_v47 = vld [vmem:[#allocation5 + $0x278] sm:$0xf0] }
 0x3e2   : > { %v6485_v50 = vld [vmem:[#allocation5 + $0x2f0] sm:$0xf]  ;;  %v7796_v51 = vld [vmem:[#allocation5 + $0x2f4] sm:$0xf0] }
 0x3e3   : > { %2424 = vmatpush.bf16.msra.mxu1 %v6139_v42  ;;  %2437 = vmatpush.bf16.msrb.mxu3 %v6203_v6  ;;  %v6356_v42 = vld [vmem:[#allocation5 + $0xf8] sm:$0xf0]  ;;  %v7714_v6 = vld [vmem:[#allocation5 + $0x64] sm:$0xf0] }
 0x3e4   : > { %v6283_v16 = vor.u32 %v7714_v6, %v6282_v60  ;;  %v6340_v60 = vld [vmem:[#allocation5 + $0xd8] sm:$0xf0] }
 0x3e5   : > { %2450 = vmatpush.bf16.msrb.mxu0 %v6143_v15  ;;  %2463 = vmatpush.bf16.msrb.mxu2 %v6207_v3  ;;  %v6359_v15 = vor.u32 %v7731_v5, %v6356_v42  ;;  %v6347_v3 = vor.u32 %v7730_v9, %v6346_v7  ;;  %v7725_v5 = vld [vmem:[#allocation5 + $0xc4] sm:$0xf]  ;;  %v6332_v42 = vld [vmem:[#allocation5 + $0xc8] sm:$0xf0]  ;;  %v6298_v7 = vld [vmem:[#allocation5 + $0x80] sm:$0xf] }
 0x3e6   : > { %v6335_v6 = vor.u32 %v7725_v5, %v6332_v42  ;;  %v7718_v9 = vld [vmem:[#allocation5 + $0x84] sm:$0xf0]  ;;  %v6405_v5 = vld [vmem:[#allocation5 + $0x250] sm:$0xf]  ;;  %v7776_v42 = vld [vmem:[#allocation5 + $0x254] sm:$0xf0] }
 0x3e7   : > { %2425 = vmatpush.bf16.msra.mxu1 %v6131_v17  ;;  %2438 = vmatpush.bf16.msrb.mxu3 %v6195_v18  ;;  %v6284_v17 = vld [vmem:[#allocation5 + $0x68] sm:$0xf0]  ;;  %v7729_v18 = vld [vmem:[#allocation5 + $0xe4] sm:$0xf] }
 0x3e8   : > { %v6287_v22 = vor.u32 %v7713_v14, %v6284_v17  ;;  %v6351_v8 = vor.u32 %v7729_v18, %v6348_v48  ;;  %v7723_v14 = vld [vmem:[#allocation5 + $0xb4] sm:$0xf]  ;;  %v6244_v17 = vld [vmem:[#allocation5 + $0x18] sm:$0xf0]  ;;  %v7721_v48 = vld [vmem:[#allocation5 + $0xa4] sm:$0xf] }
 0x3e9   : > { %2451 = vmatpush.bf16.msrb.mxu0 %v6135_v24  ;;  %2464 = vmatpush.bf16.msrb.mxu2 %v6199_v26  ;;  %v6266_v24 = vld [vmem:[#allocation5 + $0x40] sm:$0xf]  ;;  %v7711_v26 = vld [vmem:[#allocation5 + $0x54] sm:$0xf]  ;;  %v6319_v20 = vor.u32 %v7721_v48, %v6316_v19  ;;  %v6399_v48 = vld [vmem:[#allocation5 + $0x248] sm:$0xf0] }
 0x3eb   : > { %2426 = vmatpush.bf16.msra.mxu1 %v6123_v27  ;;  %2439 = vmatpush.bf16.msrb.mxu3 %v6187_v28  ;;  %v6276_v27 = vld [vmem:[#allocation5 + $0x58] sm:$0xf0]  ;;  %v7710_v28 = vld [vmem:[#allocation5 + $0x44] sm:$0xf0] }
 0x3ec   : > { %v6279_v31 = vor.u32 %v7711_v26, %v6276_v27  ;;  %v6267_v32 = vor.u32 %v7710_v28, %v6266_v24  ;;  %v6308_v24 = vld [vmem:[#allocation5 + $0x98] sm:$0xf0]  ;;  %v7717_v26 = vld [vmem:[#allocation5 + $0x84] sm:$0xf]  ;;  %v6300_v27 = vld [vmem:[#allocation5 + $0x88] sm:$0xf0] }
 0x3ed   : > { %2452 = vmatpush.bf16.msrb.mxu0 %v6127_v39  ;;  %2465 = vmatpush.bf16.msrb.mxu2 %v6191_v41  ;;  %v7724_v39 = vld [vmem:[#allocation5 + $0xb4] sm:$0xf0]  ;;  %v6303_v28 = vor.u32 %v7717_v26, %v6300_v27  ;;  %v6389_v26 = vld [vmem:[#allocation5 + $0x230] sm:$0xf] }
 0x3ee   : > { %v6323_v41 = vor.u32 %v7724_v39, %v6322_v38  ;;  %v7772_v27 = vld [vmem:[#allocation5 + $0x234] sm:$0xf0] }
 0x3ef   : > { %2427 = vmatpush.bf16.msra.mxu1 %v6115_v43  ;;  %2440 = vmatpush.bf16.msrb.mxu3 %v6179_v44  ;;  %v6250_v43 = vld [vmem:[#allocation5 + $0x20] sm:$0xf]  ;;  %v7706_v44 = vld [vmem:[#allocation5 + $0x24] sm:$0xf0] }
 0x3f0   : > { %v6251_v45 = vor.u32 %v7706_v44, %v6250_v43  ;;  %v6421_v44 = vld [vmem:[#allocation5 + $0x270] sm:$0xf] }
 0x3f1   : > { %2453 = vmatpush.bf16.msrb.mxu0 %v6119_v55  ;;  %2466 = vmatpush.bf16.msrb.mxu2 %v6183_v58  ;;  %v6271_v55 = vor.u32 %v7709_v52, %v6268_v54  ;;  %v7727_v58 = vld [vmem:[#allocation5 + $0xd4] sm:$0xf]  ;;  %v6487_v54 = vld [vmem:[#allocation5 + $0x2f8] sm:$0xf0] }
 0x3f2   : > { %v7795_v52 = vld [vmem:[#allocation5 + $0x2f4] sm:$0xf] }
 0x3f3   : > { %2428 = vmatpush.bf16.msra.mxu1 %v6107_v59  ;;  %2441 = vmatpush.bf16.msrb.mxu3 %v6171_v61  ;;  %v6235_v59 = vor.u32 %v7702_v57, %v6234_v56  ;;  %v6343_v61 = vor.u32 %v7727_v58, %v6340_v60  ;;  %v6413_v56 = vld [vmem:[#allocation5 + $0x260] sm:$0xf]  ;;  %v7778_v57 = vld [vmem:[#allocation5 + $0x264] sm:$0xf0]  ;;  %v7777_v58 = vld [vmem:[#allocation5 + $0x264] sm:$0xf] }
 0x3f4   : > { %v6415_v60 = vld [vmem:[#allocation5 + $0x268] sm:$0xf0] }
 0x3f5   : > { %2454 = vmatpush.bf16.msrb.mxu0 %v6111_v10  ;;  %2467 = vmatpush.bf16.msrb.mxu2 %v6175_v11  ;;  %v7705_v10 = vld [vmem:[#allocation5 + $0x24] sm:$0xf]  ;;  %v6299_v11 = vor.u32 %v7718_v9, %v6298_v7  ;;  %v6406_v7 = vor.u32 %v7776_v42, %v6405_v5  ;;  %v6407_v9 = vld [vmem:[#allocation5 + $0x258] sm:$0xf0]  ;;  %v6367_v42 = vld [vmem:[#allocation5 + $0x208] sm:$0xf0] }
 0x3f6   : > { %v7765_v5 = vld [vmem:[#allocation5 + $0x204] sm:$0xf] }
 0x3f7   : > { %2633 = vmatpush.bf16.msrb.mxu1 %v6291_v1  ;;  %2646 = vmatpush.bf16.msra.mxu3 %v6355_v2  ;;  %v6307_v1 = vor.u32 %v7720_v62, %v6306_v63  ;;  %v6260_v2 = vld [vmem:[#allocation5 + $0x38] sm:$0xf0]  ;;  %v6477_v63 = vld [vmem:[#allocation5 + $0x2e0] sm:$0xf]  ;;  %v7794_v62 = vld [vmem:[#allocation5 + $0x2e4] sm:$0xf0] }
 0x3f8   : > { %v6263_v4 = vor.u32 %v7707_v0, %v6260_v2  ;;  %v7793_v0 = vld [vmem:[#allocation5 + $0x2e4] sm:$0xf]  ;;  %v6479_v2 = vld [vmem:[#allocation5 + $0x2e8] sm:$0xf0] }
 0x3f9   : > { %2659 = vmatpush.bf16.msra.mxu0 %v6295_v13  ;;  %2672 = vmatpush.bf16.msra.mxu2 %v6359_v15  ;;  %v6255_v13 = vor.u32 %v7705_v10, %v6252_v12  ;;  %v6324_v15 = vld [vmem:[#allocation5 + $0xb8] sm:$0xf0]  ;;  %v6469_v10 = vld [vmem:[#allocation5 + $0x2d0] sm:$0xf] }
 0x3fb   : > { %2634 = vmatpush.bf16.msrb.mxu1 %v6283_v16  ;;  %2647 = vmatpush.bf16.msra.mxu3 %v6347_v3  ;;  %v6327_v16 = vor.u32 %v7723_v14, %v6324_v15  ;;  %v7703_v3 = vld [vmem:[#allocation5 + $0x14] sm:$0xf]  ;;  %v6471_v15 = vld [vmem:[#allocation5 + $0x2d8] sm:$0xf0] }
 0x3fc   : > { %v6247_v18 = vor.u32 %v7703_v3, %v6244_v17  ;;  %v7791_v14 = vld [vmem:[#allocation5 + $0x2d4] sm:$0xf]  ;;  %v7774_v17 = vld [vmem:[#allocation5 + $0x244] sm:$0xf0] }
 0x3fd   : > { %2660 = vmatpush.bf16.msra.mxu0 %v6287_v22  ;;  %2673 = vmatpush.bf16.msra.mxu2 %v6351_v8  ;;  %v6236_v22 = vld [vmem:[#allocation5 + $0x8] sm:$0xf0]  ;;  %v7719_v8 = vld [vmem:[#allocation5 + $0x94] sm:$0xf]  ;;  %v6474_v3 = vor.u32 %v7791_v14, %v6471_v15 }
 0x3fe   : > { %v6431_v15 = vld [vmem:[#allocation5 + $0x288] sm:$0xf0] }
 0x3ff   : > { %2635 = vmatpush.bf16.msrb.mxu1 %v6275_v23  ;;  %2648 = vmatpush.bf16.msra.mxu3 %v6339_v25  ;;  %v6239_v23 = vor.u32 %v7701_v21, %v6236_v22  ;;  %v6311_v25 = vor.u32 %v7719_v8, %v6308_v24  ;;  %v6461_v21 = vld [vmem:[#allocation5 + $0x2c0] sm:$0xf]  ;;  %v7790_v22 = vld [vmem:[#allocation5 + $0x2c4] sm:$0xf0]  ;;  %v7789_v8 = vld [vmem:[#allocation5 + $0x2c4] sm:$0xf] }
 0x400   : > { %v6463_v24 = vld [vmem:[#allocation5 + $0x2c8] sm:$0xf0] }
 0x401   : > { %2661 = vmatpush.bf16.msra.mxu0 %v6279_v31  ;;  %2674 = vmatpush.bf16.msra.mxu2 %v6343_v61  ;;  %v6418_v61 = vor.u32 %v7777_v58, %v6415_v60  ;;  %v6375_v58 = vld [vmem:[#allocation5 + $0x218] sm:$0xf0]  ;;  %v7784_v60 = vld [vmem:[#allocation5 + $0x294] sm:$0xf0] }
 0x403   : > { %2636 = vmatpush.bf16.msrb.mxu1 %v6267_v32  ;;  %2649 = vmatpush.bf16.msra.mxu3 %v6331_v36 }
 0x405   : > { %2662 = vmatpush.bf16.msra.mxu0 %v6271_v55  ;;  %2675 = vmatpush.bf16.msra.mxu2 %v6335_v6  ;;  %v6490_v55 = vor.u32 %v7795_v52, %v6487_v54  ;;  %v7775_v6 = vld [vmem:[#allocation5 + $0x254] sm:$0xf]  ;;  %v6447_v52 = vld [vmem:[#allocation5 + $0x2a8] sm:$0xf0]  ;;  %v6373_v54 = vld [vmem:[#allocation5 + $0x210] sm:$0xf] }
 0x406   : > { %v6410_v12 = vor.u32 %v7775_v6, %v6407_v9 }
 0x407   : > { %2637 = vmatpush.bf16.msrb.mxu1 %v6259_v40  ;;  %2650 = vmatpush.bf16.msra.mxu3 %v6323_v41 }
 0x409   : > { %2663 = vmatpush.bf16.msra.mxu0 %v6263_v4  ;;  %2676 = vmatpush.bf16.msra.mxu2 %v6327_v16  ;;  %v6482_v4 = vor.u32 %v7793_v0, %v6479_v2  ;;  %v6397_v16 = vld [vmem:[#allocation5 + $0x240] sm:$0xf]  ;;  %v6439_v0 = vld [vmem:[#allocation5 + $0x298] sm:$0xf0] }
 0x40a   : > { %v6398_v19 = vor.u32 %v7774_v17, %v6397_v16 }
 0x40b   : > { %2638 = vmatpush.bf16.msrb.mxu1 %v6251_v45  ;;  %2651 = vmatpush.bf16.msra.mxu3 %v6315_v53  ;;  %v7780_v45 = vld [vmem:[#allocation5 + $0x274] sm:$0xf0]  ;;  %v6486_v53 = vor.u32 %v7796_v51, %v6485_v50  ;;  %v7785_v50 = vld [vmem:[#allocation5 + $0x2a4] sm:$0xf] }
 0x40d   : > { %2664 = vmatpush.bf16.msra.mxu0 %v6255_v13  ;;  %2677 = vmatpush.bf16.msra.mxu2 %v6319_v20 }
 0x40f   : > { %2639 = vmatpush.bf16.msrb.mxu1 %v6243_v49  ;;  %2652 = vmatpush.bf16.msra.mxu3 %v6307_v1  ;;  %v6426_v49 = vor.u32 %v7779_v46, %v6423_v47  ;;  %v6478_v1 = vor.u32 %v7794_v62, %v6477_v63  ;;  %v6445_v47 = vld [vmem:[#allocation5 + $0x2a0] sm:$0xf]  ;;  %v7783_v62 = vld [vmem:[#allocation5 + $0x294] sm:$0xf] }
 0x410   : > { %v6442_v2 = vor.u32 %v7783_v62, %v6439_v0  ;;  %v6554_v0 = vld [vmem:[#allocation7 + $0x170] sm:$0xf] }
 0x411   : > { %2665 = vmatpush.bf16.msra.mxu0 %v6247_v18  ;;  %2678 = vmatpush.bf16.msra.mxu2 %v6311_v25  ;;  %v7773_v18 = vld [vmem:[#allocation5 + $0x244] sm:$0xf]  ;;  %v6466_v25 = vor.u32 %v7789_v8, %v6463_v24 }
 0x412   : > { %v6402_v20 = vor.u32 %v7773_v18, %v6399_v48 }
 0x413   : > { %2640 = vmatpush.bf16.msrb.mxu1 %v6235_v59  ;;  %2653 = vmatpush.bf16.msra.mxu3 %v6299_v11  ;;  %v6414_v59 = vor.u32 %v7778_v57, %v6413_v56  ;;  %v7792_v11 = vld [vmem:[#allocation5 + $0x2d4] sm:$0xf0]  ;;  %v7767_v56 = vld [vmem:[#allocation5 + $0x214] sm:$0xf] }
 0x414   : > { %v6470_v13 = vor.u32 %v7792_v11, %v6469_v10  ;;  %v6370_v10 = vor.u32 %v7765_v5, %v6367_v42  ;;  %v6429_v11 = vld [vmem:[#allocation5 + $0x280] sm:$0xf]  ;;  %v6618_v5 = vld [vmem:[#allocation7 + $0x1f0] sm:$0xf]  ;;  %v7860_v42 = vld [vmem:[#allocation7 + $0x1f4] sm:$0xf0] }
 0x415   : > { %2666 = vmatpush.bf16.msra.mxu0 %v6239_v23  ;;  %2679 = vmatpush.bf16.msra.mxu2 %v6303_v28  ;;  %v6462_v23 = vor.u32 %v7790_v22, %v6461_v21  ;;  %v7771_v28 = vld [vmem:[#allocation5 + $0x234] sm:$0xf] }
 0x453   : > { %v2144_v29 = vpop.f32.mrf.mxu1 }
 0x454   : > { %v2161_v41 = vpack.c.bf16 %v2144_v29, %v2144_v29  ;;  %v6390_v29 = vor.u32 %v7772_v27, %v6389_v26 }
 0x455   : > { %v2209_v30 = vpop.f32.mrf.mxu0 }
 0x456   : > { %v2226_v31 = vpack.c.bf16 %v2209_v30, %v2209_v30  ;;  %v6391_v30 = vld [vmem:[#allocation5 + $0x238] sm:$0xf0] }
 0x458   : > { %2429 = vmatmul.bf16.vlgmr.msra.gmra.mxu1 %v2226_v31  ;;  %2455 = vmatmul.bf16.vlgmr.msrb.gmra.mxu0 %v2226_v31  ;;  %v6453_v31 = vld [vmem:[#allocation5 + $0x2b0] sm:$0xf] }
 0x459   : > { %2697 = vmatpush.bf16.msra.mxu1 %v8864_v33  ;;  %v2157_v32 = vpop.f32.mrf.mxu3  ;;  %v6360_v33 = vld [vmem:[%s9442_s28 + $0x4] sm:$0x3] }
 0x45a   : > { %v2162_v43 = vpack.c.bf16 %v2157_v32, %v2157_v32  ;;  %v7788_v32 = vld [vmem:[#allocation5 + $0x2b4] sm:$0xf0] }
 0x45b   : > { %v2222_v35 = vpop.f32.mrf.mxu2  ;;  %v2146_v37 = vpop.f32.mrf.mxu1 }
 0x45c   : > { %v2227_v36 = vpack.c.bf16 %v2222_v35, %v2222_v35  ;;  %v6394_v35 = vor.u32 %v7771_v28, %v6391_v30  ;;  %v7787_v37 = vld [vmem:[#allocation5 + $0x2b4] sm:$0xf] }
 0x45d   : > { %v2211_v38 = vpop.f32.mrf.mxu0 }
 0x45e   : > { %2442 = vmatmul.bf16.vlgmr.msrb.gmra.mxu3 %v2227_v36  ;;  %2468 = vmatmul.bf16.vlgmr.msrb.gmra.mxu2 %v2227_v36  ;;  %v6454_v36 = vor.u32 %v7788_v32, %v6453_v31  ;;  %v6455_v38 = vld [vmem:[#allocation5 + $0x2b8] sm:$0xf0] }
 0x45f   : > { %2710 = vmatpush.bf16.msrb.mxu3 %v8866_v34  ;;  %v6422_v34 = vor.u32 %v7780_v45, %v6421_v44  ;;  %2924 = vmatpush.bf16.msrb.mxu2 %v6486_v53  ;;  %v6450_v53 = vor.u32 %v7785_v50, %v6447_v52 }
 0x461   : > { %v2159_v39 = vpop.f32.mrf.mxu3  ;;  %2911 = vmatpush.bf16.msrb.mxu0 %v6422_v34 }
 0x462   : > { %v6381_v39 = vld [vmem:[#allocation5 + $0x220] sm:$0xf] }
 0x463   : > { %v2224_v40 = vpop.f32.mrf.mxu2  ;;  %2925 = vmatpush.bf16.msrb.mxu2 %v6478_v1  ;;  %v6365_v1 = vld [vmem:[#allocation5 + $0x200] sm:$0xf] }
 0x464   : > { %v6458_v40 = vor.u32 %v7787_v37, %v6455_v38 }
 0x465   : > { %2912 = vmatpush.bf16.msrb.mxu0 %v6414_v59  ;;  %v6437_v59 = vld [vmem:[#allocation5 + $0x290] sm:$0xf] }
 0x466   : > { %v6438_v63 = vor.u32 %v7784_v60, %v6437_v59 }
 0x467   : > { %2926 = vmatpush.bf16.msrb.mxu2 %v6470_v13  ;;  %v7781_v13 = vld [vmem:[#allocation5 + $0x284] sm:$0xf] }
 0x468   : > { %2641 = vmatmul.bf16.vlgmr.msrb.gmra.mxu1 %v2161_v41  ;;  %2667 = vmatmul.bf16.vlgmr.msra.gmra.mxu0 %v2161_v41  ;;  %v7770_v41 = vld [vmem:[#allocation5 + $0x224] sm:$0xf0]  ;;  %v6434_v17 = vor.u32 %v7781_v13, %v6431_v15  ;;  %v6619_v13 = vor.u32 %v7860_v42, %v6618_v5  ;;  %v7859_v15 = vld [vmem:[#allocation7 + $0x1f4] sm:$0xf]  ;;  %v6578_v5 = vld [vmem:[#allocation7 + $0x1a0] sm:$0xf] }
 0x469   : > { %2937 = vmatpush.bf16.msrb.mxu1 %v6426_v49  ;;  %2913 = vmatpush.bf16.msrb.mxu0 %v6406_v7  ;;  %v6382_v46 = vor.u32 %v7770_v41, %v6381_v39  ;;  %v7786_v49 = vld [vmem:[#allocation5 + $0x2a4] sm:$0xf0] }
 0x46a   : > { %v6446_v51 = vor.u32 %v7786_v49, %v6445_v47  ;;  %v7850_v42 = vld [vmem:[#allocation7 + $0x1a4] sm:$0xf0] }
 0x46b   : > { %2927 = vmatpush.bf16.msrb.mxu2 %v6462_v23 }
 0x46d   : > { %2938 = vmatpush.bf16.msrb.mxu1 %v6418_v61  ;;  %2914 = vmatpush.bf16.msrb.mxu0 %v6398_v19  ;;  %v6378_v61 = vor.u32 %v7767_v56, %v6375_v58 }
 0x46e   : > { %2654 = vmatmul.bf16.vlgmr.msra.gmra.mxu3 %v2162_v43  ;;  %2680 = vmatmul.bf16.vlgmr.msra.gmra.mxu2 %v2162_v43  ;;  %v7769_v43 = vld [vmem:[#allocation5 + $0x224] sm:$0xf] }
 0x46f   : > { %2950 = vmatpush.bf16.msra.mxu3 %v6490_v55  ;;  %2928 = vmatpush.bf16.msrb.mxu2 %v6454_v36  ;;  %v7768_v55 = vld [vmem:[#allocation5 + $0x214] sm:$0xf0] }
 0x470   : > { %v6374_v57 = vor.u32 %v7768_v55, %v6373_v54 }
 0x471   : > { %2939 = vmatpush.bf16.msrb.mxu1 %v6410_v12  ;;  %2915 = vmatpush.bf16.msrb.mxu0 %v6390_v29  ;;  %v7782_v12 = vld [vmem:[#allocation5 + $0x284] sm:$0xf0] }
 0x472   : > { %v6430_v14 = vor.u32 %v7782_v12, %v6429_v11  ;;  %v7843_v11 = vld [vmem:[#allocation7 + $0x174] sm:$0xf] }
 0x473   : > { %2951 = vmatpush.bf16.msra.mxu3 %v6482_v4  ;;  %2929 = vmatpush.bf16.msrb.mxu2 %v6446_v51  ;;  %v7766_v4 = vld [vmem:[#allocation5 + $0x204] sm:$0xf0] }
 0x474   : > { %v6366_v9 = vor.u32 %v7766_v4, %v6365_v1  ;;  %v7844_v4 = vld [vmem:[#allocation7 + $0x174] sm:$0xf0] }
 0x475   : > { %2940 = vmatpush.bf16.msrb.mxu1 %v6402_v20  ;;  %2916 = vmatpush.bf16.msrb.mxu0 %v6382_v46  ;;  %v6555_v12 = vor.u32 %v7844_v4, %v6554_v0  ;;  %v6524_v0 = vld [vmem:[#allocation7 + $0x138] sm:$0xf0]  ;;  %v7834_v4 = vld [vmem:[#allocation7 + $0x124] sm:$0xf0] }
 0x477   : > { %2952 = vmatpush.bf16.msra.mxu3 %v6474_v3  ;;  %2930 = vmatpush.bf16.msrb.mxu2 %v6438_v63 }
 0x478   : > { %6361 = vmatmul.msk.bf16.vlgmr.msra.gmra.mxu1 %vm2124_vm10, %v6360_v33 }
 0x479   : > { %2941 = vmatpush.bf16.msrb.mxu1 %v6394_v35  ;;  %2917 = vmatpush.bf16.msrb.mxu0 %v6374_v57 }
 0x47b   : > { %2953 = vmatpush.bf16.msra.mxu3 %v6466_v25  ;;  %2931 = vmatpush.bf16.msrb.mxu2 %v6430_v14  ;;  %v6556_v14 = vld [vmem:[#allocation7 + $0x178] sm:$0xf0] }
 0x47d   : > { %2918 = vmatpush.bf16.msrb.mxu0 %v6366_v9  ;;  %v6546_v9 = vld [vmem:[#allocation7 + $0x160] sm:$0xf] }
 0x47e   : > { %6362 = vmatmul.msk.bf16.vlgmr.msrb.gmra.mxu3 %vm2124_vm10, %v6360_v33  ;;  %v6383_v33 = vld [vmem:[#allocation5 + $0x228] sm:$0xf0] }
 0x47f   : > { %v6386_v34 = vor.u32 %v7769_v43, %v6383_v33  ;;  %2954 = vmatpush.bf16.msra.mxu3 %v6458_v40 }
 0x481   : > { %2942 = vmatpush.bf16.msrb.mxu1 %v6386_v34 }
 0x483   : > { %2955 = vmatpush.bf16.msra.mxu3 %v6450_v53  ;;  %v2979_v53 = vld [vmem:[%s9376_s12] sm:$0x3] }
 0x484   : > { %v2981_v56 = vperm.slane %v2979_v53, 0  ;;  %v2982_v57 = vperm.slane %v2979_v53, 1  ;;  %v7853_v53 = vld [vmem:[#allocation7 + $0x1c4] sm:$0xf] }
 0x485   : > { %2943 = vmatpush.bf16.msrb.mxu1 %v6378_v61 }
 0x487   : > { %2956 = vmatpush.bf16.msra.mxu3 %v6442_v2 }
 0x489   : > { %2944 = vmatpush.bf16.msrb.mxu1 %v6370_v10  ;;  %v7842_v10 = vld [vmem:[#allocation7 + $0x164] sm:$0xf0] }
 0x48b   : > { %2957 = vmatpush.bf16.msra.mxu3 %v6434_v17 }
 0x4d5   : > { %v2430_v44 = vpop.f32.mrf.mxu1  ;;  %v2456_v45 = vpop.f32.mrf.mxu0 }
 0x4dd   : > { %v2432_v6 = vpop.f32.mrf.mxu1  ;;  %v2458_v7 = vpop.f32.mrf.mxu0 }
 0x4e1   : > { %v2443_v16 = vpop.f32.mrf.mxu3  ;;  %v2469_v3 = vpop.f32.mrf.mxu2 }
 0x4e2   : > { %v2444_v18 = vadd.f32 %v2443_v16, %v2430_v44  ;;  %v2470_v48 = vadd.f32 %v2469_v3, %v2456_v45  ;;  %v2965_v44 = vld [vmem:[%s9375_s11] sm:$0x3]  ;;  %v6620_v16 = vld [vmem:[#allocation7 + $0x1f8] sm:$0xf0] }
 0x4e3   : > { %v2967_v47 = vperm.slane %v2965_v44, 0  ;;  %v2968_v50 = vperm.slane %v2965_v44, 1  ;;  %v6594_v44 = vld [vmem:[#allocation7 + $0x1c0] sm:$0xf] }
 0x4e5   : > { %v2642_v19 = vpop.f32.mrf.mxu1  ;;  %v2668_v20 = vpop.f32.mrf.mxu0 }
 0x4e6   : > { %v2643_v21 = vadd.f32 %v2642_v19, %v2444_v18  ;;  %v2669_v22 = vadd.f32 %v2668_v20, %v2470_v48  ;;  %v6610_v18 = vld [vmem:[#allocation7 + $0x1e0] sm:$0xf]  ;;  %v7858_v48 = vld [vmem:[#allocation7 + $0x1e4] sm:$0xf0] }
 0x4e7   : > { %v2989_v19 = vld [vmem:[%s9377_s13] sm:$0x1]  ;;  %v6493_v20 = vld [vmem:[%s9377_s13 + $0x1] sm:$0x1] }
 0x4e9   : > { %v2445_v8 = vpop.f32.mrf.mxu3  ;;  %v2471_v23 = vpop.f32.mrf.mxu2 }
 0x4ea   : > { %v7841_v8 = vld [vmem:[#allocation7 + $0x164] sm:$0xf]  ;;  %v6623_v23 = vor.u32 %v7859_v15, %v6620_v16  ;;  %v6580_v15 = vld [vmem:[#allocation7 + $0x1a8] sm:$0xf0]  ;;  %v7832_v16 = vld [vmem:[#allocation7 + $0x114] sm:$0xf0] }
 0x4ed   : > { %v2644_v24 = vpop.f32.mrf.mxu1  ;;  %v2670_v25 = vpop.f32.mrf.mxu0 }
 0x4ee   : > { %v6547_v24 = vor.u32 %v7842_v10, %v6546_v9  ;;  %v6611_v25 = vor.u32 %v7858_v48, %v6610_v18  ;;  %v7833_v9 = vld [vmem:[#allocation7 + $0x124] sm:$0xf]  ;;  %v6570_v18 = vld [vmem:[#allocation7 + $0x190] sm:$0xf]  ;;  %v7848_v48 = vld [vmem:[#allocation7 + $0x194] sm:$0xf0] }
 0x4f1   : > { %v2655_v26 = vpop.f32.mrf.mxu3  ;;  %v2681_v27 = vpop.f32.mrf.mxu2 }
 0x4f2   : > { %v2656_v28 = vadd.f32 %v2655_v26, %v2643_v21  ;;  %v2682_v29 = vadd.f32 %v2681_v27, %v2669_v22  ;;  %v6538_v21 = vld [vmem:[#allocation7 + $0x150] sm:$0xf]  ;;  %v6559_v22 = vor.u32 %v7843_v11, %v6556_v14  ;;  %v6548_v26 = vld [vmem:[#allocation7 + $0x168] sm:$0xf0]  ;;  %v7857_v27 = vld [vmem:[#allocation7 + $0x1e4] sm:$0xf] }
 0x4f3   : > { %v7849_v14 = vld [vmem:[#allocation7 + $0x1a4] sm:$0xf] }
 0x4f5   : > { %v2699_v30 = vpop.f32.mrf.mxu1 }
 0x4f6   : > { %v2716_v31 = vpack.c.bf16 %v2699_v30, %v2699_v30  ;;  %v6602_v30 = vld [vmem:[#allocation7 + $0x1d0] sm:$0xf] }
 0x4f8   : > { %2919 = vmatmul.bf16.vlgmr.msrb.gmra.mxu0 %v2716_v31  ;;  %2945 = vmatmul.bf16.vlgmr.msrb.gmra.mxu1 %v2716_v31  ;;  %v7856_v31 = vld [vmem:[#allocation7 + $0x1d4] sm:$0xf0] }
 0x4f9   : > { %v2657_v32 = vpop.f32.mrf.mxu3  ;;  %v2683_v35 = vpop.f32.mrf.mxu2 }
 0x4fa   : > { %v6530_v32 = vld [vmem:[#allocation7 + $0x140] sm:$0xf]  ;;  %v6551_v35 = vor.u32 %v7841_v8, %v6548_v26  ;;  %v6583_v8 = vor.u32 %v7849_v14, %v6580_v15  ;;  %v7847_v26 = vld [vmem:[#allocation7 + $0x194] sm:$0xf]  ;;  %v7822_v14 = vld [vmem:[#allocation7 + $0xc4] sm:$0xf0] }
 0x4fd   : > { %v2701_v36 = vpop.f32.mrf.mxu1 }
 0x4fe   : > { %v7839_v36 = vld [vmem:[#allocation7 + $0x154] sm:$0xf] }
 0x501   : > { %v2712_v37 = vpop.f32.mrf.mxu3 }
 0x502   : > { %v2717_v38 = vpack.c.bf16 %v2712_v37, %v2712_v37 }
 0x504   : > { %2932 = vmatmul.bf16.vlgmr.msrb.gmra.mxu2 %v2717_v38  ;;  %2958 = vmatmul.bf16.vlgmr.msra.gmra.mxu3 %v2717_v38 }
 0x509   : > { %v2714_v39 = vpop.f32.mrf.mxu3 }
 0x50a   : > { %v6603_v39 = vor.u32 %v7856_v31, %v6602_v30  ;;  %v7846_v30 = vld [vmem:[#allocation7 + $0x184] sm:$0xf0]  ;;  %v7812_v31 = vld [vmem:[#allocation7 + $0x74] sm:$0xf0] }
 0x575   : > { %v2920_v40 = vpop.f32.mrf.mxu0  ;;  %v2946_v41 = vpop.f32.mrf.mxu1 }
 0x57d   : > { %v2922_v43 = vpop.f32.mrf.mxu0  ;;  %v2948_v33 = vpop.f32.mrf.mxu1 }
 0x57e   : > { %v6604_v43 = vld [vmem:[#allocation7 + $0x1d8] sm:$0xf0]  ;;  %v7838_v33 = vld [vmem:[#allocation7 + $0x144] sm:$0xf0] }
 0x587   : > { %v2933_v45 = vpop.f32.mrf.mxu2  ;;  %v2959_v46 = vpop.f32.mrf.mxu3 }
 0x588   : > { %v2934_v34 = vadd.f32 %v2933_v45, %v2920_v40  ;;  %v2960_v49 = vadd.f32 %v2959_v46, %v2946_v41  ;;  %v6540_v40 = vld [vmem:[#allocation7 + $0x158] sm:$0xf0]  ;;  %v7855_v41 = vld [vmem:[#allocation7 + $0x1d4] sm:$0xf]  ;;  %v7854_v45 = vld [vmem:[#allocation7 + $0x1c4] sm:$0xf0] }
 0x589   : > { %v6522_v46 = vld [vmem:[#allocation7 + $0x130] sm:$0xf] }
 0x58a   : > { %v2963_v51 = vadd.f32 %v2934_v34, %v2656_v28  ;;  %v2964_v52 = vadd.f32 %v2960_v49, %v2682_v29  ;;  %v6612_v28 = vld [vmem:[#allocation7 + $0x1e8] sm:$0xf0]  ;;  %v7840_v29 = vld [vmem:[#allocation7 + $0x154] sm:$0xf0]  ;;  %v6543_v34 = vor.u32 %v7839_v36, %v6540_v40  ;;  %v6607_v49 = vor.u32 %v7855_v41, %v6604_v43  ;;  %v6674_v41 = vld [vmem:[#allocation7 + $0x60] sm:$0xf] }
 0x58b   : > { %v6615_v37 = vor.u32 %v7857_v27, %v6612_v28  ;;  %v6539_v38 = vor.u32 %v7840_v29, %v6538_v21  ;;  %v6572_v27 = vld [vmem:[#allocation7 + $0x198] sm:$0xf0]  ;;  %v6682_v28 = vld [vmem:[#allocation7 + $0x70] sm:$0xf]  ;;  %v6562_v29 = vld [vmem:[#allocation7 + $0x180] sm:$0xf] }
 0x58c   : > { %v2971_v54 = vadd.f32 %v2967_v47, %v2963_v51  ;;  %v2972_v55 = vadd.f32 %v2968_v50, %v2964_v52  ;;  %v7837_v47 = vld [vmem:[#allocation7 + $0x144] sm:$0xf]  ;;  %v6531_v50 = vor.u32 %v7838_v33, %v6530_v32  ;;  %v6595_v51 = vor.u32 %v7854_v45, %v6594_v44  ;;  %v6532_v52 = vld [vmem:[#allocation7 + $0x148] sm:$0xf0]  ;;  %v6746_v32 = vld [vmem:[#allocation7 + $0xf0] sm:$0xf] }
 0x58d   : > { %v6563_v43 = vor.u32 %v7846_v30, %v6562_v29  ;;  %v7811_v33 = vld [vmem:[#allocation7 + $0x74] sm:$0xf]  ;;  %v7845_v44 = vld [vmem:[#allocation7 + $0x184] sm:$0xf]  ;;  %v6564_v45 = vld [vmem:[#allocation7 + $0x188] sm:$0xf0] }
 0x58e   : > { %vm2973_vm11 = vcmp.gt.f32.partialorder %v2971_v54, 0.0  ;;  %v2975_v58 = vmul.f32 0.2, %v2971_v54  ;;  %vm2974_vm12 = vcmp.gt.f32.partialorder %v2972_v55, 0.0  ;;  %v2976_v59 = vmul.f32 0.2, %v2972_v55 }
 0x58f   : > { %v2935_v60 = vpop.f32.mrf.mxu2  ;;  %v2961_v61 = vpop.f32.mrf.mxu3  ;;  %v6706_v29 = vld [vmem:[#allocation7 + $0xa0] sm:$0xf]  ;;  %v7818_v30 = vld [vmem:[#allocation7 + $0xa4] sm:$0xf0] }
 0x590   : > { %v2977_v63 = vsel %vm2973_vm11, %v2971_v54, %v2975_v58  ;;  %v2978_v62 = vsel %vm2974_vm12, %v2972_v55, %v2976_v59  ;;  %v6596_v54 = vld [vmem:[#allocation7 + $0x1c8] sm:$0xf0]  ;;  %v7836_v55 = vld [vmem:[#allocation7 + $0x134] sm:$0xf0]  ;;  %v6514_v58 = vld [vmem:[#allocation7 + $0x120] sm:$0xf]  ;;  %v6535_v59 = vor.u32 %v7837_v47, %v6532_v52 }
 0x591   : > { %v2985_v1 = vadd.f32 %v2981_v56, %v2977_v63  ;;  %v2986_v2 = vadd.f32 %v2982_v57, %v2978_v62  ;;  %v6586_v56 = vld [vmem:[#allocation7 + $0x1b0] sm:$0xf]  ;;  %v7852_v57 = vld [vmem:[#allocation7 + $0x1b4] sm:$0xf0]  ;;  %v7835_v60 = vld [vmem:[#allocation7 + $0x134] sm:$0xf]  ;;  %v6599_v61 = vor.u32 %v7853_v53, %v6596_v54  ;;  %v6523_v63 = vor.u32 %v7836_v55, %v6522_v46 }
 0x592   : > { %v6587_v62 = vor.u32 %v7852_v57, %v6586_v56  ;;  %v6515_v11 = vor.u32 %v7834_v4, %v6514_v58  ;;  %v6683_v46 = vor.u32 %v7812_v31, %v6682_v28  ;;  %v6684_v47 = vld [vmem:[#allocation7 + $0x78] sm:$0xf0]  ;;  %v6738_v52 = vld [vmem:[#allocation7 + $0xe0] sm:$0xf]  ;;  %v7826_v53 = vld [vmem:[#allocation7 + $0xe4] sm:$0xf0]  ;;  %v6567_v55 = vor.u32 %v7845_v44, %v6564_v45 }
 0x593   : > { %v2987_v6 = vpack.c.bf16 %v2985_v1, %v2985_v1  ;;  %v2988_v7 = vpack.c.bf16 %v2986_v2, %v2986_v2  ;;  %v7851_v1 = vld [vmem:[#allocation7 + $0x1b4] sm:$0xf]  ;;  %v6588_v2 = vld [vmem:[#allocation7 + $0x1b8] sm:$0xf0]  ;;  %v6666_v56 = vld [vmem:[#allocation7 + $0x50] sm:$0xf]  ;;  %v6687_v57 = vor.u32 %v7811_v33, %v6684_v47 }
 0x594   : > { %v6591_v10 = vor.u32 %v7851_v1, %v6588_v2  ;;  %v7809_v58 = vld [vmem:[#allocation7 + $0x64] sm:$0xf]  ;;  %v7808_v1 = vld [vmem:[#allocation7 + $0x54] sm:$0xf0]  ;;  %v6730_v2 = vld [vmem:[#allocation7 + $0xd0] sm:$0xf] }
 0x595   : > { %v8895_v3 = vsel %vm2994_vm13, %v2987_v6, 0  ;;  %v8897_v17 = vsel %vm2994_vm13, %v2988_v7, 0  ;;  %v6506_v6 = vld [vmem:[#allocation7 + $0x110] sm:$0xf]  ;;  %v6527_v7 = vor.u32 %v7835_v60, %v6524_v0  ;;  %v6740_v0 = vld [vmem:[#allocation7 + $0xe8] sm:$0xf0] }
 0x596   : > { %3008 = vmatpush.bf16.msra.mxu0 %v8895_v3  ;;  %3021 = vmatpush.bf16.msra.mxu2 %v8897_v17  ;;  %v7824_v4 = vld [vmem:[#allocation7 + $0xd4] sm:$0xf0]  ;;  %v7805_v31 = vld [vmem:[#allocation7 + $0x44] sm:$0xf]  ;;  %v6698_v33 = vld [vmem:[#allocation7 + $0x90] sm:$0xf] }
 0x597   : > { %3073 = vmatpush.bf16.msra.mxu1 %v8895_v3  ;;  %3086 = vmatpush.bf16.msrb.mxu3 %v8897_v17  ;;  %v7816_v44 = vld [vmem:[#allocation7 + $0x94] sm:$0xf0]  ;;  %v7803_v45 = vld [vmem:[#allocation7 + $0x34] sm:$0xf] }
 0x599   : > { %6492 = vmatmul.msk.bf16.vlgmr.msra.gmra.mxu2 %vm2990_vm14, %v2989_v19  ;;  %6491 = vmatmul.msk.bf16.vlgmr.msra.gmra.mxu0 %vm2990_vm14, %v2989_v19  ;;  %v6498_v19 = vld [vmem:[#allocation7 + $0x100] sm:$0xf] }
 0x59a   : > { %3287 = vmatpush.bf16.msrb.mxu0 %v6555_v12  ;;  %3300 = vmatpush.bf16.msrb.mxu2 %v6619_v13  ;;  %v6579_v12 = vor.u32 %v7850_v42, %v6578_v5  ;;  %v6516_v13 = vld [vmem:[#allocation7 + $0x128] sm:$0xf0] }
 0x59b   : > { %6494 = vmatmul.msk.bf16.vlgmr.msra.gmra.mxu1 %vm2990_vm14, %v6493_v20  ;;  %6495 = vmatmul.msk.bf16.vlgmr.msrb.gmra.mxu3 %vm2990_vm14, %v6493_v20  ;;  %v7830_v20 = vld [vmem:[#allocation7 + $0x104] sm:$0xf0]  ;;  %v6519_v21 = vor.u32 %v7833_v9, %v6516_v13  ;;  %v6731_v9 = vor.u32 %v7824_v4, %v6730_v2  ;;  %v6722_v13 = vld [vmem:[#allocation7 + $0xc0] sm:$0xf]  ;;  %v7797_v4 = vld [vmem:[#allocation7 + $0x4] sm:$0xf] }
 0x59c   : > { %3313 = vmatpush.bf16.msrb.mxu1 %v6559_v22  ;;  %3326 = vmatpush.bf16.msra.mxu3 %v6623_v23  ;;  %v7831_v22 = vld [vmem:[#allocation7 + $0x114] sm:$0xf]  ;;  %v6507_v23 = vor.u32 %v7832_v16, %v6506_v6  ;;  %v6499_v40 = vor.u32 %v7830_v20, %v6498_v19  ;;  %v6667_v6 = vor.u32 %v7808_v1, %v6666_v56  ;;  %v7804_v19 = vld [vmem:[#allocation7 + $0x34] sm:$0xf0]  ;;  %v6714_v20 = vld [vmem:[#allocation7 + $0xb0] sm:$0xf] }
 0x59d   : > { %v6644_v56 = vld [vmem:[#allocation7 + $0x28] sm:$0xf0] }
 0x59e   : > { %3288 = vmatpush.bf16.msrb.mxu0 %v6547_v24  ;;  %3301 = vmatpush.bf16.msrb.mxu2 %v6611_v25  ;;  %v6571_v24 = vor.u32 %v7848_v48, %v6570_v18  ;;  %v6508_v25 = vld [vmem:[#allocation7 + $0x118] sm:$0xf0]  ;;  %v6650_v18 = vld [vmem:[#allocation7 + $0x30] sm:$0xf]  ;;  %v6723_v48 = vor.u32 %v7822_v14, %v6722_v13  ;;  %v6708_v1 = vld [vmem:[#allocation7 + $0xa8] sm:$0xf0] }
 0x59f   : > { %v6511_v36 = vor.u32 %v7831_v22, %v6508_v25  ;;  %v6651_v22 = vor.u32 %v7804_v19, %v6650_v18 }
 0x5a0   : > { %3314 = vmatpush.bf16.msrb.mxu1 %v6551_v35  ;;  %3327 = vmatpush.bf16.msra.mxu3 %v6615_v37  ;;  %v7828_v35 = vld [vmem:[#allocation7 + $0xf4] sm:$0xf0]  ;;  %v7829_v37 = vld [vmem:[#allocation7 + $0x104] sm:$0xf] }
 0x5a2   : > { %3289 = vmatpush.bf16.msrb.mxu0 %v6539_v38  ;;  %3302 = vmatpush.bf16.msrb.mxu2 %v6603_v39  ;;  %v6500_v38 = vld [vmem:[#allocation7 + $0x108] sm:$0xf0]  ;;  %v6575_v39 = vor.u32 %v7847_v26, %v6572_v27  ;;  %v6634_v26 = vld [vmem:[#allocation7 + $0x10] sm:$0xf]  ;;  %v7800_v27 = vld [vmem:[#allocation7 + $0x14] sm:$0xf0] }
 0x5a3   : > { %v6503_v54 = vor.u32 %v7829_v37, %v6500_v38  ;;  %v6635_v28 = vor.u32 %v7800_v27, %v6634_v26  ;;  %v6626_v37 = vld [vmem:[#allocation7] sm:$0xf]  ;;  %v7798_v38 = vld [vmem:[#allocation7 + $0x4] sm:$0xf0]  ;;  %v7875_v26 = vld [vmem:[#allocation7 + $0x274] sm:$0xf] }
 0x5a4   : > { %3315 = vmatpush.bf16.msrb.mxu1 %v6543_v34  ;;  %3328 = vmatpush.bf16.msra.mxu3 %v6607_v49  ;;  %v6747_v34 = vor.u32 %v7828_v35, %v6746_v32  ;;  %v7827_v49 = vld [vmem:[#allocation7 + $0xf4] sm:$0xf]  ;;  %v6707_v32 = vor.u32 %v7818_v30, %v6706_v29  ;;  %v6660_v35 = vld [vmem:[#allocation7 + $0x48] sm:$0xf0]  ;;  %v6815_v27 = vld [vmem:[#allocation7 + $0x278] sm:$0xf0] }
 0x5a5   : > { %v6877_v29 = vld [vmem:[#allocation7 + $0x2f0] sm:$0xf]  ;;  %v7892_v30 = vld [vmem:[#allocation7 + $0x2f4] sm:$0xf0] }
 0x5a6   : > { %3290 = vmatpush.bf16.msrb.mxu0 %v6531_v50  ;;  %3303 = vmatpush.bf16.msrb.mxu2 %v6595_v51  ;;  %v6748_v50 = vld [vmem:[#allocation7 + $0xf8] sm:$0xf0]  ;;  %v7810_v51 = vld [vmem:[#allocation7 + $0x64] sm:$0xf0] }
 0x5a7   : > { %v6675_v60 = vor.u32 %v7810_v51, %v6674_v41  ;;  %v6732_v41 = vld [vmem:[#allocation7 + $0xd8] sm:$0xf0] }
 0x5a8   : > { %3316 = vmatpush.bf16.msrb.mxu1 %v6535_v59  ;;  %3329 = vmatpush.bf16.msra.mxu3 %v6599_v61  ;;  %v6751_v59 = vor.u32 %v7827_v49, %v6748_v50  ;;  %v6739_v61 = vor.u32 %v7826_v53, %v6738_v52  ;;  %v7821_v49 = vld [vmem:[#allocation7 + $0xc4] sm:$0xf]  ;;  %v6724_v50 = vld [vmem:[#allocation7 + $0xc8] sm:$0xf0]  ;;  %v6690_v52 = vld [vmem:[#allocation7 + $0x80] sm:$0xf] }
 0x5a9   : > { %v6727_v51 = vor.u32 %v7821_v49, %v6724_v50  ;;  %v7814_v53 = vld [vmem:[#allocation7 + $0x84] sm:$0xf0]  ;;  %v6797_v49 = vld [vmem:[#allocation7 + $0x250] sm:$0xf]  ;;  %v7872_v50 = vld [vmem:[#allocation7 + $0x254] sm:$0xf0] }
 0x5aa   : > { %3291 = vmatpush.bf16.msrb.mxu0 %v6523_v63  ;;  %3304 = vmatpush.bf16.msrb.mxu2 %v6587_v62  ;;  %v6676_v63 = vld [vmem:[#allocation7 + $0x68] sm:$0xf0]  ;;  %v7825_v62 = vld [vmem:[#allocation7 + $0xe4] sm:$0xf] }
 0x5ab   : > { %v6679_v5 = vor.u32 %v7809_v58, %v6676_v63  ;;  %v6743_v42 = vor.u32 %v7825_v62, %v6740_v0  ;;  %v7819_v58 = vld [vmem:[#allocation7 + $0xb4] sm:$0xf]  ;;  %v6636_v63 = vld [vmem:[#allocation7 + $0x18] sm:$0xf0]  ;;  %v7817_v0 = vld [vmem:[#allocation7 + $0xa4] sm:$0xf] }
 0x5ac   : > { %3317 = vmatpush.bf16.msrb.mxu1 %v6527_v7  ;;  %3330 = vmatpush.bf16.msra.mxu3 %v6591_v10  ;;  %v6658_v7 = vld [vmem:[#allocation7 + $0x40] sm:$0xf]  ;;  %v7807_v10 = vld [vmem:[#allocation7 + $0x54] sm:$0xf]  ;;  %v6711_v2 = vor.u32 %v7817_v0, %v6708_v1  ;;  %v6791_v0 = vld [vmem:[#allocation7 + $0x248] sm:$0xf0] }
 0x5ae   : > { %3292 = vmatpush.bf16.msrb.mxu0 %v6515_v11  ;;  %3305 = vmatpush.bf16.msrb.mxu2 %v6579_v12  ;;  %v6668_v11 = vld [vmem:[#allocation7 + $0x58] sm:$0xf0]  ;;  %v7806_v12 = vld [vmem:[#allocation7 + $0x44] sm:$0xf0] }
 0x5af   : > { %v6671_v15 = vor.u32 %v7807_v10, %v6668_v11  ;;  %v6659_v16 = vor.u32 %v7806_v12, %v6658_v7  ;;  %v6700_v7 = vld [vmem:[#allocation7 + $0x98] sm:$0xf0]  ;;  %v7813_v10 = vld [vmem:[#allocation7 + $0x84] sm:$0xf]  ;;  %v6692_v11 = vld [vmem:[#allocation7 + $0x88] sm:$0xf0] }
 0x5b0   : > { %3318 = vmatpush.bf16.msrb.mxu1 %v6519_v21  ;;  %3331 = vmatpush.bf16.msra.mxu3 %v6583_v8  ;;  %v7820_v21 = vld [vmem:[#allocation7 + $0xb4] sm:$0xf0]  ;;  %v6695_v12 = vor.u32 %v7813_v10, %v6692_v11  ;;  %v6781_v10 = vld [vmem:[#allocation7 + $0x230] sm:$0xf] }
 0x5b1   : > { %v6715_v8 = vor.u32 %v7820_v21, %v6714_v20  ;;  %v7868_v11 = vld [vmem:[#allocation7 + $0x234] sm:$0xf0] }
 0x5b2   : > { %3293 = vmatpush.bf16.msrb.mxu0 %v6507_v23  ;;  %3306 = vmatpush.bf16.msrb.mxu2 %v6571_v24  ;;  %v6642_v23 = vld [vmem:[#allocation7 + $0x20] sm:$0xf]  ;;  %v7802_v24 = vld [vmem:[#allocation7 + $0x24] sm:$0xf0] }
 0x5b3   : > { %v6643_v25 = vor.u32 %v7802_v24, %v6642_v23  ;;  %v6813_v24 = vld [vmem:[#allocation7 + $0x270] sm:$0xf] }
 0x5b4   : > { %3319 = vmatpush.bf16.msrb.mxu1 %v6511_v36  ;;  %3332 = vmatpush.bf16.msra.mxu3 %v6575_v39  ;;  %v6663_v36 = vor.u32 %v7805_v31, %v6660_v35  ;;  %v7823_v39 = vld [vmem:[#allocation7 + $0xd4] sm:$0xf]  ;;  %v6879_v35 = vld [vmem:[#allocation7 + $0x2f8] sm:$0xf0] }
 0x5b5   : > { %v7891_v31 = vld [vmem:[#allocation7 + $0x2f4] sm:$0xf] }
 0x5b6   : > { %3294 = vmatpush.bf16.msrb.mxu0 %v6499_v40  ;;  %3307 = vmatpush.bf16.msrb.mxu2 %v6563_v43  ;;  %v6627_v40 = vor.u32 %v7798_v38, %v6626_v37  ;;  %v6735_v43 = vor.u32 %v7823_v39, %v6732_v41  ;;  %v6805_v37 = vld [vmem:[#allocation7 + $0x260] sm:$0xf]  ;;  %v7874_v38 = vld [vmem:[#allocation7 + $0x264] sm:$0xf0]  ;;  %v7873_v39 = vld [vmem:[#allocation7 + $0x264] sm:$0xf] }
 0x5b7   : > { %v6807_v41 = vld [vmem:[#allocation7 + $0x268] sm:$0xf0] }
 0x5b8   : > { %3320 = vmatpush.bf16.msrb.mxu1 %v6503_v54  ;;  %3333 = vmatpush.bf16.msra.mxu3 %v6567_v55  ;;  %v7801_v54 = vld [vmem:[#allocation7 + $0x24] sm:$0xf]  ;;  %v6691_v55 = vor.u32 %v7814_v53, %v6690_v52  ;;  %v6798_v52 = vor.u32 %v7872_v50, %v6797_v49  ;;  %v6799_v53 = vld [vmem:[#allocation7 + $0x258] sm:$0xf0]  ;;  %v6759_v50 = vld [vmem:[#allocation7 + $0x208] sm:$0xf0] }
 0x5b9   : > { %v7861_v49 = vld [vmem:[#allocation7 + $0x204] sm:$0xf] }
 0x5ba   : > { %3499 = vmatpush.bf16.msra.mxu0 %v6683_v46  ;;  %3512 = vmatpush.bf16.msra.mxu2 %v6747_v34  ;;  %v6699_v46 = vor.u32 %v7816_v44, %v6698_v33  ;;  %v6652_v34 = vld [vmem:[#allocation7 + $0x38] sm:$0xf0]  ;;  %v6869_v33 = vld [vmem:[#allocation7 + $0x2e0] sm:$0xf]  ;;  %v7890_v44 = vld [vmem:[#allocation7 + $0x2e4] sm:$0xf0] }
 0x5bb   : > { %v6655_v47 = vor.u32 %v7803_v45, %v6652_v34  ;;  %v7889_v45 = vld [vmem:[#allocation7 + $0x2e4] sm:$0xf]  ;;  %v6871_v34 = vld [vmem:[#allocation7 + $0x2e8] sm:$0xf0] }
 0x5bc   : > { %3525 = vmatpush.bf16.msra.mxu1 %v6687_v57  ;;  %3538 = vmatpush.bf16.msrb.mxu3 %v6751_v59  ;;  %v6647_v57 = vor.u32 %v7801_v54, %v6644_v56  ;;  %v6716_v59 = vld [vmem:[#allocation7 + $0xb8] sm:$0xf0]  ;;  %v6861_v54 = vld [vmem:[#allocation7 + $0x2d0] sm:$0xf] }
 0x5be   : > { %3500 = vmatpush.bf16.msra.mxu0 %v6675_v60  ;;  %3513 = vmatpush.bf16.msra.mxu2 %v6739_v61  ;;  %v6719_v60 = vor.u32 %v7819_v58, %v6716_v59  ;;  %v7799_v61 = vld [vmem:[#allocation7 + $0x14] sm:$0xf]  ;;  %v6863_v59 = vld [vmem:[#allocation7 + $0x2d8] sm:$0xf0] }
 0x5bf   : > { %v6639_v62 = vor.u32 %v7799_v61, %v6636_v63  ;;  %v7887_v58 = vld [vmem:[#allocation7 + $0x2d4] sm:$0xf]  ;;  %v7870_v63 = vld [vmem:[#allocation7 + $0x244] sm:$0xf0] }
 0x5c0   : > { %3526 = vmatpush.bf16.msra.mxu1 %v6679_v5  ;;  %3539 = vmatpush.bf16.msrb.mxu3 %v6743_v42  ;;  %v6628_v5 = vld [vmem:[#allocation7 + $0x8] sm:$0xf0]  ;;  %v7815_v42 = vld [vmem:[#allocation7 + $0x94] sm:$0xf]  ;;  %v6866_v61 = vor.u32 %v7887_v58, %v6863_v59 }
 0x5c1   : > { %v6823_v59 = vld [vmem:[#allocation7 + $0x288] sm:$0xf0] }
 0x5c2   : > { %3501 = vmatpush.bf16.msra.mxu0 %v6667_v6  ;;  %3514 = vmatpush.bf16.msra.mxu2 %v6731_v9  ;;  %v6631_v6 = vor.u32 %v7797_v4, %v6628_v5  ;;  %v6703_v9 = vor.u32 %v7815_v42, %v6700_v7  ;;  %v6853_v4 = vld [vmem:[#allocation7 + $0x2c0] sm:$0xf]  ;;  %v7886_v5 = vld [vmem:[#allocation7 + $0x2c4] sm:$0xf0]  ;;  %v7885_v42 = vld [vmem:[#allocation7 + $0x2c4] sm:$0xf] }
 0x5c3   : > { %v6855_v7 = vld [vmem:[#allocation7 + $0x2c8] sm:$0xf0] }
 0x5c4   : > { %3527 = vmatpush.bf16.msra.mxu1 %v6671_v15  ;;  %3540 = vmatpush.bf16.msrb.mxu3 %v6735_v43  ;;  %v6810_v43 = vor.u32 %v7873_v39, %v6807_v41  ;;  %v6767_v39 = vld [vmem:[#allocation7 + $0x218] sm:$0xf0]  ;;  %v7880_v41 = vld [vmem:[#allocation7 + $0x294] sm:$0xf0] }
 0x5c6   : > { %3502 = vmatpush.bf16.msra.mxu0 %v6659_v16  ;;  %3515 = vmatpush.bf16.msra.mxu2 %v6723_v48 }
 0x5c8   : > { %3528 = vmatpush.bf16.msra.mxu1 %v6663_v36  ;;  %3541 = vmatpush.bf16.msrb.mxu3 %v6727_v51  ;;  %v6882_v36 = vor.u32 %v7891_v31, %v6879_v35  ;;  %v7871_v51 = vld [vmem:[#allocation7 + $0x254] sm:$0xf]  ;;  %v6839_v31 = vld [vmem:[#allocation7 + $0x2a8] sm:$0xf0]  ;;  %v6765_v35 = vld [vmem:[#allocation7 + $0x210] sm:$0xf] }
 0x5c9   : > { %v6802_v56 = vor.u32 %v7871_v51, %v6799_v53 }
 0x5ca   : > { %3503 = vmatpush.bf16.msra.mxu0 %v6651_v22  ;;  %3516 = vmatpush.bf16.msra.mxu2 %v6715_v8 }
 0x5cc   : > { %3529 = vmatpush.bf16.msra.mxu1 %v6655_v47  ;;  %3542 = vmatpush.bf16.msrb.mxu3 %v6719_v60  ;;  %v6874_v47 = vor.u32 %v7889_v45, %v6871_v34  ;;  %v6789_v60 = vld [vmem:[#allocation7 + $0x240] sm:$0xf]  ;;  %v6831_v45 = vld [vmem:[#allocation7 + $0x298] sm:$0xf0] }
 0x5cd   : > { %v6790_v1 = vor.u32 %v7870_v63, %v6789_v60 }
 0x5ce   : > { %3504 = vmatpush.bf16.msra.mxu0 %v6643_v25  ;;  %3517 = vmatpush.bf16.msra.mxu2 %v6707_v32  ;;  %v7876_v25 = vld [vmem:[#allocation7 + $0x274] sm:$0xf0]  ;;  %v6878_v32 = vor.u32 %v7892_v30, %v6877_v29  ;;  %v7881_v29 = vld [vmem:[#allocation7 + $0x2a4] sm:$0xf] }
 0x5d0   : > { %3530 = vmatpush.bf16.msra.mxu1 %v6647_v57  ;;  %3543 = vmatpush.bf16.msrb.mxu3 %v6711_v2 }
 0x5d2   : > { %3505 = vmatpush.bf16.msra.mxu0 %v6635_v28  ;;  %3518 = vmatpush.bf16.msra.mxu2 %v6699_v46  ;;  %v6818_v28 = vor.u32 %v7875_v26, %v6815_v27  ;;  %v6870_v46 = vor.u32 %v7890_v44, %v6869_v33  ;;  %v6837_v27 = vld [vmem:[#allocation7 + $0x2a0] sm:$0xf]  ;;  %v7879_v44 = vld [vmem:[#allocation7 + $0x294] sm:$0xf] }
 0x5d3   : > { %v6834_v34 = vor.u32 %v7879_v44, %v6831_v45  ;;  %v6946_v45 = vld [vmem:[#allocation8 + $0x170] sm:$0xf] }
 0x5d4   : > { %3531 = vmatpush.bf16.msra.mxu1 %v6639_v62  ;;  %3544 = vmatpush.bf16.msrb.mxu3 %v6703_v9  ;;  %v7869_v62 = vld [vmem:[#allocation7 + $0x244] sm:$0xf]  ;;  %v6858_v9 = vor.u32 %v7885_v42, %v6855_v7 }
 0x5d5   : > { %v6794_v2 = vor.u32 %v7869_v62, %v6791_v0 }
 0x5d6   : > { %3506 = vmatpush.bf16.msra.mxu0 %v6627_v40  ;;  %3519 = vmatpush.bf16.msra.mxu2 %v6691_v55  ;;  %v6806_v40 = vor.u32 %v7874_v38, %v6805_v37  ;;  %v7888_v55 = vld [vmem:[#allocation7 + $0x2d4] sm:$0xf0]  ;;  %v7863_v37 = vld [vmem:[#allocation7 + $0x214] sm:$0xf] }
 0x5d7   : > { %v6862_v57 = vor.u32 %v7888_v55, %v6861_v54  ;;  %v6762_v54 = vor.u32 %v7861_v49, %v6759_v50  ;;  %v6821_v55 = vld [vmem:[#allocation7 + $0x280] sm:$0xf]  ;;  %v7010_v49 = vld [vmem:[#allocation8 + $0x1f0] sm:$0xf]  ;;  %v7956_v50 = vld [vmem:[#allocation8 + $0x1f4] sm:$0xf0] }
 0x5d8   : > { %3532 = vmatpush.bf16.msra.mxu1 %v6631_v6  ;;  %3545 = vmatpush.bf16.msrb.mxu3 %v6695_v12  ;;  %v6854_v6 = vor.u32 %v7886_v5, %v6853_v4  ;;  %v7867_v12 = vld [vmem:[#allocation7 + $0x234] sm:$0xf] }
 0x616   : > { %v3010_v13 = vpop.f32.mrf.mxu0 }
 0x617   : > { %v3027_v8 = vpack.c.bf16 %v3010_v13, %v3010_v13  ;;  %v6782_v13 = vor.u32 %v7868_v11, %v6781_v10 }
 0x618   : > { %v3075_v14 = vpop.f32.mrf.mxu1 }
 0x619   : > { %v3092_v15 = vpack.c.bf16 %v3075_v14, %v3075_v14  ;;  %v6783_v14 = vld [vmem:[#allocation7 + $0x238] sm:$0xf0] }
 0x61b   : > { %3295 = vmatmul.bf16.vlgmr.msrb.gmra.mxu0 %v3092_v15  ;;  %3321 = vmatmul.bf16.vlgmr.msrb.gmra.mxu1 %v3092_v15  ;;  %v6845_v15 = vld [vmem:[#allocation7 + $0x2b0] sm:$0xf] }
 0x61c   : > { %3563 = vmatpush.bf16.msrb.mxu0 %v8895_v3  ;;  %v3023_v16 = vpop.f32.mrf.mxu2  ;;  %v6752_v3 = vld [vmem:[%s9377_s13 + $0x2] sm:$0x1] }
 0x61d   : > { %v3028_v23 = vpack.c.bf16 %v3023_v16, %v3023_v16  ;;  %v7884_v16 = vld [vmem:[#allocation7 + $0x2b4] sm:$0xf0] }
 0x61e   : > { %v3088_v18 = vpop.f32.mrf.mxu3  ;;  %v3012_v19 = vpop.f32.mrf.mxu0 }
 0x61f   : > { %v3093_v48 = vpack.c.bf16 %v3088_v18, %v3088_v18  ;;  %v6786_v18 = vor.u32 %v7867_v12, %v6783_v14  ;;  %v7883_v19 = vld [vmem:[#allocation7 + $0x2b4] sm:$0xf] }
 0x620   : > { %v3077_v20 = vpop.f32.mrf.mxu1 }
 0x621   : > { %3308 = vmatmul.bf16.vlgmr.msrb.gmra.mxu2 %v3093_v48  ;;  %3334 = vmatmul.bf16.vlgmr.msra.gmra.mxu3 %v3093_v48  ;;  %v6846_v48 = vor.u32 %v7884_v16, %v6845_v15  ;;  %v6847_v20 = vld [vmem:[#allocation7 + $0x2b8] sm:$0xf0] }
 0x622   : > { %3576 = vmatpush.bf16.msrb.mxu2 %v8897_v17  ;;  %v6814_v17 = vor.u32 %v7876_v25, %v6813_v24  ;;  %3790 = vmatpush.bf16.msra.mxu3 %v6878_v32  ;;  %v6842_v32 = vor.u32 %v7881_v29, %v6839_v31 }
 0x624   : > { %v3025_v21 = vpop.f32.mrf.mxu2  ;;  %3777 = vmatpush.bf16.msrb.mxu1 %v6814_v17 }
 0x625   : > { %v6773_v21 = vld [vmem:[#allocation7 + $0x220] sm:$0xf] }
 0x626   : > { %v3090_v22 = vpop.f32.mrf.mxu3  ;;  %3791 = vmatpush.bf16.msra.mxu3 %v6870_v46  ;;  %v6757_v46 = vld [vmem:[#allocation7 + $0x200] sm:$0xf] }
 0x627   : > { %v6850_v22 = vor.u32 %v7883_v19, %v6847_v20 }
 0x628   : > { %3778 = vmatpush.bf16.msrb.mxu1 %v6806_v40  ;;  %v6829_v40 = vld [vmem:[#allocation7 + $0x290] sm:$0xf] }
 0x629   : > { %v6830_v33 = vor.u32 %v7880_v41, %v6829_v40 }
 0x62a   : > { %3792 = vmatpush.bf16.msra.mxu3 %v6862_v57  ;;  %v7877_v57 = vld [vmem:[#allocation7 + $0x284] sm:$0xf] }
 0x62b   : > { %3507 = vmatmul.bf16.vlgmr.msra.gmra.mxu0 %v3027_v8  ;;  %3533 = vmatmul.bf16.vlgmr.msra.gmra.mxu1 %v3027_v8  ;;  %v7866_v8 = vld [vmem:[#allocation7 + $0x224] sm:$0xf0]  ;;  %v6826_v63 = vor.u32 %v7877_v57, %v6823_v59  ;;  %v7011_v57 = vor.u32 %v7956_v50, %v7010_v49  ;;  %v7939_v59 = vld [vmem:[#allocation8 + $0x174] sm:$0xf]  ;;  %v6970_v49 = vld [vmem:[#allocation8 + $0x1a0] sm:$0xf] }
 0x62c   : > { %3803 = vmatpush.bf16.msra.mxu0 %v6818_v28  ;;  %3779 = vmatpush.bf16.msrb.mxu1 %v6798_v52  ;;  %v6774_v26 = vor.u32 %v7866_v8, %v6773_v21  ;;  %v7882_v28 = vld [vmem:[#allocation7 + $0x2a4] sm:$0xf0] }
 0x62d   : > { %v6838_v30 = vor.u32 %v7882_v28, %v6837_v27  ;;  %v7946_v50 = vld [vmem:[#allocation8 + $0x1a4] sm:$0xf0] }
 0x62e   : > { %3793 = vmatpush.bf16.msra.mxu3 %v6854_v6 }
 0x630   : > { %3804 = vmatpush.bf16.msra.mxu0 %v6810_v43  ;;  %3780 = vmatpush.bf16.msrb.mxu1 %v6790_v1  ;;  %v6770_v43 = vor.u32 %v7863_v37, %v6767_v39 }
 0x631   : > { %3520 = vmatmul.bf16.vlgmr.msra.gmra.mxu2 %v3028_v23  ;;  %3546 = vmatmul.bf16.vlgmr.msrb.gmra.mxu3 %v3028_v23  ;;  %v7865_v23 = vld [vmem:[#allocation7 + $0x224] sm:$0xf] }
 0x632   : > { %3816 = vmatpush.bf16.msra.mxu2 %v6882_v36  ;;  %3794 = vmatpush.bf16.msra.mxu3 %v6846_v48  ;;  %v7864_v36 = vld [vmem:[#allocation7 + $0x214] sm:$0xf0] }
 0x633   : > { %v6766_v38 = vor.u32 %v7864_v36, %v6765_v35 }
 0x634   : > { %3805 = vmatpush.bf16.msra.mxu0 %v6802_v56  ;;  %3781 = vmatpush.bf16.msrb.mxu1 %v6782_v13  ;;  %v7878_v56 = vld [vmem:[#allocation7 + $0x284] sm:$0xf0] }
 0x635   : > { %v6822_v58 = vor.u32 %v7878_v56, %v6821_v55  ;;  %v7955_v55 = vld [vmem:[#allocation8 + $0x1f4] sm:$0xf] }
 0x636   : > { %3817 = vmatpush.bf16.msra.mxu2 %v6874_v47  ;;  %3795 = vmatpush.bf16.msra.mxu3 %v6838_v30  ;;  %v7862_v47 = vld [vmem:[#allocation7 + $0x204] sm:$0xf0] }
 0x637   : > { %v6758_v53 = vor.u32 %v7862_v47, %v6757_v46  ;;  %v7940_v47 = vld [vmem:[#allocation8 + $0x174] sm:$0xf0] }
 0x638   : > { %3806 = vmatpush.bf16.msra.mxu0 %v6794_v2  ;;  %3782 = vmatpush.bf16.msrb.mxu1 %v6774_v26  ;;  %v6947_v56 = vor.u32 %v7940_v47, %v6946_v45  ;;  %v6980_v45 = vld [vmem:[#allocation8 + $0x1b8] sm:$0xf0]  ;;  %v7930_v47 = vld [vmem:[#allocation8 + $0x124] sm:$0xf0] }
 0x63a   : > { %3818 = vmatpush.bf16.msra.mxu2 %v6866_v61  ;;  %3796 = vmatpush.bf16.msra.mxu3 %v6830_v33 }
 0x63b   : > { %6753 = vmatmul.msk.bf16.vlgmr.msrb.gmra.mxu0 %vm2990_vm14, %v6752_v3 }
 0x63c   : > { %3807 = vmatpush.bf16.msra.mxu0 %v6786_v18  ;;  %3783 = vmatpush.bf16.msrb.mxu1 %v6766_v38 }
 0x63e   : > { %3819 = vmatpush.bf16.msra.mxu2 %v6858_v9  ;;  %3797 = vmatpush.bf16.msra.mxu3 %v6822_v58  ;;  %v7012_v58 = vld [vmem:[#allocation8 + $0x1f8] sm:$0xf0] }
 0x640   : > { %3784 = vmatpush.bf16.msrb.mxu1 %v6758_v53  ;;  %v6938_v53 = vld [vmem:[#allocation8 + $0x160] sm:$0xf] }
 0x641   : > { %6754 = vmatmul.msk.bf16.vlgmr.msrb.gmra.mxu2 %vm2990_vm14, %v6752_v3  ;;  %v6775_v3 = vld [vmem:[#allocation7 + $0x228] sm:$0xf0] }
 0x642   : > { %v6778_v17 = vor.u32 %v7865_v23, %v6775_v3  ;;  %3820 = vmatpush.bf16.msra.mxu2 %v6850_v22 }
 0x644   : > { %3808 = vmatpush.bf16.msra.mxu0 %v6778_v17 }
 0x646   : > { %3821 = vmatpush.bf16.msra.mxu2 %v6842_v32  ;;  %v3845_v32 = vld [vmem:[%s9380_s16] sm:$0x3] }
 0x647   : > { %v3847_v37 = vperm.slane %v3845_v32, 0  ;;  %v3848_v38 = vperm.slane %v3845_v32, 1  ;;  %v7933_v32 = vld [vmem:[#allocation8 + $0x144] sm:$0xf] }
 0x648   : > { %3809 = vmatpush.bf16.msra.mxu0 %v6770_v43 }
 0x64a   : > { %3822 = vmatpush.bf16.msra.mxu2 %v6834_v34 }
 0x64c   : > { %3810 = vmatpush.bf16.msra.mxu0 %v6762_v54  ;;  %v7938_v54 = vld [vmem:[#allocation8 + $0x164] sm:$0xf0] }
 0x64e   : > { %3823 = vmatpush.bf16.msra.mxu2 %v6826_v63 }
 0x698   : > { %v3296_v24 = vpop.f32.mrf.mxu0  ;;  %v3322_v25 = vpop.f32.mrf.mxu1 }
 0x6a0   : > { %v3298_v51 = vpop.f32.mrf.mxu0  ;;  %v3324_v52 = vpop.f32.mrf.mxu1 }
 0x6a4   : > { %v3309_v60 = vpop.f32.mrf.mxu2  ;;  %v3335_v61 = vpop.f32.mrf.mxu3 }
 0x6a5   : > { %v3310_v62 = vadd.f32 %v3309_v60, %v3296_v24  ;;  %v3336_v0 = vadd.f32 %v3335_v61, %v3322_v25  ;;  %v3831_v24 = vld [vmem:[%s9379_s15] sm:$0x3]  ;;  %v6948_v60 = vld [vmem:[#allocation8 + $0x178] sm:$0xf0] }
 0x6a6   : > { %v3833_v27 = vperm.slane %v3831_v24, 0  ;;  %v3834_v29 = vperm.slane %v3831_v24, 1  ;;  %v6986_v24 = vld [vmem:[#allocation8 + $0x1c0] sm:$0xf] }
 0x6a8   : > { %v3508_v1 = vpop.f32.mrf.mxu0  ;;  %v3534_v2 = vpop.f32.mrf.mxu1 }
 0x6a9   : > { %v3509_v4 = vadd.f32 %v3508_v1, %v3310_v62  ;;  %v3535_v5 = vadd.f32 %v3534_v2, %v3336_v0  ;;  %v7002_v62 = vld [vmem:[#allocation8 + $0x1e0] sm:$0xf]  ;;  %v7954_v0 = vld [vmem:[#allocation8 + $0x1e4] sm:$0xf0] }
 0x6aa   : > { %v3855_v1 = vld [vmem:[%s9381_s17] sm:$0x1]  ;;  %v6885_v2 = vld [vmem:[%s9381_s17 + $0x1] sm:$0x1] }
 0x6ac   : > { %v3311_v42 = vpop.f32.mrf.mxu2  ;;  %v3337_v6 = vpop.f32.mrf.mxu3 }
 0x6ad   : > { %v6951_v42 = vor.u32 %v7939_v59, %v6948_v60  ;;  %v7953_v6 = vld [vmem:[#allocation8 + $0x1e4] sm:$0xf]  ;;  %v6908_v59 = vld [vmem:[#allocation8 + $0x128] sm:$0xf0]  ;;  %v7928_v60 = vld [vmem:[#allocation8 + $0x114] sm:$0xf0] }
 0x6b0   : > { %v3510_v7 = vpop.f32.mrf.mxu0  ;;  %v3536_v9 = vpop.f32.mrf.mxu1 }
 0x6b1   : > { %v6939_v7 = vor.u32 %v7938_v54, %v6938_v53  ;;  %v7003_v9 = vor.u32 %v7954_v0, %v7002_v62  ;;  %v7945_v54 = vld [vmem:[#allocation8 + $0x1a4] sm:$0xf]  ;;  %v6962_v62 = vld [vmem:[#allocation8 + $0x190] sm:$0xf]  ;;  %v7944_v0 = vld [vmem:[#allocation8 + $0x194] sm:$0xf0] }
 0x6b4   : > { %v3521_v10 = vpop.f32.mrf.mxu2  ;;  %v3547_v11 = vpop.f32.mrf.mxu3 }
 0x6b5   : > { %v3522_v12 = vadd.f32 %v3521_v10, %v3509_v4  ;;  %v3548_v13 = vadd.f32 %v3547_v11, %v3535_v5  ;;  %v6930_v4 = vld [vmem:[#allocation8 + $0x150] sm:$0xf]  ;;  %v7015_v5 = vor.u32 %v7955_v55, %v7012_v58  ;;  %v7004_v10 = vld [vmem:[#allocation8 + $0x1e8] sm:$0xf0]  ;;  %v7937_v11 = vld [vmem:[#allocation8 + $0x164] sm:$0xf] }
 0x6b6   : > { %v7929_v58 = vld [vmem:[#allocation8 + $0x124] sm:$0xf] }
 0x6b8   : > { %v3565_v14 = vpop.f32.mrf.mxu0 }
 0x6b9   : > { %v3582_v15 = vpack.c.bf16 %v3565_v14, %v3565_v14  ;;  %v6994_v14 = vld [vmem:[#allocation8 + $0x1d0] sm:$0xf] }
 0x6bb   : > { %3785 = vmatmul.bf16.vlgmr.msrb.gmra.mxu1 %v3582_v15  ;;  %3811 = vmatmul.bf16.vlgmr.msra.gmra.mxu0 %v3582_v15  ;;  %v7952_v15 = vld [vmem:[#allocation8 + $0x1d4] sm:$0xf0] }
 0x6bc   : > { %v3523_v16 = vpop.f32.mrf.mxu2  ;;  %v3549_v18 = vpop.f32.mrf.mxu3 }
 0x6bd   : > { %v6922_v16 = vld [vmem:[#allocation8 + $0x140] sm:$0xf]  ;;  %v7007_v18 = vor.u32 %v7953_v6, %v7004_v10  ;;  %v7927_v10 = vld [vmem:[#allocation8 + $0x114] sm:$0xf] }
 0x6c0   : > { %v3567_v48 = vpop.f32.mrf.mxu0 }
 0x6c4   : > { %v3578_v19 = vpop.f32.mrf.mxu2 }
 0x6c5   : > { %v3583_v20 = vpack.c.bf16 %v3578_v19, %v3578_v19  ;;  %v7951_v19 = vld [vmem:[#allocation8 + $0x1d4] sm:$0xf] }
 0x6c7   : > { %3798 = vmatmul.bf16.vlgmr.msra.gmra.mxu3 %v3583_v20  ;;  %3824 = vmatmul.bf16.vlgmr.msra.gmra.mxu2 %v3583_v20 }
 0x6cc   : > { %v3580_v21 = vpop.f32.mrf.mxu2 }
 0x6cd   : > { %v6995_v21 = vor.u32 %v7952_v15, %v6994_v14  ;;  %v7942_v14 = vld [vmem:[#allocation8 + $0x184] sm:$0xf0]  ;;  %v7908_v15 = vld [vmem:[#allocation8 + $0x74] sm:$0xf0] }
 0x738   : > { %v3786_v22 = vpop.f32.mrf.mxu1  ;;  %v3812_v8 = vpop.f32.mrf.mxu0 }
 0x740   : > { %v3788_v23 = vpop.f32.mrf.mxu1  ;;  %v3814_v3 = vpop.f32.mrf.mxu0 }
 0x741   : > { %v6932_v23 = vld [vmem:[#allocation8 + $0x158] sm:$0xf0]  ;;  %v7934_v3 = vld [vmem:[#allocation8 + $0x144] sm:$0xf0] }
 0x74a   : > { %v3799_v25 = vpop.f32.mrf.mxu3  ;;  %v3825_v26 = vpop.f32.mrf.mxu2 }
 0x74b   : > { %v3800_v17 = vadd.f32 %v3799_v25, %v3786_v22  ;;  %v3826_v28 = vadd.f32 %v3825_v26, %v3812_v8  ;;  %v6996_v22 = vld [vmem:[#allocation8 + $0x1d8] sm:$0xf0]  ;;  %v7935_v8 = vld [vmem:[#allocation8 + $0x154] sm:$0xf]  ;;  %v7950_v25 = vld [vmem:[#allocation8 + $0x1c4] sm:$0xf0] }
 0x74c   : > { %v6914_v26 = vld [vmem:[#allocation8 + $0x130] sm:$0xf] }
 0x74d   : > { %v3829_v30 = vadd.f32 %v3800_v17, %v3522_v12  ;;  %v3830_v31 = vadd.f32 %v3826_v28, %v3548_v13  ;;  %v6940_v12 = vld [vmem:[#allocation8 + $0x168] sm:$0xf0]  ;;  %v7936_v13 = vld [vmem:[#allocation8 + $0x154] sm:$0xf0]  ;;  %v6999_v17 = vor.u32 %v7951_v19, %v6996_v22  ;;  %v7949_v28 = vld [vmem:[#allocation8 + $0x1c4] sm:$0xf] }
 0x74e   : > { %v6943_v48 = vor.u32 %v7937_v11, %v6940_v12  ;;  %v6931_v20 = vor.u32 %v7936_v13, %v6930_v4  ;;  %v6900_v11 = vld [vmem:[#allocation8 + $0x118] sm:$0xf0]  ;;  %v7074_v12 = vld [vmem:[#allocation8 + $0x70] sm:$0xf]  ;;  %v6954_v13 = vld [vmem:[#allocation8 + $0x180] sm:$0xf] }
 0x74f   : > { %v3837_v35 = vadd.f32 %v3833_v27, %v3829_v30  ;;  %v3838_v36 = vadd.f32 %v3834_v29, %v3830_v31  ;;  %v6935_v27 = vor.u32 %v7935_v8, %v6932_v23  ;;  %v6923_v29 = vor.u32 %v7934_v3, %v6922_v16  ;;  %v6988_v31 = vld [vmem:[#allocation8 + $0x1c8] sm:$0xf0]  ;;  %v7138_v16 = vld [vmem:[#allocation8 + $0xf0] sm:$0xf]  ;;  %v7066_v8 = vld [vmem:[#allocation8 + $0x60] sm:$0xf] }
 0x750   : > { %v6987_v30 = vor.u32 %v7950_v25, %v6986_v24  ;;  %v6903_v19 = vor.u32 %v7927_v10, %v6900_v11  ;;  %v6955_v23 = vor.u32 %v7942_v14, %v6954_v13  ;;  %v7923_v3 = vld [vmem:[#allocation8 + $0xf4] sm:$0xf]  ;;  %v7925_v24 = vld [vmem:[#allocation8 + $0x104] sm:$0xf]  ;;  %v6892_v25 = vld [vmem:[#allocation8 + $0x108] sm:$0xf0] }
 0x751   : > { %vm3839_vm15 = vcmp.gt.f32.partialorder %v3837_v35, 0.0  ;;  %v3841_v39 = vmul.f32 0.2, %v3837_v35  ;;  %vm3840_vm0 = vcmp.gt.f32.partialorder %v3838_v36, 0.0  ;;  %v3842_v40 = vmul.f32 0.2, %v3838_v36 }
 0x752   : > { %v3801_v41 = vpop.f32.mrf.mxu3  ;;  %v3827_v43 = vpop.f32.mrf.mxu2  ;;  %v7903_v10 = vld [vmem:[#allocation8 + $0x54] sm:$0xf]  ;;  %v7060_v11 = vld [vmem:[#allocation8 + $0x58] sm:$0xf0]  ;;  %v7098_v13 = vld [vmem:[#allocation8 + $0xa0] sm:$0xf] }
 0x753   : > { %v3843_v33 = vsel %vm3839_vm15, %v3837_v35, %v3841_v39  ;;  %v3844_v44 = vsel %vm3840_vm0, %v3838_v36, %v3842_v40  ;;  %v6924_v35 = vld [vmem:[#allocation8 + $0x148] sm:$0xf0]  ;;  %v7932_v36 = vld [vmem:[#allocation8 + $0x134] sm:$0xf0]  ;;  %v6906_v39 = vld [vmem:[#allocation8 + $0x120] sm:$0xf]  ;;  %v6991_v40 = vor.u32 %v7949_v28, %v6988_v31 }
 0x754   : > { %v3851_v46 = vadd.f32 %v3847_v37, %v3843_v33  ;;  %v3852_v34 = vadd.f32 %v3848_v38, %v3844_v44  ;;  %v6978_v37 = vld [vmem:[#allocation8 + $0x1b0] sm:$0xf]  ;;  %v7948_v38 = vld [vmem:[#allocation8 + $0x1b4] sm:$0xf0]  ;;  %v6927_v41 = vor.u32 %v7933_v32, %v6924_v35  ;;  %v7947_v43 = vld [vmem:[#allocation8 + $0x1b4] sm:$0xf]  ;;  %v6915_v33 = vor.u32 %v7932_v36, %v6914_v26 }
 0x755   : > { %v6979_v44 = vor.u32 %v7948_v38, %v6978_v37  ;;  %v6907_v55 = vor.u32 %v7930_v47, %v6906_v39  ;;  %v7075_v26 = vor.u32 %v7908_v15, %v7074_v12  ;;  %v7907_v28 = vld [vmem:[#allocation8 + $0x74] sm:$0xf]  ;;  %v7130_v31 = vld [vmem:[#allocation8 + $0xe0] sm:$0xf]  ;;  %v7922_v32 = vld [vmem:[#allocation8 + $0xe4] sm:$0xf0]  ;;  %v6895_v36 = vor.u32 %v7925_v24, %v6892_v25 }
 0x756   : > { %v3853_v51 = vpack.c.bf16 %v3851_v46, %v3851_v46  ;;  %v3854_v52 = vpack.c.bf16 %v3852_v34, %v3852_v34  ;;  %v7931_v46 = vld [vmem:[#allocation8 + $0x134] sm:$0xf]  ;;  %v6916_v34 = vld [vmem:[#allocation8 + $0x138] sm:$0xf0]  ;;  %v7063_v12 = vor.u32 %v7903_v10, %v7060_v11  ;;  %v7914_v14 = vld [vmem:[#allocation8 + $0xa4] sm:$0xf0] }
 0x757   : > { %v6919_v53 = vor.u32 %v7931_v46, %v6916_v34  ;;  %v7920_v46 = vld [vmem:[#allocation8 + $0xd4] sm:$0xf0]  ;;  %v7099_v15 = vor.u32 %v7914_v14, %v7098_v13  ;;  %v7899_v25 = vld [vmem:[#allocation8 + $0x34] sm:$0xf] }
 0x758   : > { %v8926_v61 = vsel %vm3860_vm1, %v3853_v51, 0  ;;  %v8928_v63 = vsel %vm3860_vm1, %v3854_v52, 0  ;;  %v6898_v51 = vld [vmem:[#allocation8 + $0x110] sm:$0xf]  ;;  %v6983_v52 = vor.u32 %v7947_v43, %v6980_v45  ;;  %v7921_v43 = vld [vmem:[#allocation8 + $0xe4] sm:$0xf] }
 0x759   : > { %3874 = vmatpush.bf16.msra.mxu1 %v8926_v61  ;;  %3887 = vmatpush.bf16.msrb.mxu3 %v8928_v63  ;;  %v6899_v6 = vor.u32 %v7928_v60, %v6898_v51  ;;  %v7122_v45 = vld [vmem:[#allocation8 + $0xd0] sm:$0xf]  ;;  %v7902_v51 = vld [vmem:[#allocation8 + $0x44] sm:$0xf0]  ;;  %v7912_v24 = vld [vmem:[#allocation8 + $0x94] sm:$0xf0] }
 0x75a   : > { %3939 = vmatpush.bf16.msrb.mxu0 %v8926_v61  ;;  %3952 = vmatpush.bf16.msrb.mxu2 %v8928_v63  ;;  %v7971_v10 = vld [vmem:[#allocation8 + $0x274] sm:$0xf]  ;;  %v7988_v11 = vld [vmem:[#allocation8 + $0x2f4] sm:$0xf0] }
 0x75c   : > { %6884 = vmatmul.msk.bf16.vlgmr.msrb.gmra.mxu3 %vm3856_vm2, %v3855_v1  ;;  %6883 = vmatmul.msk.bf16.vlgmr.msra.gmra.mxu1 %vm3856_vm2, %v3855_v1  ;;  %v6890_v1 = vld [vmem:[#allocation8 + $0x100] sm:$0xf] }
 0x75d   : > { %4153 = vmatpush.bf16.msrb.mxu1 %v6947_v56  ;;  %4166 = vmatpush.bf16.msra.mxu3 %v7011_v57  ;;  %v6971_v56 = vor.u32 %v7946_v50, %v6970_v49  ;;  %v6972_v57 = vld [vmem:[#allocation8 + $0x1a8] sm:$0xf0]  ;;  %v7050_v49 = vld [vmem:[#allocation8 + $0x40] sm:$0xf]  ;;  %v7123_v50 = vor.u32 %v7920_v46, %v7122_v45  ;;  %v7028_v46 = vld [vmem:[#allocation8 + $0x18] sm:$0xf0] }
 0x75e   : > { %6886 = vmatmul.msk.bf16.vlgmr.msrb.gmra.mxu0 %vm3856_vm2, %v6885_v2  ;;  %6887 = vmatmul.msk.bf16.vlgmr.msrb.gmra.mxu2 %vm3856_vm2, %v6885_v2  ;;  %v7926_v2 = vld [vmem:[#allocation8 + $0x104] sm:$0xf0]  ;;  %v6975_v4 = vor.u32 %v7945_v54, %v6972_v57  ;;  %v7051_v54 = vor.u32 %v7902_v51, %v7050_v49  ;;  %v7900_v57 = vld [vmem:[#allocation8 + $0x34] sm:$0xf0]  ;;  %v7092_v49 = vld [vmem:[#allocation8 + $0x98] sm:$0xf0] }
 0x75f   : > { %4192 = vmatpush.bf16.msra.mxu2 %v7015_v5  ;;  %4179 = vmatpush.bf16.msra.mxu0 %v6951_v42  ;;  %v6911_v5 = vor.u32 %v7929_v58, %v6908_v59  ;;  %v7943_v42 = vld [vmem:[#allocation8 + $0x194] sm:$0xf]  ;;  %v6891_v22 = vor.u32 %v7926_v2, %v6890_v1  ;;  %v7106_v58 = vld [vmem:[#allocation8 + $0xb0] sm:$0xf]  ;;  %v7916_v59 = vld [vmem:[#allocation8 + $0xb4] sm:$0xf0] }
 0x760   : > { %v7898_v1 = vld [vmem:[#allocation8 + $0x24] sm:$0xf0]  ;;  %v7893_v51 = vld [vmem:[#allocation8 + $0x4] sm:$0xf] }
 0x761   : > { %4154 = vmatpush.bf16.msrb.mxu1 %v6939_v7  ;;  %4167 = vmatpush.bf16.msra.mxu3 %v7003_v9  ;;  %v6963_v7 = vor.u32 %v7944_v0, %v6962_v62  ;;  %v6964_v9 = vld [vmem:[#allocation8 + $0x198] sm:$0xf0]  ;;  %v7107_v62 = vor.u32 %v7916_v59, %v7106_v58  ;;  %v7034_v0 = vld [vmem:[#allocation8 + $0x20] sm:$0xf] }
 0x762   : > { %v7035_v2 = vor.u32 %v7898_v1, %v7034_v0 }
 0x763   : > { %4193 = vmatpush.bf16.msra.mxu2 %v7007_v18  ;;  %4180 = vmatpush.bf16.msra.mxu0 %v6943_v48  ;;  %v7924_v18 = vld [vmem:[#allocation8 + $0xf4] sm:$0xf0]  ;;  %v6967_v48 = vor.u32 %v7943_v42, %v6964_v9 }
 0x765   : > { %4155 = vmatpush.bf16.msrb.mxu1 %v6931_v20  ;;  %4168 = vmatpush.bf16.msra.mxu3 %v6995_v21  ;;  %v7941_v20 = vld [vmem:[#allocation8 + $0x184] sm:$0xf]  ;;  %v6956_v21 = vld [vmem:[#allocation8 + $0x188] sm:$0xf0] }
 0x766   : > { %v6959_v35 = vor.u32 %v7941_v20, %v6956_v21  ;;  %v7919_v20 = vld [vmem:[#allocation8 + $0xd4] sm:$0xf] }
 0x767   : > { %4194 = vmatpush.bf16.msra.mxu2 %v6999_v17  ;;  %4181 = vmatpush.bf16.msra.mxu0 %v6935_v27  ;;  %v7139_v17 = vor.u32 %v7924_v18, %v7138_v16  ;;  %v7140_v27 = vld [vmem:[#allocation8 + $0xf8] sm:$0xf0]  ;;  %v7901_v16 = vld [vmem:[#allocation8 + $0x44] sm:$0xf]  ;;  %v7052_v18 = vld [vmem:[#allocation8 + $0x48] sm:$0xf0] }
 0x768   : > { %v7143_v37 = vor.u32 %v7923_v3, %v7140_v27  ;;  %v7055_v21 = vor.u32 %v7901_v16, %v7052_v18  ;;  %v7090_v3 = vld [vmem:[#allocation8 + $0x90] sm:$0xf]  ;;  %v7917_v27 = vld [vmem:[#allocation8 + $0xc4] sm:$0xf]  ;;  %v7207_v16 = vld [vmem:[#allocation8 + $0x278] sm:$0xf0] }
 0x769   : > { %4156 = vmatpush.bf16.msrb.mxu1 %v6923_v29  ;;  %4169 = vmatpush.bf16.msra.mxu3 %v6987_v30  ;;  %v7076_v29 = vld [vmem:[#allocation8 + $0x78] sm:$0xf0]  ;;  %v7906_v30 = vld [vmem:[#allocation8 + $0x64] sm:$0xf0] }
 0x76a   : > { %v7079_v38 = vor.u32 %v7907_v28, %v7076_v29  ;;  %v7067_v39 = vor.u32 %v7906_v30, %v7066_v8  ;;  %v7124_v8 = vld [vmem:[#allocation8 + $0xd8] sm:$0xf0]  ;;  %v7116_v28 = vld [vmem:[#allocation8 + $0xc8] sm:$0xf0] }
 0x76b   : > { %4195 = vmatpush.bf16.msra.mxu2 %v6991_v40  ;;  %4182 = vmatpush.bf16.msra.mxu0 %v6927_v41  ;;  %v7058_v40 = vld [vmem:[#allocation8 + $0x50] sm:$0xf]  ;;  %v7131_v41 = vor.u32 %v7922_v32, %v7130_v31  ;;  %v7119_v30 = vor.u32 %v7917_v27, %v7116_v28  ;;  %v7082_v31 = vld [vmem:[#allocation8 + $0x80] sm:$0xf]  ;;  %v7910_v32 = vld [vmem:[#allocation8 + $0x84] sm:$0xf0] }
 0x76c   : > { %v7253_v28 = vld [vmem:[#allocation8 + $0x2d0] sm:$0xf] }
 0x76d   : > { %4157 = vmatpush.bf16.msrb.mxu1 %v6915_v33  ;;  %4170 = vmatpush.bf16.msra.mxu3 %v6979_v44  ;;  %v7132_v33 = vld [vmem:[#allocation8 + $0xe8] sm:$0xf0]  ;;  %v7904_v44 = vld [vmem:[#allocation8 + $0x54] sm:$0xf0] }
 0x76e   : > { %v7135_v34 = vor.u32 %v7921_v43, %v7132_v33  ;;  %v7059_v47 = vor.u32 %v7904_v44, %v7058_v40  ;;  %v7913_v43 = vld [vmem:[#allocation8 + $0xa4] sm:$0xf]  ;;  %v7100_v33 = vld [vmem:[#allocation8 + $0xa8] sm:$0xf0]  ;;  %v7895_v44 = vld [vmem:[#allocation8 + $0x14] sm:$0xf] }
 0x76f   : > { %4196 = vmatpush.bf16.msra.mxu2 %v6983_v52  ;;  %4183 = vmatpush.bf16.msra.mxu0 %v6919_v53  ;;  %v7114_v52 = vld [vmem:[#allocation8 + $0xc0] sm:$0xf]  ;;  %v7918_v53 = vld [vmem:[#allocation8 + $0xc4] sm:$0xf0]  ;;  %v7103_v45 = vor.u32 %v7913_v43, %v7100_v33 }
 0x770   : > { %v7181_v43 = vld [vmem:[#allocation8 + $0x240] sm:$0xf]  ;;  %v7966_v33 = vld [vmem:[#allocation8 + $0x244] sm:$0xf0] }
 0x771   : > { %4158 = vmatpush.bf16.msrb.mxu1 %v6907_v55  ;;  %4171 = vmatpush.bf16.msra.mxu3 %v6971_v56  ;;  %v7042_v55 = vld [vmem:[#allocation8 + $0x30] sm:$0xf]  ;;  %v7115_v56 = vor.u32 %v7918_v53, %v7114_v52  ;;  %v7020_v52 = vld [vmem:[#allocation8 + $0x8] sm:$0xf0]  ;;  %v7909_v53 = vld [vmem:[#allocation8 + $0x84] sm:$0xf] }
 0x772   : > { %v7043_v60 = vor.u32 %v7900_v57, %v7042_v55  ;;  %v7023_v55 = vor.u32 %v7893_v51, %v7020_v52  ;;  %v7247_v52 = vld [vmem:[#allocation8 + $0x2c8] sm:$0xf0] }
 0x773   : > { %4197 = vmatpush.bf16.msra.mxu2 %v6975_v4  ;;  %4184 = vmatpush.bf16.msra.mxu0 %v6911_v5  ;;  %v7026_v4 = vld [vmem:[#allocation8 + $0x10] sm:$0xf]  ;;  %v7896_v5 = vld [vmem:[#allocation8 + $0x14] sm:$0xf0] }
 0x774   : > { %v7027_v42 = vor.u32 %v7896_v5, %v7026_v4 }
 0x775   : > { %4159 = vmatpush.bf16.msrb.mxu1 %v6899_v6  ;;  %4172 = vmatpush.bf16.msra.mxu3 %v6963_v7  ;;  %v7905_v6 = vld [vmem:[#allocation8 + $0x64] sm:$0xf]  ;;  %v7068_v7 = vld [vmem:[#allocation8 + $0x68] sm:$0xf0] }
 0x776   : > { %v7071_v9 = vor.u32 %v7905_v6, %v7068_v7  ;;  %v7205_v7 = vld [vmem:[#allocation8 + $0x270] sm:$0xf] }
 0x777   : > { %4198 = vmatpush.bf16.msra.mxu2 %v6967_v48  ;;  %4185 = vmatpush.bf16.msra.mxu0 %v6903_v19  ;;  %v7018_v48 = vld [vmem:[#allocation8] sm:$0xf]  ;;  %v7894_v19 = vld [vmem:[#allocation8 + $0x4] sm:$0xf0] }
 0x779   : > { %4160 = vmatpush.bf16.msrb.mxu1 %v6891_v22  ;;  %4173 = vmatpush.bf16.msra.mxu3 %v6955_v23  ;;  %v7019_v22 = vor.u32 %v7894_v19, %v7018_v48  ;;  %v7127_v23 = vor.u32 %v7919_v20, %v7124_v8  ;;  %v7210_v48 = vor.u32 %v7971_v10, %v7207_v16  ;;  %v7197_v19 = vld [vmem:[#allocation8 + $0x260] sm:$0xf]  ;;  %v7970_v20 = vld [vmem:[#allocation8 + $0x264] sm:$0xf0]  ;;  %v7199_v8 = vld [vmem:[#allocation8 + $0x268] sm:$0xf0] }
 0x77a   : > { %v7167_v10 = vld [vmem:[#allocation8 + $0x228] sm:$0xf0] }
 0x77b   : > { %4199 = vmatpush.bf16.msra.mxu2 %v6959_v35  ;;  %4186 = vmatpush.bf16.msra.mxu0 %v6895_v36  ;;  %v7897_v35 = vld [vmem:[#allocation8 + $0x24] sm:$0xf]  ;;  %v7083_v36 = vor.u32 %v7910_v32, %v7082_v31  ;;  %v7255_v32 = vld [vmem:[#allocation8 + $0x2d8] sm:$0xf0] }
 0x77d   : > { %4365 = vmatpush.bf16.msra.mxu1 %v7075_v26  ;;  %4378 = vmatpush.bf16.msrb.mxu3 %v7139_v17  ;;  %v7091_v26 = vor.u32 %v7912_v24, %v7090_v3  ;;  %v7044_v17 = vld [vmem:[#allocation8 + $0x38] sm:$0xf0]  ;;  %v7986_v3 = vld [vmem:[#allocation8 + $0x2e4] sm:$0xf0]  ;;  %v7985_v24 = vld [vmem:[#allocation8 + $0x2e4] sm:$0xf] }
 0x77e   : > { %v7047_v29 = vor.u32 %v7899_v25, %v7044_v17  ;;  %v7263_v17 = vld [vmem:[#allocation8 + $0x2e8] sm:$0xf0] }
 0x77f   : > { %4404 = vmatpush.bf16.msrb.mxu2 %v7143_v37  ;;  %4391 = vmatpush.bf16.msrb.mxu0 %v7079_v38  ;;  %v7036_v37 = vld [vmem:[#allocation8 + $0x28] sm:$0xf0]  ;;  %v7915_v38 = vld [vmem:[#allocation8 + $0xb4] sm:$0xf]  ;;  %v7266_v27 = vor.u32 %v7985_v24, %v7263_v17 }
 0x780   : > { %v7039_v40 = vor.u32 %v7897_v35, %v7036_v37  ;;  %v7189_v35 = vld [vmem:[#allocation8 + $0x250] sm:$0xf]  ;;  %v7959_v24 = vld [vmem:[#allocation8 + $0x214] sm:$0xf] }
 0x781   : > { %4366 = vmatpush.bf16.msra.mxu1 %v7067_v39  ;;  %4379 = vmatpush.bf16.msrb.mxu3 %v7131_v41  ;;  %v7108_v39 = vld [vmem:[#allocation8 + $0xb8] sm:$0xf0] }
 0x782   : > { %v7111_v41 = vor.u32 %v7915_v38, %v7108_v39  ;;  %v7967_v39 = vld [vmem:[#allocation8 + $0x254] sm:$0xf] }
 0x783   : > { %4405 = vmatpush.bf16.msrb.mxu2 %v7135_v34  ;;  %4392 = vmatpush.bf16.msrb.mxu0 %v7071_v9  ;;  %v7031_v34 = vor.u32 %v7895_v44, %v7028_v46  ;;  %v7972_v9 = vld [vmem:[#allocation8 + $0x274] sm:$0xf0]  ;;  %v7965_v44 = vld [vmem:[#allocation8 + $0x244] sm:$0xf]  ;;  %v7183_v46 = vld [vmem:[#allocation8 + $0x248] sm:$0xf0] }
 0x784   : > { %v7206_v13 = vor.u32 %v7972_v9, %v7205_v7  ;;  %v7961_v7 = vld [vmem:[#allocation8 + $0x224] sm:$0xf] }
 0x785   : > { %4367 = vmatpush.bf16.msra.mxu1 %v7059_v47  ;;  %4380 = vmatpush.bf16.msrb.mxu3 %v7123_v50  ;;  %v7911_v47 = vld [vmem:[#allocation8 + $0x94] sm:$0xf] }
 0x786   : > { %v7095_v50 = vor.u32 %v7911_v47, %v7092_v49  ;;  %v7982_v47 = vld [vmem:[#allocation8 + $0x2c4] sm:$0xf0]  ;;  %v7981_v49 = vld [vmem:[#allocation8 + $0x2c4] sm:$0xf] }
 0x787   : > { %4393 = vmatpush.bf16.msrb.mxu0 %v7063_v12  ;;  %4406 = vmatpush.bf16.msrb.mxu2 %v7127_v23  ;;  %v7987_v12 = vld [vmem:[#allocation8 + $0x2f4] sm:$0xf]  ;;  %v7261_v23 = vld [vmem:[#allocation8 + $0x2e0] sm:$0xf] }
 0x789   : > { %4368 = vmatpush.bf16.msra.mxu1 %v7051_v54  ;;  %4381 = vmatpush.bf16.msrb.mxu3 %v7115_v56  ;;  %v7084_v54 = vld [vmem:[#allocation8 + $0x88] sm:$0xf0] }
 0x78a   : > { %v7087_v56 = vor.u32 %v7909_v53, %v7084_v54  ;;  %v7250_v53 = vor.u32 %v7981_v49, %v7247_v52  ;;  %v7173_v54 = vld [vmem:[#allocation8 + $0x230] sm:$0xf]  ;;  %v7361_v52 = vld [vmem:[%s9385_s21 + $0xa8] sm:$0xf] }
 0x78b   : > { %4394 = vmatpush.bf16.msrb.mxu0 %v7055_v21  ;;  %4407 = vmatpush.bf16.msrb.mxu2 %v7119_v30  ;;  %v7969_v21 = vld [vmem:[#allocation8 + $0x264] sm:$0xf]  ;;  %v7983_v30 = vld [vmem:[#allocation8 + $0x2d4] sm:$0xf] }
 0x78c   : > { %v7202_v25 = vor.u32 %v7969_v21, %v7199_v8  ;;  %v7258_v37 = vor.u32 %v7983_v30, %v7255_v32  ;;  %v7223_v21 = vld [vmem:[#allocation8 + $0x298] sm:$0xf0]  ;;  %v7960_v8 = vld [vmem:[#allocation8 + $0x214] sm:$0xf0]  ;;  %v7957_v30 = vld [vmem:[#allocation8 + $0x204] sm:$0xf] }
 0x78d   : > { %4369 = vmatpush.bf16.msra.mxu1 %v7043_v60  ;;  %4382 = vmatpush.bf16.msrb.mxu3 %v7107_v62  ;;  %v7151_v32 = vld [vmem:[#allocation8 + $0x208] sm:$0xf0] }
 0x78f   : > { %4395 = vmatpush.bf16.msrb.mxu0 %v7047_v29  ;;  %4408 = vmatpush.bf16.msrb.mxu2 %v7111_v41  ;;  %v7984_v29 = vld [vmem:[#allocation8 + $0x2d4] sm:$0xf0] }
 0x790   : > { %v7254_v31 = vor.u32 %v7984_v29, %v7253_v28  ;;  %v7149_v28 = vld [vmem:[#allocation8 + $0x200] sm:$0xf]  ;;  %v7958_v29 = vld [vmem:[#allocation8 + $0x204] sm:$0xf0] }
 0x791   : > { %4370 = vmatpush.bf16.msra.mxu1 %v7035_v2  ;;  %4383 = vmatpush.bf16.msrb.mxu3 %v7099_v15  ;;  %v7271_v15 = vld [vmem:[#allocation8 + $0x2f8] sm:$0xf0] }
 0x792   : > { %v7274_v18 = vor.u32 %v7987_v12, %v7271_v15  ;;  %v7977_v12 = vld [vmem:[#allocation8 + $0x2a4] sm:$0xf]  ;;  %v7231_v15 = vld [vmem:[#allocation8 + $0x2a8] sm:$0xf0] }
 0x793   : > { %4396 = vmatpush.bf16.msrb.mxu0 %v7039_v40  ;;  %4409 = vmatpush.bf16.msrb.mxu2 %v7103_v45  ;;  %v7191_v40 = vld [vmem:[#allocation8 + $0x258] sm:$0xf0]  ;;  %v7182_v45 = vor.u32 %v7966_v33, %v7181_v43  ;;  %v7234_v16 = vor.u32 %v7977_v12, %v7231_v15 }
 0x794   : > { %v7194_v41 = vor.u32 %v7967_v39, %v7191_v40  ;;  %v7215_v40 = vld [vmem:[#allocation8 + $0x288] sm:$0xf0] }
 0x795   : > { %4371 = vmatpush.bf16.msra.mxu1 %v7027_v42  ;;  %4384 = vmatpush.bf16.msrb.mxu3 %v7091_v26  ;;  %v7262_v26 = vor.u32 %v7986_v3, %v7261_v23 }
 0x797   : > { %4397 = vmatpush.bf16.msrb.mxu0 %v7031_v34  ;;  %4410 = vmatpush.bf16.msrb.mxu2 %v7095_v50  ;;  %v7245_v34 = vld [vmem:[#allocation8 + $0x2c0] sm:$0xf]  ;;  %v7186_v50 = vor.u32 %v7965_v44, %v7183_v46 }
 0x798   : > { %v7246_v51 = vor.u32 %v7982_v47, %v7245_v34 }
 0x799   : > { %4372 = vmatpush.bf16.msra.mxu1 %v7019_v22  ;;  %4385 = vmatpush.bf16.msrb.mxu3 %v7083_v36  ;;  %v7198_v22 = vor.u32 %v7970_v20, %v7197_v19  ;;  %v7968_v36 = vld [vmem:[#allocation8 + $0x254] sm:$0xf0]  ;;  %v7975_v19 = vld [vmem:[#allocation8 + $0x294] sm:$0xf] }
 0x79a   : > { %v7190_v38 = vor.u32 %v7968_v36, %v7189_v35  ;;  %v7226_v23 = vor.u32 %v7975_v19, %v7223_v21  ;;  %v7213_v35 = vld [vmem:[#allocation8 + $0x280] sm:$0xf]  ;;  %v7974_v36 = vld [vmem:[#allocation8 + $0x284] sm:$0xf0]  ;;  %v8007_v19 = vld [vmem:[%s9385_s21 + $0x94] sm:$0xf] }
 0x79b   : > { %4398 = vmatpush.bf16.msrb.mxu0 %v7023_v55  ;;  %4411 = vmatpush.bf16.msrb.mxu2 %v7087_v56  ;;  %v7964_v55 = vld [vmem:[#allocation8 + $0x234] sm:$0xf0]  ;;  %v7963_v56 = vld [vmem:[#allocation8 + $0x234] sm:$0xf]  ;;  %v7214_v39 = vor.u32 %v7974_v36, %v7213_v35  ;;  %v7313_v35 = vld [vmem:[%s9385_s21 + $0x48] sm:$0xf] }
 0x79c   : > { %v8031_v21 = vld [vmem:[%s9385_s21 + $0x154] sm:$0xf] }
 0x79d   : > { %v7999_v36 = vld [vmem:[%s9385_s21 + $0x50] sm:$0xf0] }
 0x7d9   : > { %v3876_v57 = vpop.f32.mrf.mxu1 }
 0x7da   : > { %v3893_v42 = vpack.c.bf16 %v3876_v57, %v3876_v57  ;;  %v7237_v57 = vld [vmem:[#allocation8 + $0x2b0] sm:$0xf] }
 0x7db   : > { %v3941_v58 = vpop.f32.mrf.mxu0 }
 0x7dc   : > { %v3958_v59 = vpack.c.bf16 %v3941_v58, %v3941_v58  ;;  %v7980_v58 = vld [vmem:[#allocation8 + $0x2b4] sm:$0xf0] }
 0x7de   : > { %4161 = vmatmul.bf16.vlgmr.msrb.gmra.mxu1 %v3958_v59  ;;  %4187 = vmatmul.bf16.vlgmr.msra.gmra.mxu0 %v3958_v59  ;;  %v7979_v59 = vld [vmem:[#allocation8 + $0x2b4] sm:$0xf] }
 0x7df   : > { %4429 = vmatpush.bf16.msrb.mxu1 %v8926_v61  ;;  %v3889_v60 = vpop.f32.mrf.mxu3  ;;  %v7144_v61 = vld [vmem:[%s9381_s17 + $0x2] sm:$0x1]  ;;  %4643 = vmatpush.bf16.msra.mxu0 %v7206_v13  ;;  %v7170_v13 = vor.u32 %v7961_v7, %v7167_v10  ;;  %v8010_v7 = vld [vmem:[%s9385_s21 + $0xac] sm:$0xf] }
 0x7e0   : > { %v3894_v6 = vpack.c.bf16 %v3889_v60, %v3889_v60  ;;  %v7174_v60 = vor.u32 %v7964_v55, %v7173_v54  ;;  %v7457_v54 = vld [vmem:[%s9385_s21 + $0x168] sm:$0xf] }
 0x7e1   : > { %v3954_v62 = vpop.f32.mrf.mxu2  ;;  %v3878_v1 = vpop.f32.mrf.mxu1 }
 0x7e2   : > { %v3959_v0 = vpack.c.bf16 %v3954_v62, %v3954_v62  ;;  %v7238_v62 = vor.u32 %v7980_v58, %v7237_v57  ;;  %v7175_v1 = vld [vmem:[#allocation8 + $0x238] sm:$0xf0]  ;;  %v7349_v57 = vld [vmem:[%s9385_s21 + $0x90] sm:$0xf] }
 0x7e3   : > { %v3943_v2 = vpop.f32.mrf.mxu0  ;;  %4644 = vmatpush.bf16.msra.mxu0 %v7198_v22  ;;  %v7157_v22 = vld [vmem:[#allocation8 + $0x210] sm:$0xf]  ;;  %v8008_v58 = vld [vmem:[%s9385_s21 + $0x98] sm:$0xf0] }
 0x7e4   : > { %4174 = vmatmul.bf16.vlgmr.msra.gmra.mxu3 %v3959_v0  ;;  %4200 = vmatmul.bf16.vlgmr.msra.gmra.mxu2 %v3959_v0  ;;  %v7239_v0 = vld [vmem:[#allocation8 + $0x2b8] sm:$0xf0]  ;;  %v7158_v3 = vor.u32 %v7960_v8, %v7157_v22 }
 0x7e5   : > { %4442 = vmatpush.bf16.msra.mxu3 %v8928_v63  ;;  %v7269_v63 = vld [vmem:[#allocation8 + $0x2f0] sm:$0xf]  ;;  %v7242_v2 = vor.u32 %v7979_v59, %v7239_v0  ;;  %v7350_v0 = vor.u32 %v8008_v58, %v7349_v57  ;;  %v7315_v57 = vld [vmem:[%s9385_s21 + $0x54] sm:$0xf0]  ;;  %v8022_v58 = vld [vmem:[%s9385_s21 + $0x10c] sm:$0xf] }
 0x7e6   : > { %v7270_v14 = vor.u32 %v7988_v11, %v7269_v63  ;;  %v7229_v63 = vld [vmem:[#allocation8 + $0x2a0] sm:$0xf]  ;;  %v7978_v11 = vld [vmem:[#allocation8 + $0x2a4] sm:$0xf0] }
 0x7e7   : > { %v3891_v4 = vpop.f32.mrf.mxu3  ;;  %4645 = vmatpush.bf16.msra.mxu0 %v7190_v38  ;;  %v7154_v38 = vor.u32 %v7957_v30, %v7151_v32 }
 0x7e8   : > { %4656 = vmatpush.bf16.msra.mxu2 %v7270_v14  ;;  %v7178_v4 = vor.u32 %v7963_v56, %v7175_v1  ;;  %v7230_v14 = vor.u32 %v7978_v11, %v7229_v63  ;;  %v8035_v56 = vld [vmem:[%s9385_s21 + $0x170] sm:$0xf0]  ;;  %v8034_v63 = vld [vmem:[%s9385_s21 + $0x16c] sm:$0xf]  ;;  %v7459_v11 = vld [vmem:[%s9385_s21 + $0x174] sm:$0xf0] }
 0x7e9   : > { %v3956_v5 = vpop.f32.mrf.mxu2  ;;  %v7458_v59 = vor.u32 %v8035_v56, %v7457_v54  ;;  %v7462_v15 = vor.u32 %v8034_v63, %v7459_v11  ;;  %v7998_v56 = vld [vmem:[%s9385_s21 + $0x4c] sm:$0xf] }
 0x7ea   : > { %v7990_v63 = vld [vmem:[%s9385_s21 + $0x8] sm:$0xf0] }
 0x7eb   : > { %4646 = vmatpush.bf16.msra.mxu0 %v7182_v45 }
 0x7ec   : > { %4657 = vmatpush.bf16.msra.mxu2 %v7262_v26 }
 0x7ee   : > { %4373 = vmatmul.bf16.vlgmr.msra.gmra.mxu1 %v3893_v42  ;;  %4399 = vmatmul.bf16.vlgmr.msrb.gmra.mxu0 %v3893_v42 }
 0x7ef   : > { %4669 = vmatpush.bf16.msra.mxu1 %v7210_v48  ;;  %4647 = vmatpush.bf16.msra.mxu0 %v7174_v60  ;;  %v7976_v48 = vld [vmem:[#allocation8 + $0x294] sm:$0xf0]  ;;  %v7445_v60 = vld [vmem:[%s9385_s21 + $0x150] sm:$0xf] }
 0x7f0   : > { %4658 = vmatpush.bf16.msra.mxu2 %v7254_v31  ;;  %v7150_v31 = vor.u32 %v7958_v29, %v7149_v28  ;;  %v8028_v28 = vld [vmem:[%s9385_s21 + $0x13c] sm:$0xf]  ;;  %v7435_v29 = vld [vmem:[%s9385_s21 + $0x144] sm:$0xf0] }
 0x7f3   : > { %4670 = vmatpush.bf16.msra.mxu1 %v7202_v25  ;;  %v7159_v25 = vld [vmem:[#allocation8 + $0x218] sm:$0xf0] }
 0x7f4   : > { %4386 = vmatmul.bf16.vlgmr.msrb.gmra.mxu3 %v3894_v6  ;;  %4412 = vmatmul.bf16.vlgmr.msrb.gmra.mxu2 %v3894_v6  ;;  %v7165_v6 = vld [vmem:[#allocation8 + $0x220] sm:$0xf]  ;;  %v7162_v26 = vor.u32 %v7959_v24, %v7159_v25 }
 0x7f5   : > { %4682 = vmatpush.bf16.msrb.mxu3 %v7274_v18  ;;  %4659 = vmatpush.bf16.msra.mxu2 %v7246_v51  ;;  %v7221_v18 = vld [vmem:[#allocation8 + $0x290] sm:$0xf]  ;;  %v7447_v25 = vld [vmem:[%s9385_s21 + $0x15c] sm:$0xf0] }
 0x7f6   : > { %v7222_v20 = vor.u32 %v7976_v48, %v7221_v18 }
 0x7f7   : > { %4671 = vmatpush.bf16.msra.mxu1 %v7194_v41 }
 0x7f9   : > { %4683 = vmatpush.bf16.msrb.mxu3 %v7266_v27  ;;  %4660 = vmatpush.bf16.msra.mxu2 %v7238_v62  ;;  %v8032_v62 = vld [vmem:[%s9385_s21 + $0x158] sm:$0xf0] }
 0x7fb   : > { %4672 = vmatpush.bf16.msra.mxu1 %v7186_v50 }
 0x7fd   : > { %4684 = vmatpush.bf16.msrb.mxu3 %v7258_v37  ;;  %4661 = vmatpush.bf16.msra.mxu2 %v7230_v14  ;;  %v7973_v37 = vld [vmem:[#allocation8 + $0x284] sm:$0xf]  ;;  %v8002_v14 = vld [vmem:[%s9385_s21 + $0x68] sm:$0xf0] }
 0x7fe   : > { %7145 = vmatmul.msk.bf16.vlgmr.msrb.gmra.mxu1 %vm3856_vm2, %v7144_v61  ;;  %v7218_v33 = vor.u32 %v7973_v37, %v7215_v40 }
 0x7ff   : > { %4673 = vmatpush.bf16.msra.mxu1 %v7178_v4  ;;  %v7446_v4 = vor.u32 %v8032_v62, %v7445_v60 }
 0x801   : > { %4685 = vmatpush.bf16.msrb.mxu3 %v7250_v53  ;;  %4662 = vmatpush.bf16.msra.mxu2 %v7222_v20  ;;  %v8011_v53 = vld [vmem:[%s9385_s21 + $0xb0] sm:$0xf0]  ;;  %v7351_v20 = vld [vmem:[%s9385_s21 + $0x9c] sm:$0xf0] }
 0x802   : > { %v7362_v55 = vor.u32 %v8011_v53, %v7361_v52  ;;  %v7354_v24 = vor.u32 %v8007_v19, %v7351_v20  ;;  %v7397_v52 = vld [vmem:[%s9385_s21 + $0xf0] sm:$0xf]  ;;  %v8020_v53 = vld [vmem:[%s9385_s21 + $0xf8] sm:$0xf0] }
 0x803   : > { %4674 = vmatpush.bf16.msra.mxu1 %v7170_v13  ;;  %v7325_v13 = vld [vmem:[%s9385_s21 + $0x60] sm:$0xf] }
 0x804   : > { %7146 = vmatmul.msk.bf16.vlgmr.msra.gmra.mxu3 %vm3856_vm2, %v7144_v61  ;;  %v7962_v61 = vld [vmem:[#allocation8 + $0x224] sm:$0xf0] }
 0x805   : > { %v7166_v9 = vor.u32 %v7962_v61, %v7165_v6  ;;  %4686 = vmatpush.bf16.msrb.mxu3 %v7242_v2  ;;  %4663 = vmatpush.bf16.msra.mxu2 %v7214_v39  ;;  %v7433_v6 = vld [vmem:[%s9385_s21 + $0x138] sm:$0xf]  ;;  %v8029_v61 = vld [vmem:[%s9385_s21 + $0x140] sm:$0xf0]  ;;  %v8023_v39 = vld [vmem:[%s9385_s21 + $0x110] sm:$0xf0] }
 0x806   : > { %v7434_v48 = vor.u32 %v8029_v61, %v7433_v6 }
 0x807   : > { %4648 = vmatpush.bf16.msra.mxu0 %v7166_v9  ;;  %4675 = vmatpush.bf16.msra.mxu1 %v7162_v26  ;;  %v7363_v9 = vld [vmem:[%s9385_s21 + $0xb4] sm:$0xf0]  ;;  %v7450_v26 = vor.u32 %v8031_v21, %v7447_v25  ;;  %v8019_v25 = vld [vmem:[%s9385_s21 + $0xf4] sm:$0xf] }
 0x808   : > { %v7366_v10 = vor.u32 %v8010_v7, %v7363_v9 }
 0x809   : > { %4687 = vmatpush.bf16.msrb.mxu3 %v7234_v16  ;;  %5062 = vmatpush.bf16.msrb.mxu2 %v7458_v59  ;;  %v7411_v59 = vld [vmem:[%s9385_s21 + $0x114] sm:$0xf0] }
 0x80a   : > { %v7414_v6 = vor.u32 %v8022_v58, %v7411_v59 }
 0x80b   : > { %4649 = vmatpush.bf16.msra.mxu0 %v7158_v3  ;;  %4676 = vmatpush.bf16.msra.mxu1 %v7154_v38  ;;  %v8026_v3 = vld [vmem:[%s9385_s21 + $0x128] sm:$0xf0]  ;;  %v7409_v38 = vld [vmem:[%s9385_s21 + $0x108] sm:$0xf] }
 0x80d   : > { %4688 = vmatpush.bf16.msrb.mxu3 %v7226_v23  ;;  %5063 = vmatpush.bf16.msrb.mxu2 %v7446_v4  ;;  %v7421_v23 = vld [vmem:[%s9385_s21 + $0x120] sm:$0xf]  ;;  %v7385_v4 = vld [vmem:[%s9385_s21 + $0xd8] sm:$0xf] }
 0x80e   : > { %v7422_v32 = vor.u32 %v8026_v3, %v7421_v23  ;;  %v7995_v3 = vld [vmem:[%s9385_s21 + $0x34] sm:$0xf] }
 0x80f   : > { %4650 = vmatpush.bf16.msra.mxu0 %v7150_v31  ;;  %5075 = vmatpush.bf16.msrb.mxu1 %v7366_v10  ;;  %v7326_v31 = vor.u32 %v8002_v14, %v7325_v13  ;;  %v7277_v10 = vld [vmem:[%s9385_s21] sm:$0xf]  ;;  %v8014_v13 = vld [vmem:[%s9385_s21 + $0xc8] sm:$0xf0]  ;;  %v7369_v14 = vld [vmem:[%s9385_s21 + $0xb0] sm:$0xf] }
 0x811   : > { %4689 = vmatpush.bf16.msrb.mxu3 %v7218_v33  ;;  %5064 = vmatpush.bf16.msrb.mxu2 %v7434_v48  ;;  %v7327_v33 = vld [vmem:[%s9385_s21 + $0x6c] sm:$0xf0]  ;;  %v7278_v48 = vor.u32 %v7990_v63, %v7277_v10 }
 0x813   : > { %5049 = vmatpush.bf16.msrb.mxu0 %v7362_v55  ;;  %5076 = vmatpush.bf16.msrb.mxu1 %v7354_v24  ;;  %v7303_v24 = vld [vmem:[%s9385_s21 + $0x3c] sm:$0xf0] }
 0x815   : > { %5088 = vmatpush.bf16.msra.mxu3 %v7462_v15  ;;  %5065 = vmatpush.bf16.msrb.mxu2 %v7422_v32  ;;  %v8012_v15 = vld [vmem:[%s9385_s21 + $0xb8] sm:$0xf0]  ;;  %v8033_v32 = vld [vmem:[%s9385_s21 + $0x160] sm:$0xf0] }
 0x816   : > { %v7370_v20 = vor.u32 %v8012_v15, %v7369_v14  ;;  %v8018_v14 = vld [vmem:[%s9385_s21 + $0xe8] sm:$0xf0] }
 0x817   : > { %5050 = vmatpush.bf16.msrb.mxu0 %v7350_v0  ;;  %v7398_v0 = vor.u32 %v8020_v53, %v7397_v52  ;;  %v7375_v52 = vld [vmem:[%s9385_s21 + $0xcc] sm:$0xf0]  ;;  %v7333_v53 = vld [vmem:[%s9385_s21 + $0x68] sm:$0xf] }
 0x819   : > { %5089 = vmatpush.bf16.msra.mxu3 %v7450_v26  ;;  %v7306_v26 = vor.u32 %v7995_v3, %v7303_v24 }
 0x85b   : > { %v4162_v5 = vpop.f32.mrf.mxu1  ;;  %v4188_v42 = vpop.f32.mrf.mxu0 }
 0x863   : > { %v4164_v17 = vpop.f32.mrf.mxu1  ;;  %v4190_v27 = vpop.f32.mrf.mxu0 }
 0x864   : > { %v8004_v17 = vld [vmem:[%s9385_s21 + $0x7c] sm:$0xf]  ;;  %v7339_v27 = vld [vmem:[%s9385_s21 + $0x84] sm:$0xf0] }
 0x865   : > { %v7342_v40 = vor.u32 %v8004_v17, %v7339_v27  ;;  %v7399_v17 = vld [vmem:[%s9385_s21 + $0xfc] sm:$0xf0]  ;;  %v7357_v27 = vld [vmem:[%s9385_s21 + $0x98] sm:$0xf] }
 0x867   : > { %v4175_v41 = vpop.f32.mrf.mxu3  ;;  %v4201_v43 = vpop.f32.mrf.mxu2  ;;  %5077 = vmatpush.bf16.msrb.mxu1 %v7342_v40  ;;  %v7387_v40 = vld [vmem:[%s9385_s21 + $0xe4] sm:$0xf0] }
 0x868   : > { %v4176_v44 = vadd.f32 %v4175_v41, %v4162_v5  ;;  %v4202_v45 = vadd.f32 %v4201_v43, %v4188_v42  ;;  %v7337_v5 = vld [vmem:[%s9385_s21 + $0x78] sm:$0xf]  ;;  %v8005_v42 = vld [vmem:[%s9385_s21 + $0x80] sm:$0xf0]  ;;  %v7438_v41 = vor.u32 %v8028_v28, %v7435_v29  ;;  %v7402_v29 = vor.u32 %v8019_v25, %v7399_v17  ;;  %v4697_v25 = vld [vmem:[%s9383_s19] sm:$0x3] }
 0x869   : > { %v7338_v12 = vor.u32 %v8005_v42, %v7337_v5  ;;  %v8001_v43 = vld [vmem:[%s9385_s21 + $0x64] sm:$0xf]  ;;  %v7318_v42 = vor.u32 %v7998_v56, %v7315_v57  ;;  %v7429_v56 = vld [vmem:[%s9385_s21 + $0x128] sm:$0xf]  ;;  %v8027_v57 = vld [vmem:[%s9385_s21 + $0x130] sm:$0xf0] }
 0x86a   : > { %5090 = vmatpush.bf16.msra.mxu3 %v7438_v41  ;;  %v7330_v54 = vor.u32 %v8001_v43, %v7327_v33  ;;  %v8017_v5 = vld [vmem:[%s9385_s21 + $0xe0] sm:$0xf0]  ;;  %v7345_v41 = vld [vmem:[%s9385_s21 + $0x80] sm:$0xf]  ;;  %v8006_v43 = vld [vmem:[%s9385_s21 + $0x88] sm:$0xf0]  ;;  %v7430_v59 = vor.u32 %v8027_v57, %v7429_v56 }
 0x86b   : > { %v4374_v46 = vpop.f32.mrf.mxu1  ;;  %v4400_v34 = vpop.f32.mrf.mxu0  ;;  %5051 = vmatpush.bf16.msrb.mxu0 %v7338_v12  ;;  %v7386_v9 = vor.u32 %v8017_v5, %v7385_v4  ;;  %v7373_v12 = vld [vmem:[%s9385_s21 + $0xc0] sm:$0xf]  ;;  %v8009_v28 = vld [vmem:[%s9385_s21 + $0xa0] sm:$0xf0]  ;;  %v8024_v5 = vld [vmem:[%s9385_s21 + $0x118] sm:$0xf0] }
 0x86c   : > { %v4375_v47 = vadd.f32 %v4374_v46, %v4176_v44  ;;  %v4401_v49 = vadd.f32 %v4400_v34, %v4202_v45  ;;  %v8025_v44 = vld [vmem:[%s9385_s21 + $0x124] sm:$0xf]  ;;  %v7423_v45 = vld [vmem:[%s9385_s21 + $0x12c] sm:$0xf0]  ;;  %5078 = vmatpush.bf16.msrb.mxu1 %v7330_v54  ;;  %v7374_v19 = vor.u32 %v8014_v13, %v7373_v12  ;;  %v7994_v12 = vld [vmem:[%s9385_s21 + $0x28] sm:$0xf0] }
 0x86d   : > { %v7426_v55 = vor.u32 %v8025_v44, %v7423_v45  ;;  %v7346_v44 = vor.u32 %v8006_v43, %v7345_v41  ;;  %v7441_v45 = vld [vmem:[%s9385_s21 + $0x140] sm:$0xf]  ;;  %v8052_v17 = vld [vmem:[%s9387_s23 + $0x78] sm:$0xff]  ;;  %v8050_v41 = vld [vmem:[%s9387_s23 + $0x68] sm:$0xff] }
 0x86e   : > { %v7393_v13 = vld [vmem:[%s9385_s21 + $0xe0] sm:$0xf]  ;;  %v8040_v56 = vld [vmem:[%s9387_s23 + $0x18] sm:$0xff] }
 0x86f   : > { %v4177_v50 = vpop.f32.mrf.mxu3  ;;  %v4203_v51 = vpop.f32.mrf.mxu2  ;;  %5052 = vmatpush.bf16.msrb.mxu0 %v7326_v31  ;;  %5091 = vmatpush.bf16.msra.mxu3 %v7426_v55  ;;  %v7453_v31 = vld [vmem:[%s9385_s21 + $0x158] sm:$0xf]  ;;  %v8003_v55 = vld [vmem:[%s9385_s21 + $0x70] sm:$0xf0] }
 0x870   : > { %v7301_v50 = vld [vmem:[%s9385_s21 + $0x30] sm:$0xf]  ;;  %v7996_v51 = vld [vmem:[%s9385_s21 + $0x38] sm:$0xf0]  ;;  %5079 = vmatpush.bf16.msrb.mxu1 %v7318_v42  ;;  %v7334_v58 = vor.u32 %v8003_v55, %v7333_v53 }
 0x871   : > { %v7302_v62 = vor.u32 %v7996_v51, %v7301_v50  ;;  %v8013_v51 = vld [vmem:[%s9385_s21 + $0xc4] sm:$0xf]  ;;  %v8048_v57 = vld [vmem:[%s9387_s23 + $0x58] sm:$0xff] }
 0x872   : > { %v7378_v54 = vor.u32 %v8013_v51, %v7375_v52 }
 0x873   : > { %v4376_v1 = vpop.f32.mrf.mxu1  ;;  %v4402_v2 = vpop.f32.mrf.mxu0  ;;  %5092 = vmatpush.bf16.msra.mxu3 %v7414_v6  ;;  %v7309_v6 = vld [vmem:[%s9385_s21 + $0x38] sm:$0xf] }
 0x874   : > { %v7289_v1 = vld [vmem:[%s9385_s21 + $0x18] sm:$0xf]  ;;  %v7993_v2 = vld [vmem:[%s9385_s21 + $0x20] sm:$0xf0]  ;;  %5080 = vmatpush.bf16.msrb.mxu1 %v7306_v26 }
 0x875   : > { %v7290_v7 = vor.u32 %v7993_v2, %v7289_v1  ;;  %v8044_v26 = vld [vmem:[%s9387_s23 + $0x38] sm:$0xff] }
 0x877   : > { %v4387_v16 = vpop.f32.mrf.mxu3  ;;  %v4413_v18 = vpop.f32.mrf.mxu2  ;;  %5093 = vmatpush.bf16.msra.mxu3 %v7402_v29  ;;  %v8043_v29 = vld [vmem:[%s9387_s23 + $0x30] sm:$0xff] }
 0x878   : > { %v9014_v22 = vadd.f32 %v4387_v16, %v4375_v47  ;;  %v9016_v8 = vadd.f32 %v4413_v18, %v4401_v49  ;;  %v7314_v47 = vor.u32 %v7999_v36, %v7313_v35  ;;  %v7410_v49 = vor.u32 %v8023_v39, %v7409_v38  ;;  %v7465_v16 = vld [vmem:[%s9385_s21 + $0x170] sm:$0xf]  ;;  %v8036_v18 = vld [vmem:[%s9385_s21 + $0x178] sm:$0xf0] }
 0x879   : > { %v7466_v21 = vor.u32 %v8036_v18, %v7465_v16  ;;  %v7454_v35 = vor.u32 %v8033_v32, %v7453_v31  ;;  %v7992_v36 = vld [vmem:[%s9385_s21 + $0x1c] sm:$0xf]  ;;  %v4699_v32 = vperm.slane %v4697_v25, 0 }
 0x87a   : > { %5053 = vmatpush.bf16.msrb.mxu0 %v7314_v47  ;;  %5066 = vmatpush.bf16.msrb.mxu2 %v7410_v49  ;;  %v8016_v38 = vld [vmem:[%s9385_s21 + $0xdc] sm:$0xf]  ;;  %v7989_v47 = vld [vmem:[%s9385_s21 + $0x4] sm:$0xf]  ;;  %v7279_v49 = vld [vmem:[%s9385_s21 + $0xc] sm:$0xf0] }
 0x87b   : > { %v4431_v30 = vpop.f32.mrf.mxu1  ;;  %v7390_v33 = vor.u32 %v8016_v38, %v7387_v40  ;;  %v7282_v50 = vor.u32 %v7989_v47, %v7279_v49  ;;  %v4711_v38 = vld [vmem:[%s9384_s20] sm:$0x3]  ;;  %v8042_v40 = vld [vmem:[%s9387_s23 + $0x28] sm:$0xff] }
 0x87c   : > { %v4448_v37 = vpack.c.bf16 %v4431_v30, %v4431_v30  ;;  %v7358_v30 = vor.u32 %v8009_v28, %v7357_v27  ;;  %v8041_v47 = vld [vmem:[%s9387_s23 + $0x20] sm:$0xff] }
 0x87d   : > { %5094 = vmatpush.bf16.msra.mxu3 %v7390_v33  ;;  %v8049_v49 = vld [vmem:[%s9387_s23 + $0x60] sm:$0xff] }
 0x87e   : > { %4651 = vmatmul.bf16.vlgmr.msra.gmra.mxu0 %v4448_v37  ;;  %4677 = vmatmul.bf16.vlgmr.msra.gmra.mxu1 %v4448_v37  ;;  %v7291_v37 = vld [vmem:[%s9385_s21 + $0x24] sm:$0xf0] }
 0x87f   : > { %v4389_v46 = vpop.f32.mrf.mxu3  ;;  %v4415_v34 = vpop.f32.mrf.mxu2  ;;  %5054 = vmatpush.bf16.msrb.mxu0 %v7302_v62  ;;  %5067 = vmatpush.bf16.msrb.mxu2 %v7398_v0  ;;  %v7294_v39 = vor.u32 %v7992_v36, %v7291_v37  ;;  %v8000_v62 = vld [vmem:[%s9385_s21 + $0x58] sm:$0xf0]  ;;  %v7417_v0 = vld [vmem:[%s9385_s21 + $0x110] sm:$0xf]  ;;  %v4700_v36 = vperm.slane %v4697_v25, 1 }
 0x880   : > { %v8030_v46 = vld [vmem:[%s9385_s21 + $0x148] sm:$0xf0]  ;;  %v7418_v42 = vor.u32 %v8024_v5, %v7417_v0  ;;  %v8045_v5 = vld [vmem:[%s9387_s23 + $0x40] sm:$0xff] }
 0x881   : > { %5081 = vmatpush.bf16.msrb.mxu1 %v7294_v39  ;;  %v7442_v34 = vor.u32 %v8030_v46, %v7441_v45  ;;  %5095 = vmatpush.bf16.msra.mxu3 %v7378_v54  ;;  %v8038_v0 = vld [vmem:[%s9387_s23 + $0x8] sm:$0xff] }
 0x883   : > { %v4433_v60 = vpop.f32.mrf.mxu1  ;;  %5055 = vmatpush.bf16.msrb.mxu0 %v7290_v7  ;;  %5068 = vmatpush.bf16.msrb.mxu2 %v7386_v9  ;;  %v7405_v7 = vld [vmem:[%s9385_s21 + $0xf8] sm:$0xf]  ;;  %v8021_v9 = vld [vmem:[%s9385_s21 + $0x100] sm:$0xf0] }
 0x884   : > { %v7321_v60 = vld [vmem:[%s9385_s21 + $0x50] sm:$0xf]  ;;  %v7406_v63 = vor.u32 %v8021_v9, %v7405_v7  ;;  %v8054_v7 = vld [vmem:[%s9387_s23 + $0x88] sm:$0xff]  ;;  %v8053_v9 = vld [vmem:[%s9387_s23 + $0x80] sm:$0xff] }
 0x885   : > { %5082 = vmatpush.bf16.msrb.mxu1 %v7282_v50  ;;  %v7322_v4 = vor.u32 %v8000_v62, %v7321_v60  ;;  %v8047_v60 = vld [vmem:[%s9387_s23 + $0x50] sm:$0xff] }
 0x886   : > { %v8059_v62 = vld [vmem:[%s9387_s23 + $0xb0] sm:$0xff] }
 0x887   : > { %v4444_v61 = vpop.f32.mrf.mxu3  ;;  %5056 = vmatpush.bf16.msrb.mxu0 %v7278_v48  ;;  %5069 = vmatpush.bf16.msrb.mxu2 %v7374_v19  ;;  %v7394_v48 = vor.u32 %v8018_v14, %v7393_v13  ;;  %v7285_v19 = vld [vmem:[%s9385_s21 + $0x8] sm:$0xf] }
 0x888   : > { %v4449_v11 = vpack.c.bf16 %v4444_v61, %v4444_v61  ;;  %v7997_v61 = vld [vmem:[%s9385_s21 + $0x40] sm:$0xf0] }
 0x889   : > { %v7310_v10 = vor.u32 %v7997_v61, %v7309_v6  ;;  %5326 = vmatpush.bf16.msra.mxu1 %v8044_v26  ;;  %v8056_v6 = vld [vmem:[%s9387_s23 + $0x98] sm:$0xff]  ;;  %v8055_v61 = vld [vmem:[%s9387_s23 + $0x90] sm:$0xff] }
 0x88a   : > { %4664 = vmatmul.bf16.vlgmr.msra.gmra.mxu2 %v4449_v11  ;;  %4690 = vmatmul.bf16.vlgmr.msrb.gmra.mxu3 %v4449_v11  ;;  %v7297_v11 = vld [vmem:[%s9385_s21 + $0x20] sm:$0xf] }
 0x88b   : > { %5101 = vmatpush.bf16.msra.mxu0 %v7370_v20  ;;  %5114 = vmatpush.bf16.msra.mxu2 %v7466_v21  ;;  %v7298_v18 = vor.u32 %v7994_v12, %v7297_v11  ;;  %v7991_v20 = vld [vmem:[%s9385_s21 + $0x10] sm:$0xf0]  ;;  %v7381_v21 = vld [vmem:[%s9385_s21 + $0xc8] sm:$0xf] }
 0x88c   : > { %v7286_v3 = vor.u32 %v7991_v20, %v7285_v19  ;;  %5339 = vmatpush.bf16.msrb.mxu3 %v8052_v17 }
 0x88d   : > { %5327 = vmatpush.bf16.msra.mxu1 %v8043_v29 }
 0x88f   : > { %v4446_v23 = vpop.f32.mrf.mxu3  ;;  %5102 = vmatpush.bf16.msra.mxu0 %v7358_v30  ;;  %5115 = vmatpush.bf16.msra.mxu2 %v7454_v35  ;;  %v8051_v30 = vld [vmem:[%s9387_s23 + $0x70] sm:$0xff] }
 0x890   : > { %v8015_v23 = vld [vmem:[%s9385_s21 + $0xd0] sm:$0xf0]  ;;  %5340 = vmatpush.bf16.msrb.mxu3 %v8051_v30 }
 0x891   : > { %v7382_v24 = vor.u32 %v8015_v23, %v7381_v21  ;;  %5328 = vmatpush.bf16.msra.mxu1 %v8042_v40 }
 0x893   : > { %5103 = vmatpush.bf16.msra.mxu0 %v7346_v44  ;;  %5116 = vmatpush.bf16.msra.mxu2 %v7442_v34  ;;  %v4713_v44 = vperm.slane %v4711_v38, 0 }
 0x894   : > { %5341 = vmatpush.bf16.msrb.mxu3 %v8050_v41  ;;  %v5181_v41 = vld [vmem:[%s9443_s8] sm:$0x1]  ;;  %s8281_s8 = sshra.s32 %s5405_s1, 4  ;;  %s8282_s8 = int_to_ptr.hbm [resolvable:$true] %s8281_s8 }
 0x895   : > { %5329 = vmatpush.bf16.msra.mxu1 %v8041_v47  ;;  %s8283_s7 = scalar_lea.hbm %s8282_s8, 1  ;;  %p8288_p3 = scmp.lt.s32.totalorder %s8282_s8, %s9446_s4 }
 0x896   : > { %p8284_p0 = scmp.ne.s32.totalorder %s8282_s8, %s8283_s7  ;;  %p8289_p4 = scmp.lt.s32.totalorder %s8287_s2, %s8283_s7 }
 0x897   : > { %5104 = vmatpush.bf16.msra.mxu0 %v7334_v58  ;;  %5117 = vmatpush.bf16.msra.mxu2 %v7430_v59  ;;  %v8060_v58 = vld [vmem:[%s9387_s23 + $0xb8] sm:$0xff]  ;;  %v8039_v59 = vld [vmem:[%s9387_s23 + $0x10] sm:$0xff] }
 0x898   : > { %5342 = vmatpush.bf16.msrb.mxu3 %v8049_v49  ;;  %p8285_p1 = pnand %p8284_p0, %p8517_p5  ;;  %p8290_p7 = por %p8289_p4, %p8288_p3 }
 0x899   : > { %5330 = vmatpush.bf16.msra.mxu1 %v8040_v56 }
 0x89a   : > { %p8286_p2 = pneg %p8285_p1 }
 0x89b   : > { %5105 = vmatpush.bf16.msra.mxu0 %v7322_v4  ;;  %5118 = vmatpush.bf16.msra.mxu2 %v7418_v42  ;;  %v8037_v4 = vld [vmem:[%s9387_s23] sm:$0xff] }
 0x89c   : > { %5343 = vmatpush.bf16.msrb.mxu3 %v8048_v57  ;;  %v8057_v42 = vld [vmem:[%s9387_s23 + $0xa0] sm:$0xff]  ;;  %p8291_p8 = pnand %p8290_p7, %p8286_p2 }
 0x89d   : > { %5331 = vmatpush.bf16.msra.mxu1 %v8039_v59 }
 0x89f   : > { %5106 = vmatpush.bf16.msra.mxu0 %v7310_v10  ;;  %5119 = vmatpush.bf16.msra.mxu2 %v7406_v63  ;;  %v4785_v10 = vld [vmem:[%s9386_s22] sm:$0x7] }
 0x8a0   : > { %5344 = vmatpush.bf16.msrb.mxu3 %v8047_v60  ;;  %v5043_v11 = vperm.slane %v4785_v10, 0  ;;  %v5044_v13 = vperm.slane %v4785_v10, 1 }
 0x8a1   : > { %5332 = vmatpush.bf16.msra.mxu1 %v8038_v0 }
 0x8a3   : > { %5107 = vmatpush.bf16.msra.mxu0 %v7298_v18  ;;  %5120 = vmatpush.bf16.msra.mxu2 %v7394_v48 }
 0x8a5   : > { %5333 = vmatpush.bf16.msra.mxu1 %v8037_v4 }
 0x8a7   : > { %5108 = vmatpush.bf16.msra.mxu0 %v7286_v3  ;;  %5121 = vmatpush.bf16.msra.mxu2 %v7382_v24 }
 0x8fb   : > { %v4652_v1 = vpop.f32.mrf.mxu0  ;;  %v4678_v2 = vpop.f32.mrf.mxu1 }
 0x903   : > { %v4654_v15 = vpop.f32.mrf.mxu0  ;;  %v4680_v16 = vpop.f32.mrf.mxu1 }
 0x90d   : > { %v4665_v27 = vpop.f32.mrf.mxu2  ;;  %v4691_v28 = vpop.f32.mrf.mxu3 }
 0x90e   : > { %v4666_v31 = vadd.f32 %v4665_v27, %v4652_v1  ;;  %v4692_v35 = vadd.f32 %v4691_v28, %v4678_v2  ;;  %v8046_v1 = vld [vmem:[%s9387_s23 + $0x48] sm:$0xff]  ;;  %v5045_v28 = vperm.slane %v4785_v10, 2 }
 0x90f   : > { %v8058_v2 = vld [vmem:[%s9387_s23 + $0xa8] sm:$0xff]  ;;  %5345 = vmatpush.bf16.msrb.mxu3 %v8046_v1 }
 0x910   : > { %v4695_v37 = vadd.f32 %v4666_v31, %v9014_v22  ;;  %v4696_v39 = vadd.f32 %v4692_v35, %v9016_v8  ;;  %v4714_v22 = vperm.slane %v4711_v38, 1 }
 0x912   : > { %v4703_v43 = vadd.f32 %v4699_v32, %v4695_v37  ;;  %v4704_v33 = vadd.f32 %v4700_v36, %v4696_v39 }
 0x913   : > { %5346 = vmatpush.bf16.msrb.mxu3 %v8045_v5 }
 0x914   : > { %vm4705_vm3 = vcmp.gt.f32.partialorder %v4703_v43, 0.0  ;;  %v4707_v45 = vmul.f32 0.2, %v4703_v43  ;;  %vm4706_vm4 = vcmp.gt.f32.partialorder %v4704_v33, 0.0  ;;  %v4708_v46 = vmul.f32 0.2, %v4704_v33 }
 0x915   : > { %v4667_v34 = vpop.f32.mrf.mxu2  ;;  %v4693_v8 = vpop.f32.mrf.mxu3 }
 0x916   : > { %v4709_v50 = vsel %vm4705_vm3, %v4703_v43, %v4707_v45  ;;  %v4710_v51 = vsel %vm4706_vm4, %v4704_v33, %v4708_v46 }
 0x917   : > { %v4717_v52 = vadd.f32 %v4713_v44, %v4709_v50  ;;  %v4718_v53 = vadd.f32 %v4714_v22, %v4710_v51 }
 0x919   : > { %v4719_v54 = vpack.c.bf16 %v4717_v52, %v4717_v52  ;;  %v4720_v55 = vpack.c.bf16 %v4718_v53, %v4718_v53 }
 0x91b   : > { %5057 = vmatmul.bf16.vlgmr.msrb.gmra.mxu0 %v4719_v54  ;;  %5070 = vmatmul.bf16.vlgmr.msrb.gmra.mxu2 %v4720_v55 }
 0x91c   : > { %5083 = vmatmul.bf16.vlgmr.msrb.gmra.mxu1 %v4719_v54  ;;  %5096 = vmatmul.bf16.vlgmr.msra.gmra.mxu3 %v4720_v55 }
 0x91d   : > { %5352 = vmatpush.bf16.msrb.mxu0 %v8060_v58 }
 0x921   : > { %5353 = vmatpush.bf16.msrb.mxu0 %v8059_v62 }
 0x925   : > { %5354 = vmatpush.bf16.msrb.mxu0 %v8058_v2 }
 0x929   : > { %5355 = vmatpush.bf16.msrb.mxu0 %v8057_v42 }
 0x92b   : > { %5109 = vmatmul.bf16.vlgmr.msra.gmra.mxu0 %v4719_v54  ;;  %5122 = vmatmul.bf16.vlgmr.msra.gmra.mxu2 %v4720_v55 }
 0x92d   : > { %5356 = vmatpush.bf16.msrb.mxu0 %v8056_v6 }
 0x931   : > { %5357 = vmatpush.bf16.msrb.mxu0 %v8055_v61 }
 0x935   : > { %5358 = vmatpush.bf16.msrb.mxu0 %v8054_v7 }
 0x939   : > { %5359 = vmatpush.bf16.msrb.mxu0 %v8053_v9 }
 0x998   : > { %v5058_v63 = vpop.f32.mrf.mxu0 }
 0x999   : > { %v5084_v12 = vpop.f32.mrf.mxu1  ;;  %v5059_v14 = vadd.f32 %v5058_v63, %v5043_v11 }
 0x99a   : > { %v5085_v15 = vadd.f32 %v5084_v12, %v5044_v13 }
 0x99e   : > { %v5071_v16 = vpop.f32.mrf.mxu2 }
 0x99f   : > { %v5072_v18 = vadd.f32 %v5071_v16, %v5059_v14  ;;  %v5097_v48 = vpop.f32.mrf.mxu3 }
 0x9a0   : > { %v5098_v19 = vadd.f32 %v5097_v48, %v5085_v15  ;;  %v5060_v20 = vpop.f32.mrf.mxu0 }
 0x9a1   : > { %v5127_v21 = vmax.f32 %v5072_v18, 0.0  ;;  %v5086_v23 = vpop.f32.mrf.mxu1 }
 0x9a2   : > { %v5128_v3 = vmax.f32 %v5098_v19, 0.0 }
 0x9a3   : > { %v5130_v24 = vpack.c.bf16 %v5127_v21, %v5127_v21 }
 0x9a4   : > { %v5131_v25 = vpack.c.bf16 %v5128_v3, %v5128_v3 }
 0x9a5   : > { %5334 = vmatmul.bf16.vlgmr.msra.gmra.mxu1 %v5130_v24 }
 0x9a6   : > { %5347 = vmatmul.bf16.vlgmr.msrb.gmra.mxu3 %v5131_v25  ;;  %v5073_v26 = vpop.f32.mrf.mxu2 }
 0x9a7   : > { %v5099_v17 = vpop.f32.mrf.mxu3 }
 0x9a8   : > { %v5110_v27 = vpop.f32.mrf.mxu0 }
 0x9a9   : > { %v5111_v29 = vadd.f32 %v5110_v27, %v5045_v28 }
 0x9ae   : > { %v5123_v30 = vpop.f32.mrf.mxu2 }
 0x9af   : > { %v5124_v31 = vadd.f32 %v5123_v30, %v5111_v29 }
 0x9b0   : > { %v5112_v32 = vpop.f32.mrf.mxu0 }
 0x9b1   : > { %v5129_v35 = vmax.f32 %v5124_v31, 0.0 }
 0x9b3   : > { %v5132_v36 = vpack.c.bf16 %v5129_v35, %v5129_v35 }
 0x9b5   : > { %5360 = vmatmul.bf16.vlgmr.msrb.gmra.mxu0 %v5132_v36 }
 0x9b6   : > { %v5125_v37 = vpop.f32.mrf.mxu2 }
 0xa22   : > { %v5335_v38 = vpop.f32.mrf.mxu1 }
 0xa23   : > { %v5336_v43 = vadd.f32 %v5335_v38, %v5181_v41 }
 0xa29   : > { %v5348_v39 = vpop.f32.mrf.mxu3 }
 0xa2a   : > { %v5337_v40 = vpop.f32.mrf.mxu1  ;;  %v5349_v33 = vadd.f32 %v5348_v39, %v5336_v43 }
 0xa31   : > { %v5350_v44 = vpop.f32.mrf.mxu3 }
 0xa32   : > { %v5361_v22 = vpop.f32.mrf.mxu0 }
 0xa33   : > { %v5362_v45 = vadd.f32 %v5361_v22, %v5349_v33 }
 0xa35   : > { %v5366_v46 = vsel %vm5365_vm5, %v5362_v45, -inf }
 0xa36   : > { %5367 = vmax.xlane.f32.xlu0 %v5366_v46 }
 0xa3a   : > { %v5363_v34 = vpop.f32.mrf.mxu0 }
 0xaa9   : > { %v5368_v8 = vpop.xlane.xlu0 %5367 }
 0xaaa   : > { %v5369_v47 = vsub.f32 %v5362_v45, %v5368_v8 }
 0xaac   : > { %v5370_v49 = vmul.f32 1.442695, %v5369_v47 }
 0xaae   : > { %8143 = vpow2.f32 %v5370_v49 }
 0xab4   : > { %v8144_v50 = vpop.eup %8143 }
 0xab5   : > { %v5372_v51 = vsel %vm5365_vm5, %v8144_v50, 0.0 }
 0xab6   : > { %5373 = vadd.xlane.f32.xlu0 %v5372_v51 }
 0xb29   : > { %v5374_v52 = vpop.xlane.xlu0 %5373 }
 0xb2a   : > { %8145 = vrcp.f32 %v5374_v52  ;;  %v5386_v56 = vand.u32 2147483648, %v5374_v52  ;;  %v5384_v58 = vand.u32 2147483647, %v5374_v52  ;;  %vm5380_vm7 = vweird.f32 %v5374_v52 }
 0xb2c   : > { %v5387_v60 = vor.u32 1.1754944e-38, %v5386_v56  ;;  %vm5385_vm9 = vcmp.eq.f32.partialorder %v5384_v58, 8.507059e+37 }
 0xb30   : > { %v8146_v53 = vpop.eup %8145 }
 0xb31   : > { %v5376_v54 = vmul.f32 %v8146_v53, %v5374_v52  ;;  %vm5381_vm6 = vweird.f32 %v8146_v53 }
 0xb32   : > { %vm5382_vm8 = vmor %vm5380_vm7, %vm5381_vm6 }
 0xb33   : > { %v5377_v55 = vsub.f32 1.0, %v5376_v54 }
 0xb35   : > { %v5378_v57 = vmul.f32 %v8146_v53, %v5377_v55 }
 0xb37   : > { %v5379_v59 = vadd.f32 %v8146_v53, %v5378_v57 }
 0xb39   : > { %v5383_v62 = vsel %vm5382_vm8, %v8146_v53, %v5379_v59 }
 0xb3a   : > { %v5388_v0 = vsel %vm5385_vm9, %v5387_v60, %v5383_v62 }
 0xb3b   : > { %v5389_v1 = vmul.f32 %v8144_v50, %v5388_v0 }
 0xb3d   : > { %5390 = vst.msk [vmem:[%s823_s5] sm:$0x1] %vm5365_vm5, %v5389_v1 }
 0xb3e   : > { %8294 = shalt.err (!%p8291_p8)
}
 0xb3f   : > { %8077 = dma.vmem_to_hbm [thread:$0]  (%p8517_p5), %s5403_s0, 16, %s5405_s1, %s5392_s27  }
 0xb40 PF: > { %s9448_s24 = sld [smem:[#allocation18_spill]] }
 0xb41   : > { %s9449_s5 = sld [smem:[#allocation15_spill]] }
 0xb46   : > { %p8104_p9 = scmp.ge.s32.totalorder %s9448_s24, 2 }
 0xb47   : > { %s5416_s10 = sand.u32 1, %s9449_s5  }
 0xb48   : > { %p8093_p10 = pnand %p8104_p9, %p8521_p6  ;;  %s5417_s29 = scalar_lea.sflag [#allocation4], %s5416_s10 }
 0xb4a   : > { %p8094_p11 = pneg %p8093_p10 }
 0xb4c   : > { %8324 = dma.done.wait (%p8094_p11), %s5417_s29, 16  }
 0xb4d   : > { %8326 = vsyncadd (%p8094_p11), %s5417_s29, 4294967280  ;;  %s9451_s30 = sld [smem:[#allocation19_spill]] }
 0xb4e   : > { %s9452_s29 = sld [smem:[#allocation16_spill]] }
 0xb4f   : > { %s9453_s2 = sld [smem:[#allocation17_spill]] }
 0xb50   : > { %s9454_s6 = sld [smem:[#allocation20_spill]] }
 0xb53   : > { %p38_p12 = scmp.ge.s32.totalorder %s9451_s30, 4  }
 0xb55   :  { %40 = sbr.rel (!%p38_p12) target bundleno = 20 (0x14), region = 192 }
 0xb5a   :  { %5422 = vsyncpa [#allocation3], 1 }
 0xb5b   :  { %5424 = vsyncpa [#allocation3 + $0x1], 1 }
 0xb5c   :  { %5425 = vsyncpa [#allocation6], 1 }
 0xb5d   :  { %5426 = vsyncpa [#allocation9], 1 }
 0xb5e   :  { %5427 = vsyncpa [#allocation4], 1 }
 0xb5f   :  { %5429 = vsyncpa [#allocation4 + $0x1], 1 }

</bundles_post_ra>
